<compile_context>
chip_gen: v7x
topology: tpu7x:2x2x1
jax: 0.10.0
libtpu: 0.0.40
codegen_flags: <defaults>
</compile_context>

<pallas_src>
import math
from functools import partial

import jax
import jax.numpy as jnp
from jax import lax
from jax.experimental import pallas as pl
from jax.experimental.pallas import tpu as pltpu


# --------------------------------------------------------------------------------------
# Pallas kernel: one full TransformerEncoderLayer (+ repetition-embedding + PE add) for a
# block of BN batch elements.  All weights are pre-transposed so the kernel does y = x @ W + b.
# --------------------------------------------------------------------------------------
def _encoder_layer_kernel(
    x_ref, pe_ref,
    wqkv_ref, bqkv_ref, wo_ref, bo_ref,
    g1_ref, b1n_ref,
    w1_ref, bf1_ref, w2_ref, bf2_ref,
    g2_ref, b2n_ref,
    o_ref,
    attn_sc,
    *, n_heads, head_dim, repeat,
):
    BN, L, C = x_ref.shape
    D = n_heads * head_dim
    M = BN * L
    bf16 = jnp.bfloat16

    # ---- embed_by_repetition + positional encoding ----
    xb = x_ref[...]                                                   # (BN, L, C) f32
    src3 = jnp.concatenate([xb] * repeat, axis=-1)                    # (BN, L, D)  repeat along features
    src3 = src3 + pe_ref[...]                                         # PE row per batch elem, bcast over L
    src = src3.reshape(M, D)                                          # flat rows for the big matmuls

    # ---- QKV projection (bf16 on MXU, f32 accumulate) ----
    qkv = jnp.dot(src.astype(bf16), wqkv_ref[...],
                  preferred_element_type=jnp.float32) + bqkv_ref[...]  # (M, 3D) f32
    q = qkv[:, :D].reshape(BN, L, D)
    k = qkv[:, D:2 * D].reshape(BN, L, D)
    v = qkv[:, 2 * D:].reshape(BN, L, D)

    # causal mask: built once per program, shared across BN batch elements and all heads.
    row = lax.broadcasted_iota(jnp.int32, (L, L), 0)
    col = lax.broadcasted_iota(jnp.int32, (L, L), 1)
    mask = jnp.where(col <= row, 0.0, -jnp.inf).astype(jnp.float32)[None]  # (1, L, L)

    scale = 1.0 / math.sqrt(head_dim)

    # ---- causal multi-head attention: per head, batched over BN via leading-batch dot_general ----
    for h in range(n_heads):                                          # static unroll (small n_heads)
        lo, hi = h * head_dim, (h + 1) * head_dim
        qh = q[:, :, lo:hi].astype(bf16)                              # (BN, L, hd)
        kh = k[:, :, lo:hi].astype(bf16)
        vh = v[:, :, lo:hi].astype(bf16)
        scores = jnp.einsum('bqd,bkd->bqk', qh, kh,
                            preferred_element_type=jnp.float32) * scale + mask
        m = jnp.max(scores, axis=-1, keepdims=True)
        p = jnp.exp(scores - m)
        denom = jnp.sum(p, axis=-1, keepdims=True)
        p = p * pl.reciprocal(denom, approx=True)                     # EUP reciprocal
        ctx = jnp.einsum('bqk,bkd->bqd', p.astype(bf16), vh,
                         preferred_element_type=jnp.float32)          # (BN, L, hd)
        attn_sc[:, lo:hi] = ctx.reshape(M, head_dim)                  # write into VMEM scratch (no concat)

    attn = jnp.dot(attn_sc[...].astype(bf16), wo_ref[...],
                   preferred_element_type=jnp.float32) + bo_ref[...]  # (M, D)

    # ---- residual + layernorm 1 (f32) ----
    x1 = src + attn
    mu = jnp.mean(x1, axis=-1, keepdims=True)
    var = jnp.mean((x1 - mu) ** 2, axis=-1, keepdims=True)
    x1 = (x1 - mu) * lax.rsqrt(var + 1e-5) * g1_ref[...] + b1n_ref[...]

    # ---- feed-forward (bf16 matmuls, f32 elementwise) ----
    h1 = jnp.dot(x1.astype(bf16), w1_ref[...],
                 preferred_element_type=jnp.float32) + bf1_ref[...]
    h1 = jnp.maximum(h1, 0.0)
    ff = jnp.dot(h1.astype(bf16), w2_ref[...],
                 preferred_element_type=jnp.float32) + bf2_ref[...]

    # ---- residual + layernorm 2 ----
    x2 = x1 + ff
    mu2 = jnp.mean(x2, axis=-1, keepdims=True)
    var2 = jnp.mean((x2 - mu2) ** 2, axis=-1, keepdims=True)
    x2 = (x2 - mu2) * lax.rsqrt(var2 + 1e-5) * g2_ref[...] + b2n_ref[...]

    o_ref[...] = x2.reshape(BN, L, D)


# --------------------------------------------------------------------------------------
# Wrapper: TransformerForecaster.forward (embed_by_repetition=True, return_dict=False)
# --------------------------------------------------------------------------------------
def transformer_forecaster_forward(x, params, *, n_heads, block_n=8):
    """x: (L, N, in_size) float32  ->  (L, N, feature_size) float32."""
    L, N, C = x.shape
    D = params["wqkv"].shape[0]
    FF = params["w1"].shape[1]
    assert D % C == 0 and D % n_heads == 0 and block_n % 8 == 0
    repeat = D // C
    head_dim = D // n_heads

    BN = block_n
    n_pad = ((N + BN - 1) // BN) * BN

    # Input stays un-repeated (C channels) -> repetition is done in VMEM inside the kernel.
    x_nlc = jnp.transpose(x, (1, 0, 2))                               # (N, L, C), tiny (pre-repeat)
    pe = params["pe"][:N][:, None, :]                                 # (N, 1, D): PE indexed by batch axis
    if n_pad != N:                                                    # pad batch to a multiple of BN
        x_nlc = jnp.pad(x_nlc, ((0, n_pad - N), (0, 0), (0, 0)))
        pe = jnp.pad(pe, ((0, n_pad - N), (0, 0), (0, 0)))

    kernel = partial(_encoder_layer_kernel,
                     n_heads=n_heads, head_dim=head_dim, repeat=repeat)

    def wfull(shape):
        # grid-invariant weight block: same (0, 0) block every step -> no per-step re-fetch needed
        return pl.BlockSpec(shape, lambda n: tuple(0 for _ in shape))

    bf16 = jnp.bfloat16
    out = pl.pallas_call(
        kernel,
        out_shape=jax.ShapeDtypeStruct((n_pad, L, D), jnp.float32),
        grid_spec=pltpu.PrefetchScalarGridSpec(
            num_scalar_prefetch=0,
            grid=(n_pad // BN,),
            in_specs=[
                pl.BlockSpec((BN, L, C), lambda n: (n, 0, 0)),        # raw input block
                pl.BlockSpec((BN, 1, D), lambda n: (n, 0, 0)),        # PE rows for this batch block
                wfull((D, 3 * D)),                                    # in_proj weight (pre-T, bf16)
                wfull((1, 3 * D)),                                    # in_proj bias
                wfull((D, D)),                                        # out_proj weight (pre-T, bf16)
                wfull((1, D)),                                        # out_proj bias
                wfull((1, D)),                                        # norm1 gamma
                wfull((1, D)),                                        # norm1 beta
                wfull((D, FF)),                                       # linear1 weight (pre-T, bf16)
                wfull((1, FF)),                                       # linear1 bias
                wfull((FF, D)),                                       # linear2 weight (pre-T, bf16)
                wfull((1, D)),                                        # linear2 bias
                wfull((1, D)),                                        # norm2 gamma
                wfull((1, D)),                                        # norm2 beta
            ],
            out_specs=pl.BlockSpec((BN, L, D), lambda n: (n, 0, 0)),
            scratch_shapes=[pltpu.VMEM((BN * L, D), jnp.float32)],    # attention output slab
        ),
        compiler_params=pltpu.CompilerParams(
            dimension_semantics=("parallel",),                        # batch axis: megacore-shardable
            vmem_limit_bytes=32 * 1024 * 1024,
        ),
    )(x_nlc, pe,
      params["wqkv"].astype(bf16), params["bqkv"],
      params["wo"].astype(bf16), params["bo"],
      params["g1"], params["b1n"],
      params["w1"].astype(bf16), params["bf1"],
      params["w2"].astype(bf16), params["bf2"],
      params["g2"], params["b2n"])

    out = out[:N]                                                     # drop batch padding
    return jnp.transpose(out, (1, 0, 2))                              # back to (L, N, D)


# --------------------------------------------------------------------------------------
# Deterministic parameter construction (sine PE + uniform small weights)
# --------------------------------------------------------------------------------------
def _sine_pe(n_rows, d_model):
    position = jnp.arange(n_rows, dtype=jnp.float32)[:, None]
    div_term = jnp.exp(
        jnp.arange(0, d_model, 2, dtype=jnp.float32) * (-math.log(10000.0) / d_model))
    pe = jnp.zeros((n_rows, d_model), jnp.float32)
    pe = pe.at[:, 0::2].set(jnp.sin(position * div_term))
    pe = pe.at[:, 1::2].set(jnp.cos(position * div_term))
    return pe


def init_params(key, feature_size, feedforward_size, n_pe_rows):
    D, FF = feature_size, feedforward_size
    ks = jax.random.split(key, 8)

    def u(k, shape, s=0.05):
        return jax.random.uniform(k, shape, jnp.float32, -s, s)

    return dict(
        wqkv=u(ks[0], (D, 3 * D)),      # == in_proj_weight.T
        bqkv=u(ks[1], (1, 3 * D)),
        wo=u(ks[2], (D, D)),            # == out_proj.weight.T
        bo=jnp.zeros((1, D), jnp.float32),
        w1=u(ks[3], (D, FF)),           # == linear1.weight.T
        bf1=u(ks[4], (1, FF)),
        w2=u(ks[5], (FF, D)),           # == linear2.weight.T
        bf2=u(ks[6], (1, D)),
        g1=jnp.ones((1, D), jnp.float32),
        b1n=jnp.zeros((1, D), jnp.float32),
        g2=jnp.ones((1, D), jnp.float32),
        b2n=jnp.zeros((1, D), jnp.float32),
        pe=_sine_pe(n_pe_rows, D),      # sine PE buffer (deterministic)
    )


# --------------------------------------------------------------------------------------
# Pure-JAX f32 reference (mirrors PyTorch eval-mode semantics) for a correctness check
# --------------------------------------------------------------------------------------
def _reference(x, params, n_heads):
    L, N, C = x.shape
    D = params["wqkv"].shape[0]
    repeat = D // C
    hd = D // n_heads
    emb = jnp.tile(x, (1, 1, repeat))                                 # (L, N, D)
    src = emb + params["pe"][None, :N, :]                             # PE indexed by axis 1 (literal code)

    qkv = src @ params["wqkv"] + params["bqkv"][0]                    # (L, N, 3D)
    q, k, v = qkv[..., :D], qkv[..., D:2 * D], qkv[..., 2 * D:]

    def split(t):                                                     # (L, N, D) -> (N, H, L, hd)
        return jnp.transpose(t.reshape(L, N, n_heads, hd), (1, 2, 0, 3))

    qh, kh, vh = split(q), split(k), split(v)
    scores = jnp.einsum('nhqd,nhkd->nhqk', qh, kh) / math.sqrt(hd)
    mask = jnp.where(jnp.arange(L)[None, :] <= jnp.arange(L)[:, None], 0.0, -jnp.inf)
    p = jax.nn.softmax(scores + mask, axis=-1)
    o = jnp.einsum('nhqk,nhkd->nhqd', p, vh)
    o = jnp.transpose(o, (2, 0, 1, 3)).reshape(L, N, D)
    attn = o @ params["wo"] + params["bo"][0]

    def ln(t, g, b):
        mu = t.mean(-1, keepdims=True)
        var = ((t - mu) ** 2).mean(-1, keepdims=True)
        return (t - mu) / jnp.sqrt(var + 1e-5) * g[0] + b[0]

    x1 = ln(src + attn, params["g1"], params["b1n"])
    ff = jnp.maximum(x1 @ params["w1"] + params["bf1"][0], 0.0) @ params["w2"] + params["bf2"][0]
    return ln(x1 + ff, params["g2"], params["b2n"])


# --------------------------------------------------------------------------------------
if __name__ == "__main__":
    # small shapes: seq/attn axis L=16, batch N=16, in_size C=32 (repeat=4),
    # feature_size D=128 (lane-dense), ffn=256, heads=4, BN=8 batch elems per grid step.
    L, N, C = 16, 16, 32
    D, FF, H = 128, 256, 4
    BN = 8
    assert D % C == 0 and D % H == 0

    key = jax.random.PRNGKey(0)
    kx, kp = jax.random.split(key)
    x = jax.random.normal(kx, (L, N, C), dtype=jnp.float32)
    params = init_params(kp, D, FF, n_pe_rows=max(N, 32))

    fwd = jax.jit(partial(transformer_forecaster_forward, n_heads=H, block_n=BN))
    out = fwd(x, params)
    out = jax.block_until_ready(out)

    ref = _reference(x, params, H)
    assert out.shape == (L, N, D)
    assert bool(jnp.all(jnp.isfinite(out)))
    max_err = float(jnp.max(jnp.abs(out - ref)))
    # kernel uses bf16 MXU matmuls (f32 accumulate); reference is pure f32
    assert bool(jnp.allclose(out, ref, atol=5e-2, rtol=5e-2)), f"max abs err {max_err}"

    print("KERNEL_OK")
</pallas_src>

<mosaic_0001>
module attributes {stable_mosaic.version = 11 : i64} {
  func.func @_encoder_layer_kernel(%arg0: i32, %arg1: memref<8x16x32xf32, #tpu.memory_space<vmem>>, %arg2: memref<8x1x128xf32, #tpu.memory_space<vmem>>, %arg3: memref<128x384xbf16, #tpu.memory_space<vmem>>, %arg4: memref<1x384xf32, #tpu.memory_space<vmem>>, %arg5: memref<128x128xbf16, #tpu.memory_space<vmem>>, %arg6: memref<1x128xf32, #tpu.memory_space<vmem>>, %arg7: memref<1x128xf32, #tpu.memory_space<vmem>>, %arg8: memref<1x128xf32, #tpu.memory_space<vmem>>, %arg9: memref<128x256xbf16, #tpu.memory_space<vmem>>, %arg10: memref<1x256xf32, #tpu.memory_space<vmem>>, %arg11: memref<256x128xbf16, #tpu.memory_space<vmem>>, %arg12: memref<1x128xf32, #tpu.memory_space<vmem>>, %arg13: memref<1x128xf32, #tpu.memory_space<vmem>>, %arg14: memref<1x128xf32, #tpu.memory_space<vmem>>, %arg15: memref<8x16x128xf32, #tpu.memory_space<vmem>>, %arg16: memref<128x128xf32, #tpu.memory_space<vmem>>) attributes {dimension_semantics = [#tpu.dimension_semantics<parallel>], iteration_bounds = array<i64: 2>, scalar_prefetch = 0 : i64, scratch_operands = 1 : i64, tpu.core_type = #tpu.core_type<tc>, window_params = [{transform_indices = @transform_0, window_bounds = array<i64: 8, 16, 32>}, {transform_indices = @transform_1, window_bounds = array<i64: 8, 1, 128>}, {pipeline_mode = #tpu.pipeline_mode<synchronous>, transform_indices = @transform_2, window_bounds = array<i64: 128, 384>}, {pipeline_mode = #tpu.pipeline_mode<synchronous>, transform_indices = @transform_3, window_bounds = array<i64: 1, 384>}, {pipeline_mode = #tpu.pipeline_mode<synchronous>, transform_indices = @transform_4, window_bounds = array<i64: 128, 128>}, {pipeline_mode = #tpu.pipeline_mode<synchronous>, transform_indices = @transform_5, window_bounds = array<i64: 1, 128>}, {pipeline_mode = #tpu.pipeline_mode<synchronous>, transform_indices = @transform_6, window_bounds = array<i64: 1, 128>}, {pipeline_mode = #tpu.pipeline_mode<synchronous>, transform_indices = @transform_7, window_bounds = array<i64: 1, 128>}, {pipeline_mode = #tpu.pipeline_mode<synchronous>, transform_indices = @transform_8, window_bounds = array<i64: 128, 256>}, {pipeline_mode = #tpu.pipeline_mode<synchronous>, transform_indices = @transform_9, window_bounds = array<i64: 1, 256>}, {pipeline_mode = #tpu.pipeline_mode<synchronous>, transform_indices = @transform_10, window_bounds = array<i64: 256, 128>}, {pipeline_mode = #tpu.pipeline_mode<synchronous>, transform_indices = @transform_11, window_bounds = array<i64: 1, 128>}, {pipeline_mode = #tpu.pipeline_mode<synchronous>, transform_indices = @transform_12, window_bounds = array<i64: 1, 128>}, {pipeline_mode = #tpu.pipeline_mode<synchronous>, transform_indices = @transform_13, window_bounds = array<i64: 1, 128>}, {transform_indices = @transform_14, window_bounds = array<i64: 8, 16, 128>}]} {
    %c0 = arith.constant 0 : index
    %c0_0 = arith.constant 0 : index
    %c0_1 = arith.constant 0 : index
    %0 = vector.load %arg1[%c0, %c0_0, %c0_1] : memref<8x16x32xf32, #tpu.memory_space<vmem>>, vector<8x16x32xf32>
    %1 = tpu.concatenate %0, %0, %0, %0 in 2 : vector<8x16x32xf32>, vector<8x16x32xf32>, vector<8x16x32xf32>, vector<8x16x32xf32> -> vector<8x16x128xf32>
    %c0_2 = arith.constant 0 : index
    %c0_3 = arith.constant 0 : index
    %c0_4 = arith.constant 0 : index
    %2 = vector.load %arg2[%c0_2, %c0_3, %c0_4] : memref<8x1x128xf32, #tpu.memory_space<vmem>>, vector<8x1x128xf32>
    %3 = vector.broadcast %2 : vector<8x1x128xf32> to vector<8x16x128xf32>
    %4 = arith.addf %1, %3 : vector<8x16x128xf32>
    %5 = vector.shape_cast %4 : vector<8x16x128xf32> to vector<128x128xf32>
    %6 = arith.truncf %5 : vector<128x128xf32> to vector<128x128xbf16>
    %c0_5 = arith.constant 0 : index
    %c0_6 = arith.constant 0 : index
    %7 = vector.load %arg3[%c0_5, %c0_6] : memref<128x384xbf16, #tpu.memory_space<vmem>>, vector<128x384xbf16>
    %cst = arith.constant dense<0.000000e+00> : vector<128x384xf32>
    %8 = tpu.matmul %6, %7, %cst {dimension_numbers = #tpu.dot_dimension_numbers<[1], [0], [0], [1], [0, 0, 1, 1], [], []>} : vector<128x128xbf16>, vector<128x384xbf16>, vector<128x384xf32> -> vector<128x384xf32>
    %c0_7 = arith.constant 0 : index
    %c0_8 = arith.constant 0 : index
    %9 = vector.load %arg4[%c0_7, %c0_8] : memref<1x384xf32, #tpu.memory_space<vmem>>, vector<1x384xf32>
    %10 = vector.broadcast %9 : vector<1x384xf32> to vector<128x384xf32>
    %11 = arith.addf %8, %10 : vector<128x384xf32>
    %12 = vector.extract_strided_slice %11 {offsets = [0, 0], sizes = [128, 128], strides = [1, 1]} : vector<128x384xf32> to vector<128x128xf32>
    %13 = vector.shape_cast %12 : vector<128x128xf32> to vector<8x16x128xf32>
    %14 = vector.extract_strided_slice %11 {offsets = [0, 128], sizes = [128, 128], strides = [1, 1]} : vector<128x384xf32> to vector<128x128xf32>
    %15 = vector.shape_cast %14 : vector<128x128xf32> to vector<8x16x128xf32>
    %16 = vector.extract_strided_slice %11 {offsets = [0, 256], sizes = [128, 128], strides = [1, 1]} : vector<128x384xf32> to vector<128x128xf32>
    %17 = vector.shape_cast %16 : vector<128x128xf32> to vector<8x16x128xf32>
    %18 = tpu.iota {dimensions = array<i32: 0>} : vector<16x16xi32>
    %19 = tpu.iota {dimensions = array<i32: 1>} : vector<16x16xi32>
    %20 = arith.cmpi sle, %19, %18 : vector<16x16xi32>
    %cst_9 = arith.constant 0.000000e+00 : f32
    %cst_10 = arith.constant 0xFF800000 : f32
    %21 = vector.broadcast %cst_9 : f32 to vector<16x16xf32>
    %22 = vector.broadcast %cst_10 : f32 to vector<16x16xf32>
    %23 = arith.select %20, %21, %22 : vector<16x16xi1>, vector<16x16xf32>
    %24 = vector.shape_cast %23 : vector<16x16xf32> to vector<1x16x16xf32>
    %25 = vector.extract_strided_slice %13 {offsets = [0, 0, 0], sizes = [8, 16, 32], strides = [1, 1, 1]} : vector<8x16x128xf32> to vector<8x16x32xf32>
    %26 = arith.truncf %25 : vector<8x16x32xf32> to vector<8x16x32xbf16>
    %27 = vector.extract_strided_slice %15 {offsets = [0, 0, 0], sizes = [8, 16, 32], strides = [1, 1, 1]} : vector<8x16x128xf32> to vector<8x16x32xf32>
    %28 = arith.truncf %27 : vector<8x16x32xf32> to vector<8x16x32xbf16>
    %29 = vector.extract_strided_slice %17 {offsets = [0, 0, 0], sizes = [8, 16, 32], strides = [1, 1, 1]} : vector<8x16x128xf32> to vector<8x16x32xf32>
    %30 = arith.truncf %29 : vector<8x16x32xf32> to vector<8x16x32xbf16>
    "tpu.trace_start"() <{level = 10 : i32, message = "bqd,bkd->bqk"}> : () -> ()
    %cst_11 = arith.constant dense<0.000000e+00> : vector<8x16x16xf32>
    %31 = tpu.matmul %26, %28, %cst_11 {dimension_numbers = #tpu.dot_dimension_numbers<[2], [2], [1], [1], [0, 0, 0, 1, 1, 1], [0], [0]>} : vector<8x16x32xbf16>, vector<8x16x32xbf16>, vector<8x16x16xf32> -> vector<8x16x16xf32>
    "tpu.trace_stop"() : () -> ()
    %cst_12 = arith.constant 0.176776692 : f32
    %32 = vector.broadcast %cst_12 : f32 to vector<8x16x16xf32>
    %33 = arith.mulf %31, %32 : vector<8x16x16xf32>
    %34 = vector.broadcast %24 : vector<1x16x16xf32> to vector<8x16x16xf32>
    %35 = arith.addf %33, %34 : vector<8x16x16xf32>
    %cst_13 = arith.constant dense<0xFF800000> : vector<8x16xf32>
    %36 = vector.multi_reduction <maximumf>, %35, %cst_13 [2] : vector<8x16x16xf32> to vector<8x16xf32>
    %37 = vector.shape_cast %36 : vector<8x16xf32> to vector<8x16x1xf32>
    %38 = vector.broadcast %37 : vector<8x16x1xf32> to vector<8x16x16xf32>
    %39 = arith.subf %35, %38 : vector<8x16x16xf32>
    %40 = math.exp %39 : vector<8x16x16xf32>
    %cst_14 = arith.constant dense<0.000000e+00> : vector<8x16xf32>
    %41 = vector.multi_reduction <add>, %40, %cst_14 [2] : vector<8x16x16xf32> to vector<8x16xf32>
    %42 = vector.shape_cast %41 : vector<8x16xf32> to vector<8x16x1xf32>
    %43 = tpu.reciprocal %42 {approx = true} : vector<8x16x1xf32> -> vector<8x16x1xf32>
    %44 = vector.broadcast %43 : vector<8x16x1xf32> to vector<8x16x16xf32>
    %45 = arith.mulf %40, %44 : vector<8x16x16xf32>
    %46 = arith.truncf %45 : vector<8x16x16xf32> to vector<8x16x16xbf16>
    "tpu.trace_start"() <{level = 10 : i32, message = "bqk,bkd->bqd"}> : () -> ()
    %cst_15 = arith.constant dense<0.000000e+00> : vector<8x16x32xf32>
    %47 = tpu.matmul %46, %30, %cst_15 {dimension_numbers = #tpu.dot_dimension_numbers<[2], [1], [1], [2], [0, 0, 0, 1, 1, 2], [0], [0]>} : vector<8x16x16xbf16>, vector<8x16x32xbf16>, vector<8x16x32xf32> -> vector<8x16x32xf32>
    "tpu.trace_stop"() : () -> ()
    %48 = vector.shape_cast %47 : vector<8x16x32xf32> to vector<128x32xf32>
    %c0_16 = arith.constant 0 : index
    %c0_17 = arith.constant 0 : index
    %49 = vector.load %arg16[%c0_16, %c0_17] : memref<128x128xf32, #tpu.memory_space<vmem>>, vector<128x32xf32>
    tpu.vector_store %arg16[%c0_16, %c0_17], %48 {strides = array<i32>} : memref<128x128xf32, #tpu.memory_space<vmem>>, vector<128x32xf32>,
    %50 = vector.extract_strided_slice %13 {offsets = [0, 0, 32], sizes = [8, 16, 32], strides = [1, 1, 1]} : vector<8x16x128xf32> to vector<8x16x32xf32>
    %51 = arith.truncf %50 : vector<8x16x32xf32> to vector<8x16x32xbf16>
    %52 = vector.extract_strided_slice %15 {offsets = [0, 0, 32], sizes = [8, 16, 32], strides = [1, 1, 1]} : vector<8x16x128xf32> to vector<8x16x32xf32>
    %53 = arith.truncf %52 : vector<8x16x32xf32> to vector<8x16x32xbf16>
    %54 = vector.extract_strided_slice %17 {offsets = [0, 0, 32], sizes = [8, 16, 32], strides = [1, 1, 1]} : vector<8x16x128xf32> to vector<8x16x32xf32>
    %55 = arith.truncf %54 : vector<8x16x32xf32> to vector<8x16x32xbf16>
    "tpu.trace_start"() <{level = 10 : i32, message = "bqd,bkd->bqk"}> : () -> ()
    %cst_18 = arith.constant dense<0.000000e+00> : vector<8x16x16xf32>
    %56 = tpu.matmul %51, %53, %cst_18 {dimension_numbers = #tpu.dot_dimension_numbers<[2], [2], [1], [1], [0, 0, 0, 1, 1, 1], [0], [0]>} : vector<8x16x32xbf16>, vector<8x16x32xbf16>, vector<8x16x16xf32> -> vector<8x16x16xf32>
    "tpu.trace_stop"() : () -> ()
    %cst_19 = arith.constant 0.176776692 : f32
    %57 = vector.broadcast %cst_19 : f32 to vector<8x16x16xf32>
    %58 = arith.mulf %56, %57 : vector<8x16x16xf32>
    %59 = vector.broadcast %24 : vector<1x16x16xf32> to vector<8x16x16xf32>
    %60 = arith.addf %58, %59 : vector<8x16x16xf32>
    %cst_20 = arith.constant dense<0xFF800000> : vector<8x16xf32>
    %61 = vector.multi_reduction <maximumf>, %60, %cst_20 [2] : vector<8x16x16xf32> to vector<8x16xf32>
    %62 = vector.shape_cast %61 : vector<8x16xf32> to vector<8x16x1xf32>
    %63 = vector.broadcast %62 : vector<8x16x1xf32> to vector<8x16x16xf32>
    %64 = arith.subf %60, %63 : vector<8x16x16xf32>
    %65 = math.exp %64 : vector<8x16x16xf32>
    %cst_21 = arith.constant dense<0.000000e+00> : vector<8x16xf32>
    %66 = vector.multi_reduction <add>, %65, %cst_21 [2] : vector<8x16x16xf32> to vector<8x16xf32>
    %67 = vector.shape_cast %66 : vector<8x16xf32> to vector<8x16x1xf32>
    %68 = tpu.reciprocal %67 {approx = true} : vector<8x16x1xf32> -> vector<8x16x1xf32>
    %69 = vector.broadcast %68 : vector<8x16x1xf32> to vector<8x16x16xf32>
    %70 = arith.mulf %65, %69 : vector<8x16x16xf32>
    %71 = arith.truncf %70 : vector<8x16x16xf32> to vector<8x16x16xbf16>
    "tpu.trace_start"() <{level = 10 : i32, message = "bqk,bkd->bqd"}> : () -> ()
    %cst_22 = arith.constant dense<0.000000e+00> : vector<8x16x32xf32>
    %72 = tpu.matmul %71, %55, %cst_22 {dimension_numbers = #tpu.dot_dimension_numbers<[2], [1], [1], [2], [0, 0, 0, 1, 1, 2], [0], [0]>} : vector<8x16x16xbf16>, vector<8x16x32xbf16>, vector<8x16x32xf32> -> vector<8x16x32xf32>
    "tpu.trace_stop"() : () -> ()
    %73 = vector.shape_cast %72 : vector<8x16x32xf32> to vector<128x32xf32>
    %c0_23 = arith.constant 0 : index
    %c32 = arith.constant 32 : index
    %74 = vector.load %arg16[%c0_23, %c32] : memref<128x128xf32, #tpu.memory_space<vmem>>, vector<128x32xf32>
    tpu.vector_store %arg16[%c0_23, %c32], %73 {strides = array<i32>} : memref<128x128xf32, #tpu.memory_space<vmem>>, vector<128x32xf32>,
    %75 = vector.extract_strided_slice %13 {offsets = [0, 0, 64], sizes = [8, 16, 32], strides = [1, 1, 1]} : vector<8x16x128xf32> to vector<8x16x32xf32>
    %76 = arith.truncf %75 : vector<8x16x32xf32> to vector<8x16x32xbf16>
    %77 = vector.extract_strided_slice %15 {offsets = [0, 0, 64], sizes = [8, 16, 32], strides = [1, 1, 1]} : vector<8x16x128xf32> to vector<8x16x32xf32>
    %78 = arith.truncf %77 : vector<8x16x32xf32> to vector<8x16x32xbf16>
    %79 = vector.extract_strided_slice %17 {offsets = [0, 0, 64], sizes = [8, 16, 32], strides = [1, 1, 1]} : vector<8x16x128xf32> to vector<8x16x32xf32>
    %80 = arith.truncf %79 : vector<8x16x32xf32> to vector<8x16x32xbf16>
    "tpu.trace_start"() <{level = 10 : i32, message = "bqd,bkd->bqk"}> : () -> ()
    %cst_24 = arith.constant dense<0.000000e+00> : vector<8x16x16xf32>
    %81 = tpu.matmul %76, %78, %cst_24 {dimension_numbers = #tpu.dot_dimension_numbers<[2], [2], [1], [1], [0, 0, 0, 1, 1, 1], [0], [0]>} : vector<8x16x32xbf16>, vector<8x16x32xbf16>, vector<8x16x16xf32> -> vector<8x16x16xf32>
    "tpu.trace_stop"() : () -> ()
    %cst_25 = arith.constant 0.176776692 : f32
    %82 = vector.broadcast %cst_25 : f32 to vector<8x16x16xf32>
    %83 = arith.mulf %81, %82 : vector<8x16x16xf32>
    %84 = vector.broadcast %24 : vector<1x16x16xf32> to vector<8x16x16xf32>
    %85 = arith.addf %83, %84 : vector<8x16x16xf32>
    %cst_26 = arith.constant dense<0xFF800000> : vector<8x16xf32>
    %86 = vector.multi_reduction <maximumf>, %85, %cst_26 [2] : vector<8x16x16xf32> to vector<8x16xf32>
    %87 = vector.shape_cast %86 : vector<8x16xf32> to vector<8x16x1xf32>
    %88 = vector.broadcast %87 : vector<8x16x1xf32> to vector<8x16x16xf32>
    %89 = arith.subf %85, %88 : vector<8x16x16xf32>
    %90 = math.exp %89 : vector<8x16x16xf32>
    %cst_27 = arith.constant dense<0.000000e+00> : vector<8x16xf32>
    %91 = vector.multi_reduction <add>, %90, %cst_27 [2] : vector<8x16x16xf32> to vector<8x16xf32>
    %92 = vector.shape_cast %91 : vector<8x16xf32> to vector<8x16x1xf32>
    %93 = tpu.reciprocal %92 {approx = true} : vector<8x16x1xf32> -> vector<8x16x1xf32>
    %94 = vector.broadcast %93 : vector<8x16x1xf32> to vector<8x16x16xf32>
    %95 = arith.mulf %90, %94 : vector<8x16x16xf32>
    %96 = arith.truncf %95 : vector<8x16x16xf32> to vector<8x16x16xbf16>
    "tpu.trace_start"() <{level = 10 : i32, message = "bqk,bkd->bqd"}> : () -> ()
    %cst_28 = arith.constant dense<0.000000e+00> : vector<8x16x32xf32>
    %97 = tpu.matmul %96, %80, %cst_28 {dimension_numbers = #tpu.dot_dimension_numbers<[2], [1], [1], [2], [0, 0, 0, 1, 1, 2], [0], [0]>} : vector<8x16x16xbf16>, vector<8x16x32xbf16>, vector<8x16x32xf32> -> vector<8x16x32xf32>
    "tpu.trace_stop"() : () -> ()
    %98 = vector.shape_cast %97 : vector<8x16x32xf32> to vector<128x32xf32>
    %c0_29 = arith.constant 0 : index
    %c64 = arith.constant 64 : index
    %99 = vector.load %arg16[%c0_29, %c64] : memref<128x128xf32, #tpu.memory_space<vmem>>, vector<128x32xf32>
    tpu.vector_store %arg16[%c0_29, %c64], %98 {strides = array<i32>} : memref<128x128xf32, #tpu.memory_space<vmem>>, vector<128x32xf32>,
    %100 = vector.extract_strided_slice %13 {offsets = [0, 0, 96], sizes = [8, 16, 32], strides = [1, 1, 1]} : vector<8x16x128xf32> to vector<8x16x32xf32>
    %101 = arith.truncf %100 : vector<8x16x32xf32> to vector<8x16x32xbf16>
    %102 = vector.extract_strided_slice %15 {offsets = [0, 0, 96], sizes = [8, 16, 32], strides = [1, 1, 1]} : vector<8x16x128xf32> to vector<8x16x32xf32>
    %103 = arith.truncf %102 : vector<8x16x32xf32> to vector<8x16x32xbf16>
    %104 = vector.extract_strided_slice %17 {offsets = [0, 0, 96], sizes = [8, 16, 32], strides = [1, 1, 1]} : vector<8x16x128xf32> to vector<8x16x32xf32>
    %105 = arith.truncf %104 : vector<8x16x32xf32> to vector<8x16x32xbf16>
    "tpu.trace_start"() <{level = 10 : i32, message = "bqd,bkd->bqk"}> : () -> ()
    %cst_30 = arith.constant dense<0.000000e+00> : vector<8x16x16xf32>
    %106 = tpu.matmul %101, %103, %cst_30 {dimension_numbers = #tpu.dot_dimension_numbers<[2], [2], [1], [1], [0, 0, 0, 1, 1, 1], [0], [0]>} : vector<8x16x32xbf16>, vector<8x16x32xbf16>, vector<8x16x16xf32> -> vector<8x16x16xf32>
    "tpu.trace_stop"() : () -> ()
    %cst_31 = arith.constant 0.176776692 : f32
    %107 = vector.broadcast %cst_31 : f32 to vector<8x16x16xf32>
    %108 = arith.mulf %106, %107 : vector<8x16x16xf32>
    %109 = vector.broadcast %24 : vector<1x16x16xf32> to vector<8x16x16xf32>
    %110 = arith.addf %108, %109 : vector<8x16x16xf32>
    %cst_32 = arith.constant dense<0xFF800000> : vector<8x16xf32>
    %111 = vector.multi_reduction <maximumf>, %110, %cst_32 [2] : vector<8x16x16xf32> to vector<8x16xf32>
    %112 = vector.shape_cast %111 : vector<8x16xf32> to vector<8x16x1xf32>
    %113 = vector.broadcast %112 : vector<8x16x1xf32> to vector<8x16x16xf32>
    %114 = arith.subf %110, %113 : vector<8x16x16xf32>
    %115 = math.exp %114 : vector<8x16x16xf32>
    %cst_33 = arith.constant dense<0.000000e+00> : vector<8x16xf32>
    %116 = vector.multi_reduction <add>, %115, %cst_33 [2] : vector<8x16x16xf32> to vector<8x16xf32>
    %117 = vector.shape_cast %116 : vector<8x16xf32> to vector<8x16x1xf32>
    %118 = tpu.reciprocal %117 {approx = true} : vector<8x16x1xf32> -> vector<8x16x1xf32>
    %119 = vector.broadcast %118 : vector<8x16x1xf32> to vector<8x16x16xf32>
    %120 = arith.mulf %115, %119 : vector<8x16x16xf32>
    %121 = arith.truncf %120 : vector<8x16x16xf32> to vector<8x16x16xbf16>
    "tpu.trace_start"() <{level = 10 : i32, message = "bqk,bkd->bqd"}> : () -> ()
    %cst_34 = arith.constant dense<0.000000e+00> : vector<8x16x32xf32>
    %122 = tpu.matmul %121, %105, %cst_34 {dimension_numbers = #tpu.dot_dimension_numbers<[2], [1], [1], [2], [0, 0, 0, 1, 1, 2], [0], [0]>} : vector<8x16x16xbf16>, vector<8x16x32xbf16>, vector<8x16x32xf32> -> vector<8x16x32xf32>
    "tpu.trace_stop"() : () -> ()
    %123 = vector.shape_cast %122 : vector<8x16x32xf32> to vector<128x32xf32>
    %c0_35 = arith.constant 0 : index
    %c96 = arith.constant 96 : index
    %124 = vector.load %arg16[%c0_35, %c96] : memref<128x128xf32, #tpu.memory_space<vmem>>, vector<128x32xf32>
    tpu.vector_store %arg16[%c0_35, %c96], %123 {strides = array<i32>} : memref<128x128xf32, #tpu.memory_space<vmem>>, vector<128x32xf32>,
    %c0_36 = arith.constant 0 : index
    %c0_37 = arith.constant 0 : index
    %125 = vector.load %arg16[%c0_36, %c0_37] : memref<128x128xf32, #tpu.memory_space<vmem>>, vector<128x128xf32>
    %126 = arith.truncf %125 : vector<128x128xf32> to vector<128x128xbf16>
    %c0_38 = arith.constant 0 : index
    %c0_39 = arith.constant 0 : index
    %127 = vector.load %arg5[%c0_38, %c0_39] : memref<128x128xbf16, #tpu.memory_space<vmem>>, vector<128x128xbf16>
    %cst_40 = arith.constant dense<0.000000e+00> : vector<128x128xf32>
    %128 = tpu.matmul %126, %127, %cst_40 {dimension_numbers = #tpu.dot_dimension_numbers<[1], [0], [0], [1], [0, 0, 1, 1], [], []>} : vector<128x128xbf16>, vector<128x128xbf16>, vector<128x128xf32> -> vector<128x128xf32>
    %c0_41 = arith.constant 0 : index
    %c0_42 = arith.constant 0 : index
    %129 = vector.load %arg6[%c0_41, %c0_42] : memref<1x128xf32, #tpu.memory_space<vmem>>, vector<1x128xf32>
    %130 = vector.broadcast %129 : vector<1x128xf32> to vector<128x128xf32>
    %131 = arith.addf %128, %130 : vector<128x128xf32>
    %132 = arith.addf %5, %131 : vector<128x128xf32>
    %cst_43 = arith.constant dense<0.000000e+00> : vector<128xf32>
    %133 = vector.multi_reduction <add>, %132, %cst_43 [1] : vector<128x128xf32> to vector<128xf32>
    %134 = vector.shape_cast %133 : vector<128xf32> to vector<128x1xf32>
    %cst_44 = arith.constant 1.280000e+02 : f32
    %135 = vector.broadcast %cst_44 : f32 to vector<128x1xf32>
    %136 = arith.divf %134, %135 : vector<128x1xf32>
    %137 = vector.broadcast %136 : vector<128x1xf32> to vector<128x128xf32>
    %138 = arith.subf %132, %137 : vector<128x128xf32>
    %139 = arith.mulf %138, %138 : vector<128x128xf32>
    %cst_45 = arith.constant dense<0.000000e+00> : vector<128xf32>
    %140 = vector.multi_reduction <add>, %139, %cst_45 [1] : vector<128x128xf32> to vector<128xf32>
    %141 = vector.shape_cast %140 : vector<128xf32> to vector<128x1xf32>
    %cst_46 = arith.constant 1.280000e+02 : f32
    %142 = vector.broadcast %cst_46 : f32 to vector<128x1xf32>
    %143 = arith.divf %141, %142 : vector<128x1xf32>
    %144 = vector.broadcast %136 : vector<128x1xf32> to vector<128x128xf32>
    %145 = arith.subf %132, %144 : vector<128x128xf32>
    %cst_47 = arith.constant 9.99999974E-6 : f32
    %146 = vector.broadcast %cst_47 : f32 to vector<128x1xf32>
    %147 = arith.addf %143, %146 : vector<128x1xf32>
    %148 = math.rsqrt %147 : vector<128x1xf32>
    %149 = vector.broadcast %148 : vector<128x1xf32> to vector<128x128xf32>
    %150 = arith.mulf %145, %149 : vector<128x128xf32>
    %c0_48 = arith.constant 0 : index
    %c0_49 = arith.constant 0 : index
    %151 = vector.load %arg7[%c0_48, %c0_49] : memref<1x128xf32, #tpu.memory_space<vmem>>, vector<1x128xf32>
    %152 = vector.broadcast %151 : vector<1x128xf32> to vector<128x128xf32>
    %153 = arith.mulf %150, %152 : vector<128x128xf32>
    %c0_50 = arith.constant 0 : index
    %c0_51 = arith.constant 0 : index
    %154 = vector.load %arg8[%c0_50, %c0_51] : memref<1x128xf32, #tpu.memory_space<vmem>>, vector<1x128xf32>
    %155 = vector.broadcast %154 : vector<1x128xf32> to vector<128x128xf32>
    %156 = arith.addf %153, %155 : vector<128x128xf32>
    %157 = arith.truncf %156 : vector<128x128xf32> to vector<128x128xbf16>
    %c0_52 = arith.constant 0 : index
    %c0_53 = arith.constant 0 : index
    %158 = vector.load %arg9[%c0_52, %c0_53] : memref<128x256xbf16, #tpu.memory_space<vmem>>, vector<128x256xbf16>
    %cst_54 = arith.constant dense<0.000000e+00> : vector<128x256xf32>
    %159 = tpu.matmul %157, %158, %cst_54 {dimension_numbers = #tpu.dot_dimension_numbers<[1], [0], [0], [1], [0, 0, 1, 1], [], []>} : vector<128x128xbf16>, vector<128x256xbf16>, vector<128x256xf32> -> vector<128x256xf32>
    %c0_55 = arith.constant 0 : index
    %c0_56 = arith.constant 0 : index
    %160 = vector.load %arg10[%c0_55, %c0_56] : memref<1x256xf32, #tpu.memory_space<vmem>>, vector<1x256xf32>
    %161 = vector.broadcast %160 : vector<1x256xf32> to vector<128x256xf32>
    %162 = arith.addf %159, %161 : vector<128x256xf32>
    %cst_57 = arith.constant 0.000000e+00 : f32
    %163 = vector.broadcast %cst_57 : f32 to vector<128x256xf32>
    %164 = arith.maximumf %162, %163 : vector<128x256xf32>
    %165 = arith.truncf %164 : vector<128x256xf32> to vector<128x256xbf16>
    %c0_58 = arith.constant 0 : index
    %c0_59 = arith.constant 0 : index
    %166 = vector.load %arg11[%c0_58, %c0_59] : memref<256x128xbf16, #tpu.memory_space<vmem>>, vector<256x128xbf16>
    %cst_60 = arith.constant dense<0.000000e+00> : vector<128x128xf32>
    %167 = tpu.matmul %165, %166, %cst_60 {dimension_numbers = #tpu.dot_dimension_numbers<[1], [0], [0], [1], [0, 0, 1, 1], [], []>} : vector<128x256xbf16>, vector<256x128xbf16>, vector<128x128xf32> -> vector<128x128xf32>
    %c0_61 = arith.constant 0 : index
    %c0_62 = arith.constant 0 : index
    %168 = vector.load %arg12[%c0_61, %c0_62] : memref<1x128xf32, #tpu.memory_space<vmem>>, vector<1x128xf32>
    %169 = vector.broadcast %168 : vector<1x128xf32> to vector<128x128xf32>
    %170 = arith.addf %167, %169 : vector<128x128xf32>
    %171 = arith.addf %156, %170 : vector<128x128xf32>
    %cst_63 = arith.constant dense<0.000000e+00> : vector<128xf32>
    %172 = vector.multi_reduction <add>, %171, %cst_63 [1] : vector<128x128xf32> to vector<128xf32>
    %173 = vector.shape_cast %172 : vector<128xf32> to vector<128x1xf32>
    %cst_64 = arith.constant 1.280000e+02 : f32
    %174 = vector.broadcast %cst_64 : f32 to vector<128x1xf32>
    %175 = arith.divf %173, %174 : vector<128x1xf32>
    %176 = vector.broadcast %175 : vector<128x1xf32> to vector<128x128xf32>
    %177 = arith.subf %171, %176 : vector<128x128xf32>
    %178 = arith.mulf %177, %177 : vector<128x128xf32>
    %cst_65 = arith.constant dense<0.000000e+00> : vector<128xf32>
    %179 = vector.multi_reduction <add>, %178, %cst_65 [1] : vector<128x128xf32> to vector<128xf32>
    %180 = vector.shape_cast %179 : vector<128xf32> to vector<128x1xf32>
    %cst_66 = arith.constant 1.280000e+02 : f32
    %181 = vector.broadcast %cst_66 : f32 to vector<128x1xf32>
    %182 = arith.divf %180, %181 : vector<128x1xf32>
    %183 = vector.broadcast %175 : vector<128x1xf32> to vector<128x128xf32>
    %184 = arith.subf %171, %183 : vector<128x128xf32>
    %cst_67 = arith.constant 9.99999974E-6 : f32
    %185 = vector.broadcast %cst_67 : f32 to vector<128x1xf32>
    %186 = arith.addf %182, %185 : vector<128x1xf32>
    %187 = math.rsqrt %186 : vector<128x1xf32>
    %188 = vector.broadcast %187 : vector<128x1xf32> to vector<128x128xf32>
    %189 = arith.mulf %184, %188 : vector<128x128xf32>
    %c0_68 = arith.constant 0 : index
    %c0_69 = arith.constant 0 : index
    %190 = vector.load %arg13[%c0_68, %c0_69] : memref<1x128xf32, #tpu.memory_space<vmem>>, vector<1x128xf32>
    %191 = vector.broadcast %190 : vector<1x128xf32> to vector<128x128xf32>
    %192 = arith.mulf %189, %191 : vector<128x128xf32>
    %c0_70 = arith.constant 0 : index
    %c0_71 = arith.constant 0 : index
    %193 = vector.load %arg14[%c0_70, %c0_71] : memref<1x128xf32, #tpu.memory_space<vmem>>, vector<1x128xf32>
    %194 = vector.broadcast %193 : vector<1x128xf32> to vector<128x128xf32>
    %195 = arith.addf %192, %194 : vector<128x128xf32>
    %196 = vector.shape_cast %195 : vector<128x128xf32> to vector<8x16x128xf32>
    %c0_72 = arith.constant 0 : index
    %c0_73 = arith.constant 0 : index
    %c0_74 = arith.constant 0 : index
    %197 = vector.load %arg15[%c0_72, %c0_73, %c0_74] : memref<8x16x128xf32, #tpu.memory_space<vmem>>, vector<8x16x128xf32>
    tpu.vector_store %arg15[%c0_72, %c0_73, %c0_74], %196 {strides = array<i32>} : memref<8x16x128xf32, #tpu.memory_space<vmem>>, vector<8x16x128xf32>,
    return
  }
  func.func @transform_0(%arg0: i32) -> (i32, i32, i32) {
    %c0_i32 = arith.constant 0 : i32
    %c0_i32_0 = arith.constant 0 : i32
    %c0_i32_1 = arith.constant 0 : i32
    return %arg0, %c0_i32, %c0_i32_0 : i32, i32, i32
  }
  func.func @transform_1(%arg0: i32) -> (i32, i32, i32) {
    %c0_i32 = arith.constant 0 : i32
    %c0_i32_0 = arith.constant 0 : i32
    %c0_i32_1 = arith.constant 0 : i32
    return %arg0, %c0_i32, %c0_i32_0 : i32, i32, i32
  }
  func.func @transform_2(%arg0: i32) -> (i32, i32) {
    %c0_i32 = arith.constant 0 : i32
    %c0_i32_0 = arith.constant 0 : i32
    %c0_i32_1 = arith.constant 0 : i32
    return %c0_i32, %c0_i32_0 : i32, i32
  }
  func.func @transform_3(%arg0: i32) -> (i32, i32) {
    %c0_i32 = arith.constant 0 : i32
    %c0_i32_0 = arith.constant 0 : i32
    %c0_i32_1 = arith.constant 0 : i32
    return %c0_i32, %c0_i32_0 : i32, i32
  }
  func.func @transform_4(%arg0: i32) -> (i32, i32) {
    %c0_i32 = arith.constant 0 : i32
    %c0_i32_0 = arith.constant 0 : i32
    %c0_i32_1 = arith.constant 0 : i32
    return %c0_i32, %c0_i32_0 : i32, i32
  }
  func.func @transform_5(%arg0: i32) -> (i32, i32) {
    %c0_i32 = arith.constant 0 : i32
    %c0_i32_0 = arith.constant 0 : i32
    %c0_i32_1 = arith.constant 0 : i32
    return %c0_i32, %c0_i32_0 : i32, i32
  }
  func.func @transform_6(%arg0: i32) -> (i32, i32) {
    %c0_i32 = arith.constant 0 : i32
    %c0_i32_0 = arith.constant 0 : i32
    %c0_i32_1 = arith.constant 0 : i32
    return %c0_i32, %c0_i32_0 : i32, i32
  }
  func.func @transform_7(%arg0: i32) -> (i32, i32) {
    %c0_i32 = arith.constant 0 : i32
    %c0_i32_0 = arith.constant 0 : i32
    %c0_i32_1 = arith.constant 0 : i32
    return %c0_i32, %c0_i32_0 : i32, i32
  }
  func.func @transform_8(%arg0: i32) -> (i32, i32) {
    %c0_i32 = arith.constant 0 : i32
    %c0_i32_0 = arith.constant 0 : i32
    %c0_i32_1 = arith.constant 0 : i32
    return %c0_i32, %c0_i32_0 : i32, i32
  }
  func.func @transform_9(%arg0: i32) -> (i32, i32) {
    %c0_i32 = arith.constant 0 : i32
    %c0_i32_0 = arith.constant 0 : i32
    %c0_i32_1 = arith.constant 0 : i32
    return %c0_i32, %c0_i32_0 : i32, i32
  }
  func.func @transform_10(%arg0: i32) -> (i32, i32) {
    %c0_i32 = arith.constant 0 : i32
    %c0_i32_0 = arith.constant 0 : i32
    %c0_i32_1 = arith.constant 0 : i32
    return %c0_i32, %c0_i32_0 : i32, i32
  }
  func.func @transform_11(%arg0: i32) -> (i32, i32) {
    %c0_i32 = arith.constant 0 : i32
    %c0_i32_0 = arith.constant 0 : i32
    %c0_i32_1 = arith.constant 0 : i32
    return %c0_i32, %c0_i32_0 : i32, i32
  }
  func.func @transform_12(%arg0: i32) -> (i32, i32) {
    %c0_i32 = arith.constant 0 : i32
    %c0_i32_0 = arith.constant 0 : i32
    %c0_i32_1 = arith.constant 0 : i32
    return %c0_i32, %c0_i32_0 : i32, i32
  }
  func.func @transform_13(%arg0: i32) -> (i32, i32) {
    %c0_i32 = arith.constant 0 : i32
    %c0_i32_0 = arith.constant 0 : i32
    %c0_i32_1 = arith.constant 0 : i32
    return %c0_i32, %c0_i32_0 : i32, i32
  }
  func.func @transform_14(%arg0: i32) -> (i32, i32, i32) {
    %c0_i32 = arith.constant 0 : i32
    %c0_i32_0 = arith.constant 0 : i32
    %c0_i32_1 = arith.constant 0 : i32
    return %arg0, %c0_i32, %c0_i32_0 : i32, i32, i32
  }
}

</mosaic_0001>

<bundles_post_ra>
// kernel: transformer_forecaster_forward.1
= control target key start
LH: loop header
LB: loop body
LE: loop exit
PB: predicated region body
PF: predicated region fallthrough
CT: control target
= control target key end

     0   :  { %s8063_s29 = smov 0   ;;  %s10630_s0 = inlined_call_operand.vmem [shape: f32[16,16,32], index: 0, kind: input, shape index: {}]   ;;  %s10631_s1 = inlined_call_operand.vmem [shape: f32[16,1,128], index: 1, kind: input, shape index: {}]   ;;  %s10632_s2 = inlined_call_operand.vmem [shape: bf16[128,384], index: 2, kind: input, shape index: {}]   ;;  %s10633_s3 = inlined_call_operand.vmem [shape: f32[1,384], index: 3, kind: input, shape index: {}]   ;;  %s10634_s4 = inlined_call_operand.vmem [shape: bf16[128,128], index: 4, kind: input, shape index: {}]   ;;  %s10635_s5 = inlined_call_operand.vmem [shape: f32[1,128], index: 5, kind: input, shape index: {}]   ;;  %s10636_s6 = inlined_call_operand.vmem [shape: f32[1,128], index: 6, kind: input, shape index: {}]   ;;  %s10637_s7 = inlined_call_operand.vmem [shape: f32[1,128], index: 7, kind: input, shape index: {}]   ;;  %s10638_s8 = inlined_call_operand.vmem [shape: bf16[128,256], index: 8, kind: input, shape index: {}]   ;;  %s10639_s9 = inlined_call_operand.vmem [shape: f32[1,256], index: 9, kind: input, shape index: {}]   ;;  %s10640_s10 = inlined_call_operand.vmem [shape: bf16[256,128], index: 10, kind: input, shape index: {}]   ;;  %s10641_s11 = inlined_call_operand.vmem [shape: f32[1,128], index: 11, kind: input, shape index: {}]   ;;  %s10642_s12 = inlined_call_operand.vmem [shape: f32[1,128], index: 12, kind: input, shape index: {}]   ;;  %s10643_s13 = inlined_call_operand.vmem [shape: f32[1,128], index: 13, kind: input, shape index: {}]   ;;  %s10644_s14 = inlined_call_operand.vmem [shape: f32[16,16,128], index: 14, kind: output, shape index: {}]  }
   0x1 LB: > { %s6712_s30 = sadd.s32 4294967295, %s7979_s29   ;;  %p6716_p0 = scmp.ge.s32.totalorder %s7979_s29, 1  ;;  %s7979_s29 = sphi %s8063_s29, %s24_s29  }
   0x2   : > { %p424_p1 = scmp.lt.s32.totalorder %s7979_s29, 3 }
   0x4   : > { %p425_p2 = pnand %p6716_p0, %p424_p1 }
   0x6   : > { %428 = sbr.rel (%p425_p2) target bundleno = 4404 (0x1134), region = 76 }
   0xd   : > { %s6717_s15 = sshll.u32 %s6712_s30, 3  ;;  %v7573_v0 = vld [vmem:[%s10632_s2 + $0x4] ss:$12 sps:$4 sm:$0xff]   ;;  %v7575_v1 = vld [vmem:[%s10632_s2] ss:$12 sps:$4 sm:$0xff]   ;;  %s7981_s20 = smov 64  }
   0xe   : > { %p477_p3 = scmp.lt.s32.totalorder %s6717_s15, 15  ;;  %980 = vmatprep.subr.bf16.mxu0 %v7573_v0  ;;  %v7576_v2 = vld [vmem:[%s10632_s2 + $0x1c] ss:$12 sps:$4 sm:$0xff]   ;;  %v7578_v3 = vld [vmem:[%s10632_s2 + $0x18] ss:$12 sps:$4 sm:$0xff]   ;;  %s7982_s21 = smov 32  }
   0xf   : > { %981 = vmatpush1.bf16.msra.mxu0 %v7575_v1  ;;  %v7579_v4 = vld [vmem:[%s10632_s2 + $0x34] ss:$12 sps:$4 sm:$0xff]   ;;  %v7581_v7 = vld [vmem:[%s10632_s2 + $0x30] ss:$12 sps:$4 sm:$0xff]   ;;  %v7582_v9 = vld [vmem:[%s10632_s2 + $0x4c] ss:$12 sps:$4 sm:$0xff]  }
  0x10   : > { %s10730_s15 = smov (!%p477_p3, %s6717_s15), 15  ;;  %982 = vmatprep.subr.bf16.mxu0 %v7576_v2  ;;  %v7584_v5 = vld [vmem:[%s10632_s2 + $0x8] ss:$12 sps:$4 sm:$0xff]   ;;  %v10647_v10 = vmov 0   ;;  %v7586_v12 = vld [vmem:[%s10632_s2 + $0x64] ss:$12 sps:$4 sm:$0xff]  }
  0x11   : > { %s6868_s26 = sshll.u32 %s10730_s15, 4  ;;  %7094 = vmatprep.subr.bf16.mxu1 %v7584_v5  ;;  %1012 = vmatprep.mubr.bf16.mxu0 %v10647_v10  ;;  %v7585_v11 = vld [vmem:[%s10632_s2 + $0x48] ss:$12 sps:$4 sm:$0xff]   ;;  %v7588_v13 = vld [vmem:[%s10632_s2 + $0x20] ss:$12 sps:$4 sm:$0xff]   ;;  %s7984_s22 = smov 96  }
  0x12   : > { %s8094_s30 = scalar_lea.vmem %s10630_s0, %s6868_s26  ;;  %7095 = vmatpush3.bf16.msra.mxu1 %v7584_v5  ;;  %v7589_v16 = vld [vmem:[%s10632_s2 + $0x60] ss:$12 sps:$4 sm:$0xff]   ;;  %v7592_v17 = vld [vmem:[%s10632_s2 + $0x38] ss:$12 sps:$4 sm:$0xff]   ;;  %v7590_v18 = vld [vmem:[%s10632_s2 + $0x7c] ss:$12 sps:$4 sm:$0xff]   ;;  %s8302_s18 = scalar_lea.vmem %s10631_s1, %s10730_s15 }
  0x13   : > { %v8100_v6 = vld [vmem:[%s8094_s30] sm:$0xff]  ;;  %983 = vmatpush1.bf16.msra.mxu0 %v7578_v3  ;;  %v8110_v8 = vld [vmem:[%s8094_s30 + $0x8] sm:$0xff]  ;;  %v8130_v14 = vld [vmem:[%s8094_s30 + $0x18] sm:$0xff]  ;;  %7096 = vmatprep.subr.bf16.mxu1 %v7588_v13  ;;  %vm672_vm0 = vcmask 261120   ;;  %vm689_vm1 = vcmask 523264   ;;  %vm706_vm2 = vcmask 785408  }
  0x14   : > { %576 = vrot.lane.b32.xlu1 %v8100_v6, %s7981_s20  ;;  %528 = vrot.lane.b32.xlu0 %v8100_v6, %s7982_s21  ;;  %v8133_v15 = vld [vmem:[%s8094_s30 + $0x10] sm:$0xff]  ;;  %v7593_v19 = vld [vmem:[%s10632_s2 + $0x78] ss:$12 sps:$4 sm:$0xff]   ;;  %vm7986_vm3 = vmmov 0   ;;  %vm1631_vm6 = vcmask 130048   ;;  %vm3272_vm7 = vcmask 523520  }
  0x15   : > { %984 = vmatprep.subr.bf16.mxu0 %v7579_v4  ;;  %v7596_v20 = vld [vmem:[%s10632_s2 + $0x50] ss:$12 sps:$4 sm:$0xff]   ;;  %v7594_v21 = vld [vmem:[%s10632_s2 + $0x94] ss:$12 sps:$4 sm:$0xff]   ;;  %v7598_v24 = vld [vmem:[%s10632_s2 + $0xac] ss:$12 sps:$4 sm:$0xff]  }
  0x16   : > { %7097 = vmatpush3.bf16.msra.mxu1 %v7588_v13  ;;  %v7597_v22 = vld [vmem:[%s10632_s2 + $0x90] ss:$12 sps:$4 sm:$0xff]   ;;  %v7600_v23 = vld [vmem:[%s10632_s2 + $0x68] ss:$12 sps:$4 sm:$0xff]   ;;  %v7602_v26 = vld [vmem:[%s10632_s2 + $0x80] ss:$12 sps:$4 sm:$0xff]  }
  0x17   : > { %985 = vmatpush1.bf16.msra.mxu0 %v7581_v7  ;;  %7098 = vmatprep.subr.bf16.mxu1 %v7592_v17  ;;  %v7601_v25 = vld [vmem:[%s10632_s2 + $0xa8] ss:$12 sps:$4 sm:$0xff]   ;;  %v8184_v28 = vld [vmem:[%s8094_s30 + $0x20] sm:$0xff]  ;;  %v7604_v30 = vld [vmem:[%s10632_s2 + $0xb0] ss:$12 sps:$4 sm:$0xff]   ;;  %vm4353_vm8 = vcmask 785920  }
  0x18   : > { %578 = vrot.lane.b32.xlu1 %v8110_v8, %s7981_s20  ;;  %530 = vrot.lane.b32.xlu0 %v8110_v8, %s7982_s21  ;;  %v8181_v27 = vld [vmem:[%s8094_s30 + $0x28] sm:$0xff]  ;;  %v7603_v29 = vld [vmem:[%s10632_s2 + $0x98] ss:$12 sps:$4 sm:$0xff]   ;;  %vm5434_vm9 = vcmask 1048320  }
  0x19   : > { %986 = vmatprep.subr.bf16.mxu0 %v7582_v9  ;;  %v8205_v31 = vld [vmem:[%s8094_s30 + $0x38] sm:$0xff]  ;;  %v8208_v32 = vld [vmem:[%s8094_s30 + $0x30] sm:$0xff]  ;;  %v8227_v33 = vld [vmem:[%s8094_s30 + $0x48] sm:$0xff] }
  0x1a   : > { %7099 = vmatpush3.bf16.msra.mxu1 %v7592_v17  ;;  %v8230_v34 = vld [vmem:[%s8094_s30 + $0x40] sm:$0xff]  ;;  %v8245_v35 = vld [vmem:[%s8094_s30 + $0x58] sm:$0xff]  ;;  %v8248_v36 = vld [vmem:[%s8094_s30 + $0x50] sm:$0xff] }
  0x1b   : > { %987 = vmatpush1.bf16.msra.mxu0 %v7585_v11  ;;  %7100 = vmatprep.subr.bf16.mxu1 %v7596_v20  ;;  %v8263_v37 = vld [vmem:[%s8094_s30 + $0x68] sm:$0xff]  ;;  %v8266_v38 = vld [vmem:[%s8094_s30 + $0x60] sm:$0xff]  ;;  %v8281_v39 = vld [vmem:[%s8094_s30 + $0x78] sm:$0xff] }
  0x1c   : > { %626 = vrot.lane.b32.xlu1 %v8110_v8, %s7984_s22  ;;  %624 = vrot.lane.b32.xlu0 %v8100_v6, %s7984_s22  ;;  %v8284_v40 = vld [vmem:[%s8094_s30 + $0x70] sm:$0xff]  ;;  %v6724_v47 = vld [vmem:[%s8302_s18] ss:$0 sm:$0xff] }
  0x1d   : > { %988 = vmatprep.subr.bf16.mxu0 %v7586_v12  ;;  %v6725_v63 = vld [vmem:[%s8302_s18 + $0x1] ss:$0 sm:$0xff] }
  0x1e   : > { %7101 = vmatpush3.bf16.msra.mxu1 %v7596_v20 }
  0x1f   : > { %989 = vmatpush1.bf16.msra.mxu0 %v7589_v16  ;;  %7102 = vmatprep.subr.bf16.mxu1 %v7600_v23  ;;  %v6726_v16 = vld [vmem:[%s8302_s18 + $0x2] ss:$0 sm:$0xff] }
  0x20   : > { %534 = vrot.lane.b32.xlu1 %v8130_v14, %s7982_s21  ;;  %532 = vrot.lane.b32.xlu0 %v8133_v15, %s7982_s21 }
  0x21   : > { %990 = vmatprep.subr.bf16.mxu0 %v7590_v18 }
  0x22   : > { %7103 = vmatpush3.bf16.msra.mxu1 %v7600_v23 }
  0x23   : > { %991 = vmatpush1.bf16.msra.mxu0 %v7593_v19  ;;  %7104 = vmatprep.subr.bf16.mxu1 %v7602_v26 }
  0x24   : > { %582 = vrot.lane.b32.xlu1 %v8130_v14, %s7981_s20  ;;  %580 = vrot.lane.b32.xlu0 %v8133_v15, %s7981_s20 }
  0x25   : > { %992 = vmatprep.subr.bf16.mxu0 %v7594_v21 }
  0x26   : > { %7105 = vmatpush3.bf16.msra.mxu1 %v7602_v26 }
  0x27   : > { %993 = vmatpush1.bf16.msra.mxu0 %v7597_v22  ;;  %7106 = vmatprep.subr.bf16.mxu1 %v7603_v29 }
  0x28   : > { %630 = vrot.lane.b32.xlu1 %v8130_v14, %s7984_s22  ;;  %628 = vrot.lane.b32.xlu0 %v8133_v15, %s7984_s22 }
  0x29   : > { %994 = vmatprep.subr.bf16.mxu0 %v7598_v24 }
  0x2a   : > { %7107 = vmatpush3.bf16.msra.mxu1 %v7603_v29 }
  0x2b   : > { %995 = vmatpush1.bf16.msra.mxu0 %v7601_v25  ;;  %7108 = vmatprep.subr.bf16.mxu1 %v7604_v30 }
  0x2c   : > { %538 = vrot.lane.b32.xlu1 %v8181_v27, %s7982_s21  ;;  %536 = vrot.lane.b32.xlu0 %v8184_v28, %s7982_s21 }
  0x2e   : > { %7109 = vmatpush3.bf16.msra.mxu1 %v7604_v30 }
  0x30   : > { %586 = vrot.lane.b32.xlu1 %v8181_v27, %s7981_s20  ;;  %584 = vrot.lane.b32.xlu0 %v8184_v28, %s7981_s20 }
  0x34   : > { %634 = vrot.lane.b32.xlu1 %v8181_v27, %s7984_s22  ;;  %632 = vrot.lane.b32.xlu0 %v8184_v28, %s7984_s22 }
  0x38   : > { %542 = vrot.lane.b32.xlu1 %v8205_v31, %s7982_s21  ;;  %540 = vrot.lane.b32.xlu0 %v8208_v32, %s7982_s21 }
  0x3c   : > { %590 = vrot.lane.b32.xlu1 %v8205_v31, %s7981_s20  ;;  %588 = vrot.lane.b32.xlu0 %v8208_v32, %s7981_s20 }
  0x40   : > { %638 = vrot.lane.b32.xlu1 %v8205_v31, %s7984_s22  ;;  %636 = vrot.lane.b32.xlu0 %v8208_v32, %s7984_s22 }
  0x44   : > { %546 = vrot.lane.b32.xlu1 %v8227_v33, %s7982_s21  ;;  %544 = vrot.lane.b32.xlu0 %v8230_v34, %s7982_s21 }
  0x48   : > { %594 = vrot.lane.b32.xlu1 %v8227_v33, %s7981_s20  ;;  %592 = vrot.lane.b32.xlu0 %v8230_v34, %s7981_s20 }
  0x4c   : > { %642 = vrot.lane.b32.xlu1 %v8227_v33, %s7984_s22  ;;  %640 = vrot.lane.b32.xlu0 %v8230_v34, %s7984_s22 }
  0x50   : > { %550 = vrot.lane.b32.xlu1 %v8245_v35, %s7982_s21  ;;  %548 = vrot.lane.b32.xlu0 %v8248_v36, %s7982_s21 }
  0x54   : > { %598 = vrot.lane.b32.xlu1 %v8245_v35, %s7981_s20  ;;  %596 = vrot.lane.b32.xlu0 %v8248_v36, %s7981_s20 }
  0x58   : > { %646 = vrot.lane.b32.xlu1 %v8245_v35, %s7984_s22  ;;  %644 = vrot.lane.b32.xlu0 %v8248_v36, %s7984_s22 }
  0x5c   : > { %554 = vrot.lane.b32.xlu1 %v8263_v37, %s7982_s21  ;;  %552 = vrot.lane.b32.xlu0 %v8266_v38, %s7982_s21 }
  0x60   : > { %602 = vrot.lane.b32.xlu1 %v8263_v37, %s7981_s20  ;;  %600 = vrot.lane.b32.xlu0 %v8266_v38, %s7981_s20 }
  0x64   : > { %650 = vrot.lane.b32.xlu1 %v8263_v37, %s7984_s22  ;;  %648 = vrot.lane.b32.xlu0 %v8266_v38, %s7984_s22 }
  0x68   : > { %558 = vrot.lane.b32.xlu1 %v8281_v39, %s7982_s21  ;;  %556 = vrot.lane.b32.xlu0 %v8284_v40, %s7982_s21 }
  0x6c   : > { %606 = vrot.lane.b32.xlu1 %v8281_v39, %s7981_s20  ;;  %604 = vrot.lane.b32.xlu0 %v8284_v40, %s7981_s20 }
  0x70   : > { %654 = vrot.lane.b32.xlu1 %v8281_v39, %s7984_s22  ;;  %652 = vrot.lane.b32.xlu0 %v8284_v40, %s7984_s22 }
  0x86   : > { %v577_v41 = vpop.permute.xlu1 %576  ;;  %v529_v42 = vpop.permute.xlu0 %528 }
  0x87   : > { %v673_v45 = vsel %vm672_vm0, %v8100_v6, %v529_v42  ;;  %v6727_v42 = vld [vmem:[%s8302_s18 + $0x3] ss:$0 sm:$0xff] }
  0x88   : > { %v690_v50 = vsel %vm689_vm1, %v673_v45, %v577_v41 }
  0x8a   : > { %v579_v43 = vpop.permute.xlu1 %578  ;;  %v531_v44 = vpop.permute.xlu0 %530 }
  0x8b   : > { %v674_v46 = vsel %vm672_vm0, %v8110_v8, %v531_v44 }
  0x8c   : > { %v691_v49 = vsel %vm689_vm1, %v674_v46, %v579_v43 }
  0x8e   : > { %v627_v48 = vpop.permute.xlu1 %626  ;;  %v625_v51 = vpop.permute.xlu0 %624 }
  0x8f   : > { %v708_v52 = vsel %vm706_vm2, %v691_v49, %v627_v48  ;;  %v707_v53 = vsel %vm706_vm2, %v690_v50, %v625_v51 }
  0x90   : > { %v8313_v54 = vadd.f32 %v6724_v47, %v708_v52  ;;  %v8315_v55 = vadd.f32 %v6724_v47, %v707_v53 }
  0x92   : > { %10669 = vst [vmem:[#allocation3_spill] sm:$0xff] %v8313_v54  ;;  %10670 = vst [vmem:[#allocation4_spill] sm:$0xff] %v8315_v55  ;;  %v535_v56 = vpop.permute.xlu1 %534  ;;  %v533_v57 = vpop.permute.xlu0 %532  ;;  %v795_v58 = vpack.c.bf16 %v8313_v54, %v8315_v55 }
  0x93   : > { %v676_v61 = vsel %vm672_vm0, %v8130_v14, %v535_v56  ;;  %v675_v62 = vsel %vm672_vm0, %v8133_v15, %v533_v57 }
  0x94   : > { %1013 = vmatmul.mubr.bf16.vlgmr.msra.gmra.mrb[0].mxu0 %v795_v58  ;;  %7110 = vmatprep.mubr.bf16.mxu1 %v795_v58  ;;  %v6728_v58 = vld [vmem:[%s8302_s18 + $0x4] ss:$0 sm:$0xff] }
  0x95   : > { %1022 = vmatprep.mubr.bf16.mxu0 %v10647_v10 }
  0x96   : > { %v583_v59 = vpop.permute.xlu1 %582  ;;  %v581_v60 = vpop.permute.xlu0 %580 }
  0x97   : > { %v693_v0 = vsel %vm689_vm1, %v676_v61, %v583_v59  ;;  %v692_v1 = vsel %vm689_vm1, %v675_v62, %v581_v60 }
  0x9a   : > { %v631_v2 = vpop.permute.xlu1 %630  ;;  %v629_v3 = vpop.permute.xlu0 %628 }
  0x9b   : > { %v710_v4 = vsel %vm706_vm2, %v693_v0, %v631_v2  ;;  %v709_v5 = vsel %vm706_vm2, %v692_v1, %v629_v3 }
  0x9c   : > { %v8329_v6 = vadd.f32 %v6725_v63, %v710_v4  ;;  %v8331_v7 = vadd.f32 %v6725_v63, %v709_v5 }
  0x9e   : > { %10671 = vst [vmem:[#allocation5_spill] sm:$0xff] %v8329_v6  ;;  %10672 = vst [vmem:[#allocation6_spill] sm:$0xff] %v8331_v7  ;;  %v539_v8 = vpop.permute.xlu1 %538  ;;  %v537_v9 = vpop.permute.xlu0 %536  ;;  %v796_v11 = vpack.c.bf16 %v8329_v6, %v8331_v7 }
  0x9f   : > { %v678_v14 = vsel %vm672_vm0, %v8181_v27, %v539_v8  ;;  %v677_v15 = vsel %vm672_vm0, %v8184_v28, %v537_v9 }
  0xa0   : > { %1023 = vmatmul.mubr.bf16.gmra.mrb[4].mxu0 %v796_v11  ;;  %7111 = vmatmul.mubr.bf16.vlgmr.msra.gmra.mrb[0].mxu1 %v796_v11  ;;  %v6729_v11 = vld [vmem:[%s8302_s18 + $0x5] ss:$0 sm:$0xff] }
  0xa1   : > { %1032 = vmatprep.mubr.bf16.mxu0 %v10647_v10 }
  0xa2   : > { %v587_v12 = vpop.permute.xlu1 %586  ;;  %v585_v13 = vpop.permute.xlu0 %584 }
  0xa3   : > { %v695_v17 = vsel %vm689_vm1, %v678_v14, %v587_v12  ;;  %v694_v18 = vsel %vm689_vm1, %v677_v15, %v585_v13 }
  0xa6   : > { %v635_v19 = vpop.permute.xlu1 %634  ;;  %v633_v20 = vpop.permute.xlu0 %632 }
  0xa7   : > { %v712_v21 = vsel %vm706_vm2, %v695_v17, %v635_v19  ;;  %v711_v22 = vsel %vm706_vm2, %v694_v18, %v633_v20 }
  0xa8   : > { %v8345_v23 = vadd.f32 %v6726_v16, %v712_v21  ;;  %v8347_v24 = vadd.f32 %v6726_v16, %v711_v22 }
  0xaa   : > { %10673 = vst [vmem:[#allocation7_spill] sm:$0xff] %v8345_v23  ;;  %10674 = vst [vmem:[#allocation8_spill] sm:$0xff] %v8347_v24  ;;  %v543_v25 = vpop.permute.xlu1 %542  ;;  %v541_v26 = vpop.permute.xlu0 %540  ;;  %v797_v27 = vpack.c.bf16 %v8345_v23, %v8347_v24 }
  0xab   : > { %v680_v30 = vsel %vm672_vm0, %v8205_v31, %v543_v25  ;;  %v679_v41 = vsel %vm672_vm0, %v8208_v32, %v541_v26 }
  0xac   : > { %1033 = vmatmul.mubr.bf16.gmra.mrb[8].mxu0 %v797_v27  ;;  %7114 = vmatprep.mubr.bf16.mxu1 %v797_v27  ;;  %v6730_v27 = vld [vmem:[%s8302_s18 + $0x6] ss:$0 sm:$0xff] }
  0xad   : > { %1042 = vmatprep.mubr.bf16.mxu0 %v10647_v10 }
  0xae   : > { %v591_v28 = vpop.permute.xlu1 %590  ;;  %v589_v29 = vpop.permute.xlu0 %588 }
  0xaf   : > { %v697_v43 = vsel %vm689_vm1, %v680_v30, %v591_v28  ;;  %v696_v44 = vsel %vm689_vm1, %v679_v41, %v589_v29 }
  0xb2   : > { %v639_v45 = vpop.permute.xlu1 %638  ;;  %v637_v46 = vpop.permute.xlu0 %636 }
  0xb3   : > { %v714_v47 = vsel %vm706_vm2, %v697_v43, %v639_v45  ;;  %v713_v48 = vsel %vm706_vm2, %v696_v44, %v637_v46 }
  0xb4   : > { %v8361_v49 = vadd.f32 %v6727_v42, %v714_v47  ;;  %v8363_v50 = vadd.f32 %v6727_v42, %v713_v48 }
  0xb6   : > { %10675 = vst [vmem:[#allocation9_spill] sm:$0xff] %v8361_v49  ;;  %10676 = vst [vmem:[#allocation10_spill] sm:$0xff] %v8363_v50  ;;  %v547_v31 = vpop.permute.xlu1 %546  ;;  %v545_v51 = vpop.permute.xlu0 %544  ;;  %v798_v32 = vpack.c.bf16 %v8361_v49, %v8363_v50 }
  0xb7   : > { %v682_v56 = vsel %vm672_vm0, %v8227_v33, %v547_v31  ;;  %v681_v57 = vsel %vm672_vm0, %v8230_v34, %v545_v51 }
  0xb8   : > { %1043 = vmatmul.mubr.bf16.gmra.mrb[12].mxu0 %v798_v32  ;;  %7115 = vmatmul.mubr.bf16.gmra.mrb[4].mxu1 %v798_v32  ;;  %v6731_v32 = vld [vmem:[%s8302_s18 + $0x7] ss:$0 sm:$0xff] }
  0xb9   : > { %1052 = vmatprep.mubr.bf16.mxu0 %v10647_v10 }
  0xba   : > { %v595_v52 = vpop.permute.xlu1 %594  ;;  %v593_v53 = vpop.permute.xlu0 %592 }
  0xbb   : > { %v699_v59 = vsel %vm689_vm1, %v682_v56, %v595_v52  ;;  %v698_v60 = vsel %vm689_vm1, %v681_v57, %v593_v53 }
  0xbe   : > { %v643_v61 = vpop.permute.xlu1 %642  ;;  %v641_v62 = vpop.permute.xlu0 %640 }
  0xbf   : > { %v716_v63 = vsel %vm706_vm2, %v699_v59, %v643_v61  ;;  %v715_v0 = vsel %vm706_vm2, %v698_v60, %v641_v62  ;;  %v837_v62 = vlaneseq }
  0xc0   : > { %v8377_v1 = vadd.f32 %v6728_v58, %v716_v63  ;;  %v8379_v2 = vadd.f32 %v6728_v58, %v715_v0 }
  0xc1   : > { %v8438_v63 = vshrl.u32 %v837_v62, 7 }
  0xc2   : > { %10677 = vst [vmem:[#allocation11_spill] sm:$0xff] %v8377_v1  ;;  %10678 = vst [vmem:[#allocation12_spill] sm:$0xff] %v8379_v2  ;;  %v551_v33 = vpop.permute.xlu1 %550  ;;  %v549_v3 = vpop.permute.xlu0 %548  ;;  %v799_v34 = vpack.c.bf16 %v8377_v1, %v8379_v2 }
  0xc3   : > { %v684_v8 = vsel %vm672_vm0, %v8245_v35, %v551_v33  ;;  %v683_v9 = vsel %vm672_vm0, %v8248_v36, %v549_v3  ;;  %10685 = vst [vmem:[#allocation19_spill] sm:$0xff] %v8438_v63  ;;  %v10646_v0 = vsub.s32 0, %v8438_v63  ;;  %v835_v33 = vld [vmem:[%s10633_s3] sm:$0x7]  ;;  %v10645_v3 = vsub.s32 1, %v8438_v63 }
  0xc4   : > { %1053 = vmatmul.mubr.bf16.gmra.mrb[16].mxu0 %v799_v34  ;;  %7118 = vmatprep.mubr.bf16.mxu1 %v799_v34 }
  0xc5   : > { %1062 = vmatprep.mubr.bf16.mxu0 %v10647_v10  ;;  %v8447_v34 = vrot.slane %v835_v33, %v10646_v0 }
  0xc6   : > { %v599_v4 = vpop.permute.xlu1 %598  ;;  %v597_v5 = vpop.permute.xlu0 %596 }
  0xc7   : > { %v701_v12 = vsel %vm689_vm1, %v684_v8, %v599_v4  ;;  %v700_v13 = vsel %vm689_vm1, %v683_v9, %v597_v5  ;;  %v8451_v5 = vrot.slane %v835_v33, %v10645_v3 }
  0xca   : > { %v647_v14 = vpop.permute.xlu1 %646  ;;  %v645_v15 = vpop.permute.xlu0 %644 }
  0xcb   : > { %v718_v16 = vsel %vm706_vm2, %v701_v12, %v647_v14  ;;  %v717_v17 = vsel %vm706_vm2, %v700_v13, %v645_v15 }
  0xcc   : > { %v8393_v18 = vadd.f32 %v6729_v11, %v718_v16  ;;  %v8395_v19 = vadd.f32 %v6729_v11, %v717_v17 }
  0xce   : > { %10679 = vst [vmem:[#allocation13_spill] sm:$0xff] %v8393_v18  ;;  %10680 = vst [vmem:[#allocation14_spill] sm:$0xff] %v8395_v19  ;;  %v555_v35 = vpop.permute.xlu1 %554  ;;  %v553_v20 = vpop.permute.xlu0 %552  ;;  %v800_v36 = vpack.c.bf16 %v8393_v18, %v8395_v19 }
  0xcf   : > { %v686_v25 = vsel %vm672_vm0, %v8263_v37, %v555_v35  ;;  %v685_v26 = vsel %vm672_vm0, %v8266_v38, %v553_v20  ;;  %v847_v35 = vsub.s32 2, %v8438_v63 }
  0xd0   : > { %1063 = vmatmul.mubr.bf16.gmra.mrb[20].mxu0 %v800_v36  ;;  %7119 = vmatmul.mubr.bf16.gmra.mrb[8].mxu1 %v800_v36 }
  0xd1   : > { %1072 = vmatprep.mubr.bf16.mxu0 %v10647_v10  ;;  %v8465_v36 = vrot.slane %v835_v33, %v847_v35 }
  0xd2   : > { %v603_v21 = vpop.permute.xlu1 %602  ;;  %v601_v22 = vpop.permute.xlu0 %600 }
  0xd3   : > { %v703_v28 = vsel %vm689_vm1, %v686_v25, %v603_v21  ;;  %v702_v29 = vsel %vm689_vm1, %v685_v26, %v601_v22 }
  0xd6   : > { %v651_v30 = vpop.permute.xlu1 %650  ;;  %v649_v41 = vpop.permute.xlu0 %648 }
  0xd7   : > { %v720_v42 = vsel %vm706_vm2, %v703_v28, %v651_v30  ;;  %v719_v43 = vsel %vm706_vm2, %v702_v29, %v649_v41 }
  0xd8   : > { %v8409_v44 = vadd.f32 %v6730_v27, %v720_v42  ;;  %v8411_v45 = vadd.f32 %v6730_v27, %v719_v43 }
  0xda   : > { %10681 = vst [vmem:[#allocation15_spill] sm:$0xff] %v8409_v44  ;;  %10682 = vst [vmem:[#allocation16_spill] sm:$0xff] %v8411_v45  ;;  %v559_v37 = vpop.permute.xlu1 %558  ;;  %v557_v46 = vpop.permute.xlu0 %556  ;;  %v801_v38 = vpack.c.bf16 %v8409_v44, %v8411_v45 }
  0xdb   : > { %v688_v31 = vsel %vm672_vm0, %v8281_v39, %v559_v37  ;;  %v687_v51 = vsel %vm672_vm0, %v8284_v40, %v557_v46  ;;  %v10649_v40 = vmov 0.0  }
  0xdc   : > { %1073 = vmatmul.mubr.bf16.gmra.mrb[24].mxu0 %v801_v38  ;;  %7122 = vmatprep.mubr.bf16.mxu1 %v801_v38 }
  0xdd   : > { %1082 = vmatprep.mubr.bf16.mxu0 %v10647_v10  ;;  %7126 = vmatprep.subr.bf16.mxu1 %v10649_v40 }
  0xde   : > { %v607_v47 = vpop.permute.xlu1 %606  ;;  %v605_v48 = vpop.permute.xlu0 %604  ;;  %7150 = vmatprep.subr.bf16.mxu0 %v10649_v40 }
  0xdf   : > { %v705_v52 = vsel %vm689_vm1, %v688_v31, %v607_v47  ;;  %v704_v53 = vsel %vm689_vm1, %v687_v51, %v605_v48 }
  0xe2   : > { %v655_v56 = vpop.permute.xlu1 %654  ;;  %v653_v57 = vpop.permute.xlu0 %652 }
  0xe3   : > { %v722_v58 = vsel %vm706_vm2, %v705_v52, %v655_v56  ;;  %v721_v59 = vsel %vm706_vm2, %v704_v53, %v653_v57 }
  0xe4   : > { %v8425_v60 = vadd.f32 %v6731_v32, %v722_v58  ;;  %v8427_v61 = vadd.f32 %v6731_v32, %v721_v59 }
  0xe6   : > { %10683 = vst [vmem:[#allocation17_spill] sm:$0xff] %v8425_v60  ;;  %10684 = vst [vmem:[#allocation18_spill] sm:$0xff] %v8427_v61  ;;  %v802_v39 = vpack.c.bf16 %v8425_v60, %v8427_v61 }
  0xe8   : > { %1083 = vmatmul.mubr.bf16.gmra.mrb[28].mxu0 %v802_v39  ;;  %7123 = vmatmul.mubr.bf16.gmra.mrb[12].mxu1 %v802_v39 }
  0xe9   : > { %7128 = vmatprep.mubr.msk.bf16.mxu1 %vm7986_vm3, %v10649_v40  ;;  %7152 = vmatprep.mubr.msk.bf16.mxu0 %vm7986_vm3, %v10649_v40 }
 0x167   : > { %v1014_v4 = vpop.f32.mrb[0].mxu0 }
 0x168   : > { %v1016_v8 = vpop.f32.mrb[1].mxu0  ;;  %v1015_v11 = vadd.f32 %v1014_v4, %v8447_v34 }
 0x169   : > { %v1018_v9 = vpop.f32.mrb[2].mxu0  ;;  %v1017_v14 = vadd.f32 %v1016_v8, %v8451_v5 }
 0x16a   : > { %v1019_v12 = vadd.f32 %v1018_v9, %v8447_v34  ;;  %v1020_v13 = vpop.f32.mrb[3].mxu0 }
 0x16b   : > { %v1021_v15 = vadd.f32 %v1020_v13, %v8451_v5 }
 0x16c   : > { %v8457_v16 = vpack.c.bf16 %v1019_v12, %v1015_v11 }
 0x16d   : > { %v8459_v17 = vpack.c.bf16 %v1021_v15, %v1017_v14 }
 0x16f   : > { %v1227_v20 = vsel %vm672_vm0, %v8459_v17, 0 }
 0x170   : > { %7127 = vmatpush3.bf16.xpose.msra.mxu1 %v1227_v20 }
 0x171   : > { %7132 = vmatprep.subr.bf16.mxu1 %v10649_v40 }
 0x173   : > { %v1024_v21 = vpop.f32.mrb[4].mxu0  ;;  %v7112_v22 = vpop.f32.mrb[0].mxu1 }
 0x174   : > { %v1026_v25 = vpop.f32.mrb[5].mxu0  ;;  %v1127_v26 = vpop.f32.mrb[1].mxu1  ;;  %v1025_v29 = vadd.f32 %v1024_v21, %v8447_v34  ;;  %v1136_v30 = vadd.f32 %v7112_v22, %v8465_v36 }
 0x175   : > { %v1028_v27 = vpop.f32.mrb[6].mxu0  ;;  %v7113_v28 = vpop.f32.mrb[2].mxu1  ;;  %v1027_v46 = vadd.f32 %v1026_v25, %v8451_v5  ;;  %v1128_v38 = vadd.f32 %v1127_v26, %v8465_v36 }
 0x176   : > { %v1029_v41 = vadd.f32 %v1028_v27, %v8447_v34  ;;  %v1139_v42 = vadd.f32 %v7113_v28, %v8465_v36  ;;  %v1030_v43 = vpop.f32.mrb[7].mxu0  ;;  %v1130_v37 = vpop.f32.mrb[3].mxu1 }
 0x177   : > { %v1031_v47 = vadd.f32 %v1030_v43, %v8451_v5  ;;  %v1131_v48 = vadd.f32 %v1130_v37, %v8465_v36  ;;  %7129 = vmatmul.mubr.msk.bf16.vlgmr.msra.gmra.mrb[16].mxu1 %vm672_vm0, %v8457_v16 }
 0x178   : > { %v8477_v31 = vpack.c.bf16 %v1029_v41, %v1025_v29  ;;  %v8479_v51 = vpack.c.bf16 %v1139_v42, %v1136_v30  ;;  %7134 = vmatprep.mubr.msk.bf16.mxu1 %vm7986_vm3, %v10649_v40 }
 0x179   : > { %v8483_v32 = vpack.c.bf16 %v1031_v47, %v1027_v46  ;;  %v8485_v52 = vpack.c.bf16 %v1131_v48, %v1128_v38 }
 0x17b   : > { %v1274_v53 = vsel %vm672_vm0, %v8483_v32, 0 }
 0x17c   : > { %7133 = vmatpush3.bf16.xpose.msra.mxu1 %v1274_v53 }
 0x17d   : > { %7138 = vmatprep.subr.bf16.mxu1 %v10649_v40 }
 0x17f   : > { %v1034_v56 = vpop.f32.mrb[8].mxu0 }
 0x180   : > { %v1036_v57 = vpop.f32.mrb[9].mxu0  ;;  %v1035_v59 = vadd.f32 %v1034_v56, %v8447_v34 }
 0x181   : > { %v1038_v58 = vpop.f32.mrb[10].mxu0  ;;  %v1037_v4 = vadd.f32 %v1036_v57, %v8451_v5 }
 0x182   : > { %v1039_v39 = vadd.f32 %v1038_v58, %v8447_v34  ;;  %v1040_v33 = vpop.f32.mrb[11].mxu0 }
 0x183   : > { %v1041_v8 = vadd.f32 %v1040_v33, %v8451_v5  ;;  %7135 = vmatmul.mubr.msk.bf16.vlgmr.msra.gmra.mrb[20].mxu1 %vm672_vm0, %v8477_v31 }
 0x184   : > { %v8496_v9 = vpack.c.bf16 %v1039_v39, %v1035_v59  ;;  %7140 = vmatprep.mubr.msk.bf16.mxu1 %vm7986_vm3, %v10649_v40 }
 0x185   : > { %v8500_v11 = vpack.c.bf16 %v1041_v8, %v1037_v4 }
 0x187   : > { %v1321_v12 = vsel %vm672_vm0, %v8500_v11, 0 }
 0x188   : > { %7139 = vmatpush3.bf16.xpose.msra.mxu1 %v1321_v12 }
 0x189   : > { %7144 = vmatprep.subr.bf16.mxu1 %v10649_v40 }
 0x18b   : > { %v1044_v13 = vpop.f32.mrb[12].mxu0  ;;  %v7116_v14 = vpop.f32.mrb[4].mxu1 }
 0x18c   : > { %v1046_v15 = vpop.f32.mrb[13].mxu0  ;;  %v1143_v35 = vpop.f32.mrb[5].mxu1  ;;  %v1045_v22 = vadd.f32 %v1044_v13, %v8447_v34  ;;  %v1152_v25 = vadd.f32 %v7116_v14, %v8465_v36 }
 0x18d   : > { %v1048_v20 = vpop.f32.mrb[14].mxu0  ;;  %v7117_v21 = vpop.f32.mrb[6].mxu1  ;;  %v1047_v30 = vadd.f32 %v1046_v15, %v8451_v5  ;;  %v1144_v41 = vadd.f32 %v1143_v35, %v8465_v36 }
 0x18e   : > { %v1049_v26 = vadd.f32 %v1048_v20, %v8447_v34  ;;  %v1155_v27 = vadd.f32 %v7117_v21, %v8465_v36  ;;  %v1050_v28 = vpop.f32.mrb[15].mxu0  ;;  %v1146_v29 = vpop.f32.mrb[7].mxu1 }
 0x18f   : > { %v1051_v42 = vadd.f32 %v1050_v28, %v8451_v5  ;;  %v1147_v43 = vadd.f32 %v1146_v29, %v8465_v36  ;;  %7141 = vmatmul.mubr.msk.bf16.vlgmr.msra.gmra.mrb[24].mxu1 %vm672_vm0, %v8496_v9 }
 0x190   : > { %v8515_v37 = vpack.c.bf16 %v1049_v26, %v1045_v22  ;;  %v8517_v46 = vpack.c.bf16 %v1155_v27, %v1152_v25  ;;  %7146 = vmatprep.mubr.msk.bf16.mxu1 %vm7986_vm3, %v10649_v40 }
 0x191   : > { %v8521_v38 = vpack.c.bf16 %v1051_v42, %v1047_v30  ;;  %v8523_v47 = vpack.c.bf16 %v1147_v43, %v1144_v41 }
 0x193   : > { %v1368_v48 = vsel %vm672_vm0, %v8521_v38, 0 }
 0x194   : > { %7145 = vmatpush3.bf16.xpose.msra.mxu1 %v1368_v48 }
 0x195   : > { %7156 = vmatprep.subr.bf16.mxu1 %v10649_v40 }
 0x197   : > { %v1054_v53 = vpop.f32.mrb[16].mxu0 }
 0x198   : > { %v1056_v56 = vpop.f32.mrb[17].mxu0  ;;  %v1055_v58 = vadd.f32 %v1054_v53, %v8447_v34 }
 0x199   : > { %v1058_v57 = vpop.f32.mrb[18].mxu0  ;;  %v1057_v33 = vadd.f32 %v1056_v56, %v8451_v5 }
 0x19a   : > { %v1059_v59 = vadd.f32 %v1058_v57, %v8447_v34  ;;  %v1060_v39 = vpop.f32.mrb[19].mxu0 }
 0x19b   : > { %v1061_v4 = vadd.f32 %v1060_v39, %v8451_v5  ;;  %7147 = vmatmul.mubr.msk.bf16.vlgmr.msra.gmra.mrb[28].mxu1 %vm672_vm0, %v8515_v37 }
 0x19c   : > { %v8534_v8 = vpack.c.bf16 %v1059_v59, %v1055_v58  ;;  %7158 = vmatprep.mubr.msk.bf16.mxu1 %vm7986_vm3, %v10649_v40 }
 0x19d   : > { %v8538_v12 = vpack.c.bf16 %v1061_v4, %v1057_v33 }
 0x19f   : > { %v1415_v13 = vsel %vm672_vm0, %v8538_v12, 0 }
 0x1a0   : > { %7151 = vmatpush3.bf16.xpose.msra.mxu0 %v1415_v13 }
 0x1a1   : > { %7162 = vmatprep.subr.bf16.mxu0 %v10649_v40 }
 0x1a3   : > { %v1064_v14 = vpop.f32.mrb[20].mxu0  ;;  %v7120_v15 = vpop.f32.mrb[8].mxu1 }
 0x1a4   : > { %v1066_v35 = vpop.f32.mrb[21].mxu0  ;;  %v1159_v20 = vpop.f32.mrb[9].mxu1  ;;  %v1065_v25 = vadd.f32 %v1064_v14, %v8447_v34  ;;  %v1168_v28 = vadd.f32 %v7120_v15, %v8465_v36 }
 0x1a5   : > { %v1068_v21 = vpop.f32.mrb[22].mxu0  ;;  %v7121_v22 = vpop.f32.mrb[10].mxu1  ;;  %v1067_v41 = vadd.f32 %v1066_v35, %v8451_v5  ;;  %v1160_v43 = vadd.f32 %v1159_v20, %v8465_v36 }
 0x1a6   : > { %v1069_v26 = vadd.f32 %v1068_v21, %v8447_v34  ;;  %v1070_v27 = vpop.f32.mrb[23].mxu0  ;;  %v1171_v29 = vadd.f32 %v7121_v22, %v8465_v36  ;;  %v1162_v30 = vpop.f32.mrb[11].mxu1 }
 0x1a7   : > { %v1071_v42 = vadd.f32 %v1070_v27, %v8451_v5  ;;  %7153 = vmatmul.mubr.msk.bf16.vlgmr.msra.gmra.mrb[32].mxu0 %vm672_vm0, %v8534_v8  ;;  %v1163_v48 = vadd.f32 %v1162_v30, %v8465_v36 }
 0x1a8   : > { %v8553_v53 = vpack.c.bf16 %v1069_v26, %v1065_v25  ;;  %v8555_v56 = vpack.c.bf16 %v1171_v29, %v1168_v28  ;;  %7164 = vmatprep.mubr.msk.bf16.mxu0 %vm7986_vm3, %v10649_v40 }
 0x1a9   : > { %v8559_v57 = vpack.c.bf16 %v1071_v42, %v1067_v41  ;;  %v8561_v58 = vpack.c.bf16 %v1163_v48, %v1160_v43 }
 0x1ab   : > { %v1462_v59 = vsel %vm672_vm0, %v8559_v57, 0 }
 0x1ac   : > { %7157 = vmatpush3.bf16.xpose.msra.mxu1 %v1462_v59 }
 0x1ad   : > { %7168 = vmatprep.subr.bf16.mxu1 %v10649_v40 }
 0x1af   : > { %v1074_v39 = vpop.f32.mrb[24].mxu0 }
 0x1b0   : > { %v1076_v33 = vpop.f32.mrb[25].mxu0  ;;  %v1075_v13 = vadd.f32 %v1074_v39, %v8447_v34 }
 0x1b1   : > { %v1078_v4 = vpop.f32.mrb[26].mxu0  ;;  %v1077_v35 = vadd.f32 %v1076_v33, %v8451_v5 }
 0x1b2   : > { %v1079_v14 = vadd.f32 %v1078_v4, %v8447_v34  ;;  %v1080_v15 = vpop.f32.mrb[27].mxu0 }
 0x1b3   : > { %v1081_v20 = vadd.f32 %v1080_v15, %v8451_v5  ;;  %7159 = vmatmul.mubr.msk.bf16.vlgmr.msra.gmra.mrb[32].mxu1 %vm672_vm0, %v8553_v53 }
 0x1b4   : > { %v8572_v21 = vpack.c.bf16 %v1079_v14, %v1075_v13  ;;  %7170 = vmatprep.mubr.msk.bf16.mxu1 %vm7986_vm3, %v10649_v40 }
 0x1b5   : > { %v8576_v22 = vpack.c.bf16 %v1081_v20, %v1077_v35 }
 0x1b7   : > { %v1509_v25 = vsel %vm672_vm0, %v8576_v22, 0 }
 0x1b8   : > { %7163 = vmatpush3.bf16.xpose.msra.mxu0 %v1509_v25 }
 0x1b9   : > { %7174 = vmatprep.subr.bf16.mxu0 %v10649_v40 }
 0x1bb   : > { %v1084_v26 = vpop.f32.mrb[28].mxu0  ;;  %v7124_v27 = vpop.f32.mrb[12].mxu1 }
 0x1bc   : > { %v1086_v28 = vpop.f32.mrb[29].mxu0  ;;  %v1175_v29 = vpop.f32.mrb[13].mxu1  ;;  %v1085_v42 = vadd.f32 %v1084_v26, %v8447_v34  ;;  %v1184_v59 = vadd.f32 %v7124_v27, %v8465_v36  ;;  %v1192_v26 = vadd.s32 8, %v8438_v63  ;;  %v7987_v27 = vmov -inf  }
 0x1bd   : > { %v1088_v30 = vpop.f32.mrb[30].mxu0  ;;  %v7125_v41 = vpop.f32.mrb[14].mxu1  ;;  %v1087_v4 = vadd.f32 %v1086_v28, %v8451_v5  ;;  %v1176_v14 = vadd.f32 %v1175_v29, %v8465_v36 }
 0x1be   : > { %v1089_v43 = vadd.f32 %v1088_v30, %v8447_v34  ;;  %v1090_v48 = vpop.f32.mrb[31].mxu0  ;;  %v1187_v39 = vadd.f32 %v7125_v41, %v8465_v36  ;;  %v1178_v33 = vpop.f32.mrb[15].mxu1 }
 0x1bf   : > { %v1091_v13 = vadd.f32 %v1090_v48, %v8451_v5  ;;  %7165 = vmatmul.mubr.msk.bf16.vlgmr.msra.gmra.mrb[36].mxu0 %vm672_vm0, %v8572_v21  ;;  %v1179_v15 = vadd.f32 %v1178_v33, %v8465_v36  ;;  %v1194_v36 = vand.u32 127, %v837_v62 }
 0x1c0   : > { %v8591_v35 = vpack.c.bf16 %v1089_v43, %v1085_v42  ;;  %7175 = vmatpush3.bf16.msra.mxu0 %v8485_v52  ;;  %v8594_v34 = vpack.c.bf16 %v1187_v39, %v1184_v59  ;;  %7176 = vmatprep.mubr.msk.bf16.mxu0 %vm7986_vm3, %v10649_v40 }
 0x1c1   : > { %v8598_v20 = vpack.c.bf16 %v1091_v13, %v1087_v4  ;;  %v8600_v25 = vpack.c.bf16 %v1179_v15, %v1176_v14  ;;  %7186 = vmatprep.subr.bf16.mxu0 %v10649_v40  ;;  %vm1195_vm4 = vcmp.le.s32.totalorder %v1194_v36, %v8438_v63  ;;  %vm1196_vm5 = vcmp.le.s32.totalorder %v1194_v36, %v1192_v26 }
 0x1c2   : > { %v8615_v28 = vsel %vm1195_vm4, 0.0, %v7987_v27  ;;  %v8617_v42 = vsel %vm1196_vm5, 0.0, %v7987_v27 }
 0x1c3   : > { %v1556_v5 = vsel %vm672_vm0, %v8598_v20, 0 }
 0x1c4   : > { %7169 = vmatpush3.bf16.xpose.msra.mxu1 %v1556_v5 }
 0x1c5   : > { %7180 = vmatprep.subr.bf16.mxu1 %v10649_v40 }
 0x1cb   : > { %7171 = vmatmul.mubr.msk.bf16.vlgmr.msra.gmra.mrb[36].mxu1 %vm672_vm0, %v8591_v35 }
 0x1cc   : > { %7181 = vmatpush3.bf16.msra.mxu1 %v8479_v51  ;;  %7182 = vmatprep.mubr.msk.bf16.mxu1 %vm7986_vm3, %v10649_v40 }
 0x1cd   : > { %7192 = vmatprep.subr.bf16.mxu1 %v10649_v40 }
 0x24a   : > { %v1263_v29 = vpop.f32.mrb[16].mxu1 }
 0x24b   : > { %v1599_v30 = vmul.f32 0.17677669, %v1263_v29  ;;  %v7130_v41 = vpop.f32.mrb[17].mxu1 }
 0x24c   : > { %v1266_v43 = vpop.f32.mrb[18].mxu1 }
 0x24d   : > { %v1600_v48 = vmul.f32 0.17677669, %v1266_v43  ;;  %v7131_v59 = vpop.f32.mrb[19].mxu1  ;;  %v8620_v39 = vadd.f32 %v1599_v30, %v8615_v28 }
 0x24f   : > { %v1632_v62 = vsel %vm1631_vm6, %v8620_v39, -inf  ;;  %v8625_v33 = vadd.f32 %v1600_v48, %v8617_v42 }
 0x250   : > { %1633 = vmax.xlane.f32.xlu0 %v1632_v62 }
 0x251   : > { %v1635_v4 = vsel %vm1631_vm6, %v8625_v33, -inf }
 0x252   : > { %1636 = vmax.xlane.f32.xlu1 %v1635_v4 }
 0x256   : > { %v1310_v13 = vpop.f32.mrb[20].mxu1 }
 0x257   : > { %v1601_v14 = vmul.f32 0.17677669, %v1310_v13  ;;  %v7136_v15 = vpop.f32.mrb[21].mxu1 }
 0x258   : > { %v1313_v5 = vpop.f32.mrb[22].mxu1 }
 0x259   : > { %v1602_v36 = vmul.f32 0.17677669, %v1313_v5  ;;  %v7137_v26 = vpop.f32.mrb[23].mxu1  ;;  %v8630_v27 = vadd.f32 %v1601_v14, %v8615_v28 }
 0x25b   : > { %v1638_v29 = vsel %vm1631_vm6, %v8630_v27, -inf  ;;  %v8635_v30 = vadd.f32 %v1602_v36, %v8617_v42 }
 0x25c   : > { %1639 = vmax.xlane.f32.xlu0 %v1638_v29 }
 0x25d   : > { %v1641_v41 = vsel %vm1631_vm6, %v8635_v30, -inf }
 0x260   : > { %1642 = vmax.xlane.f32.xlu0 %v1641_v41 }
 0x262   : > { %v1357_v43 = vpop.f32.mrb[24].mxu1 }
 0x263   : > { %v1603_v48 = vmul.f32 0.17677669, %v1357_v43  ;;  %v7142_v59 = vpop.f32.mrb[25].mxu1 }
 0x264   : > { %v1360_v62 = vpop.f32.mrb[26].mxu1 }
 0x265   : > { %v1604_v4 = vmul.f32 0.17677669, %v1360_v62  ;;  %v7143_v13 = vpop.f32.mrb[27].mxu1  ;;  %v8640_v14 = vadd.f32 %v1603_v48, %v8615_v28 }
 0x267   : > { %v1644_v15 = vsel %vm1631_vm6, %v8640_v14, -inf  ;;  %v8645_v5 = vadd.f32 %v1604_v4, %v8617_v42 }
 0x268   : > { %1645 = vmax.xlane.f32.xlu1 %v1644_v15 }
 0x269   : > { %v1647_v36 = vsel %vm1631_vm6, %v8645_v5, -inf }
 0x26a   : > { %1648 = vmax.xlane.f32.xlu0 %v1647_v36 }
 0x26e   : > { %v1404_v26 = vpop.f32.mrb[28].mxu1 }
 0x26f   : > { %v1605_v29 = vmul.f32 0.17677669, %v1404_v26  ;;  %v7148_v41 = vpop.f32.mrb[29].mxu1 }
 0x270   : > { %v1407_v43 = vpop.f32.mrb[30].mxu1 }
 0x271   : > { %v1606_v59 = vmul.f32 0.17677669, %v1407_v43  ;;  %v7149_v62 = vpop.f32.mrb[31].mxu1  ;;  %v8650_v48 = vadd.f32 %v1605_v29, %v8615_v28 }
 0x273   : > { %v1650_v13 = vsel %vm1631_vm6, %v8650_v48, -inf  ;;  %v8655_v4 = vadd.f32 %v1606_v59, %v8617_v42 }
 0x274   : > { %1651 = vmax.xlane.f32.xlu1 %v1650_v13 }
 0x275   : > { %v1653_v15 = vsel %vm1631_vm6, %v8655_v4, -inf }
 0x276   : > { %1654 = vmax.xlane.f32.xlu0 %v1653_v15 }
 0x27a   : > { %v1451_v36 = vpop.f32.mrb[32].mxu0 }
 0x27b   : > { %v1607_v26 = vmul.f32 0.17677669, %v1451_v36  ;;  %v7154_v41 = vpop.f32.mrb[33].mxu0 }
 0x27c   : > { %v1454_v3 = vpop.f32.mrb[34].mxu0 }
 0x27d   : > { %v1608_v43 = vmul.f32 0.17677669, %v1454_v3  ;;  %v7155_v62 = vpop.f32.mrb[35].mxu0  ;;  %v8660_v29 = vadd.f32 %v1607_v26, %v8615_v28 }
 0x27f   : > { %v1656_v0 = vsel %vm1631_vm6, %v8660_v29, -inf  ;;  %v8665_v59 = vadd.f32 %v1608_v43, %v8617_v42 }
 0x280   : > { %1657 = vmax.xlane.f32.xlu1 %v1656_v0 }
 0x281   : > { %v1659_v13 = vsel %vm1631_vm6, %v8665_v59, -inf }
 0x282   : > { %1660 = vmax.xlane.f32.xlu0 %v1659_v13 }
 0x286   : > { %v1498_v15 = vpop.f32.mrb[32].mxu1 }
 0x287   : > { %v1609_v36 = vmul.f32 0.17677669, %v1498_v15  ;;  %v7160_v41 = vpop.f32.mrb[33].mxu1 }
 0x288   : > { %v1501_v10 = vpop.f32.mrb[34].mxu1 }
 0x289   : > { %v1610_v3 = vmul.f32 0.17677669, %v1501_v10  ;;  %v8670_v62 = vadd.f32 %v1609_v36, %v8615_v28  ;;  %v7161_v26 = vpop.f32.mrb[35].mxu1 }
 0x28b   : > { %v1662_v40 = vsel %vm1631_vm6, %v8670_v62, -inf  ;;  %v8675_v43 = vadd.f32 %v1610_v3, %v8617_v42 }
 0x28c   : > { %1663 = vmax.xlane.f32.xlu1 %v1662_v40 }
 0x28d   : > { %v1665_v0 = vsel %vm1631_vm6, %v8675_v43, -inf }
 0x28e   : > { %1666 = vmax.xlane.f32.xlu0 %v1665_v0 }
 0x292   : > { %v1545_v13 = vpop.f32.mrb[36].mxu0 }
 0x293   : > { %v1611_v15 = vmul.f32 0.17677669, %v1545_v13  ;;  %v7166_v41 = vpop.f32.mrb[37].mxu0 }
 0x294   : > { %v1548_v63 = vpop.f32.mrb[38].mxu0 }
 0x295   : > { %v1612_v10 = vmul.f32 0.17677669, %v1548_v63  ;;  %v8680_v36 = vadd.f32 %v1611_v15, %v8615_v28  ;;  %v7167_v26 = vpop.f32.mrb[39].mxu0 }
 0x297   : > { %v1668_v60 = vsel %vm1631_vm6, %v8680_v36, -inf  ;;  %v8685_v3 = vadd.f32 %v1612_v10, %v8617_v42 }
 0x298   : > { %1669 = vmax.xlane.f32.xlu1 %v1668_v60 }
 0x299   : > { %v1671_v40 = vsel %vm1631_vm6, %v8685_v3, -inf }
 0x29a   : > { %1672 = vmax.xlane.f32.xlu0 %v1671_v40 }
 0x29e   : > { %v1592_v0 = vpop.f32.mrb[36].mxu1 }
 0x29f   : > { %v1613_v13 = vmul.f32 0.17677669, %v1592_v0  ;;  %v7172_v41 = vpop.f32.mrb[37].mxu1 }
 0x2a0   : > { %v1595_v61 = vpop.f32.mrb[38].mxu1 }
 0x2a1   : > { %v1614_v63 = vmul.f32 0.17677669, %v1595_v61  ;;  %v8690_v15 = vadd.f32 %v1613_v13, %v8615_v28  ;;  %v7173_v26 = vpop.f32.mrb[39].mxu1 }
 0x2a3   : > { %v1674_v44 = vsel %vm1631_vm6, %v8690_v15, -inf  ;;  %v8695_v10 = vadd.f32 %v1614_v63, %v8617_v42 }
 0x2a4   : > { %1675 = vmax.xlane.f32.xlu1 %v1674_v44 }
 0x2a5   : > { %v1677_v60 = vsel %vm1631_vm6, %v8695_v10, -inf }
 0x2a6   : > { %1678 = vmax.xlane.f32.xlu0 %v1677_v60 }
 0x2b5   : > { %2188 = vrot.lane.b32.xlu1 %v8459_v17, %s7984_s22 }
 0x2dd   : > { %v1634_v40 = vpop.xlane.xlu0 %1633 }
 0x2de   : > { %v1680_v61 = vsub.f32 %v8620_v39, %v1634_v40 }
 0x2df   : > { %v1637_v0 = vpop.xlane.xlu1 %1636 }
 0x2e0   : > { %v1696_v13 = vmul.f32 1.442695, %v1680_v61  ;;  %v1681_v41 = vsub.f32 %v8625_v33, %v1637_v0 }
 0x2e2   : > { %7653 = vpow2.f32 %v1696_v13  ;;  %v1698_v26 = vmul.f32 1.442695, %v1681_v41 }
 0x2e4   : > { %7655 = vpow2.f32 %v1698_v26 }
 0x2e9   : > { %v1640_v63 = vpop.xlane.xlu0 %1639 }
 0x2ea   : > { %v1682_v44 = vsub.f32 %v8630_v27, %v1640_v63 }
 0x2ec   : > { %v8704_v45 = vpop.eup %7653  ;;  %v1700_v18 = vmul.f32 1.442695, %v1682_v44 }
 0x2ed   : > { %v1643_v60 = vpop.xlane.xlu0 %1642  ;;  %v1728_v19 = vsel %vm1631_vm6, %v8704_v45, 0.0 }
 0x2ee   : > { %v8708_v1 = vpop.eup %7655  ;;  %7657 = vpow2.f32 %v1700_v18  ;;  %v1683_v39 = vsub.f32 %v8635_v30, %v1643_v60  ;;  %1729 = vadd.xlane.f32.xlu1 %v1728_v19 }
 0x2ef   : > { %v1731_v33 = vsel %vm1631_vm6, %v8708_v1, 0.0 }
 0x2f0   : > { %v1702_v40 = vmul.f32 1.442695, %v1683_v39  ;;  %1732 = vadd.xlane.f32.xlu0 %v1731_v33 }
 0x2f2   : > { %7659 = vpow2.f32 %v1702_v40 }
 0x2f5   : > { %v1646_v27 = vpop.xlane.xlu1 %1645 }
 0x2f6   : > { %v1684_v61 = vsub.f32 %v8640_v14, %v1646_v27 }
 0x2f7   : > { %v1649_v0 = vpop.xlane.xlu0 %1648 }
 0x2f8   : > { %v8714_v13 = vpop.eup %7657  ;;  %v1704_v41 = vmul.f32 1.442695, %v1684_v61  ;;  %v1685_v26 = vsub.f32 %v8645_v5, %v1649_v0 }
 0x2f9   : > { %v1734_v18 = vsel %vm1631_vm6, %v8714_v13, 0.0 }
 0x2fa   : > { %7661 = vpow2.f32 %v1704_v41  ;;  %v1706_v19 = vmul.f32 1.442695, %v1685_v26  ;;  %1735 = vadd.xlane.f32.xlu1 %v1734_v18 }
 0x2fc   : > { %v8719_v30 = vpop.eup %7659  ;;  %7663 = vpow2.f32 %v1706_v19 }
 0x2fd   : > { %v1737_v63 = vsel %vm1631_vm6, %v8719_v30, 0.0 }
 0x2fe   : > { %1738 = vadd.xlane.f32.xlu0 %v1737_v63 }
 0x301   : > { %v1652_v14 = vpop.xlane.xlu1 %1651 }
 0x302   : > { %v1686_v44 = vsub.f32 %v8650_v48, %v1652_v14 }
 0x303   : > { %v1655_v60 = vpop.xlane.xlu0 %1654 }
 0x304   : > { %v8724_v39 = vpop.eup %7661  ;;  %v1708_v5 = vmul.f32 1.442695, %v1686_v44  ;;  %v1687_v33 = vsub.f32 %v8655_v4, %v1655_v60 }
 0x305   : > { %v1740_v40 = vsel %vm1631_vm6, %v8724_v39, 0.0 }
 0x306   : > { %v8729_v27 = vpop.eup %7663  ;;  %7665 = vpow2.f32 %v1708_v5  ;;  %v1710_v61 = vmul.f32 1.442695, %v1687_v33  ;;  %1741 = vadd.xlane.f32.xlu1 %v1740_v40 }
 0x307   : > { %v1743_v0 = vsel %vm1631_vm6, %v8729_v27, 0.0 }
 0x308   : > { %7667 = vpow2.f32 %v1710_v61  ;;  %1744 = vadd.xlane.f32.xlu0 %v1743_v0 }
 0x30d   : > { %v1658_v48 = vpop.xlane.xlu1 %1657 }
 0x30e   : > { %v1688_v41 = vsub.f32 %v8660_v29, %v1658_v48 }
 0x30f   : > { %v1661_v26 = vpop.xlane.xlu0 %1660 }
 0x310   : > { %v8734_v18 = vpop.eup %7665  ;;  %v1712_v4 = vmul.f32 1.442695, %v1688_v41  ;;  %v1689_v19 = vsub.f32 %v8665_v59, %v1661_v26 }
 0x311   : > { %v1746_v63 = vsel %vm1631_vm6, %v8734_v18, 0.0 }
 0x312   : > { %v8739_v14 = vpop.eup %7667  ;;  %7669 = vpow2.f32 %v1712_v4  ;;  %v1714_v44 = vmul.f32 1.442695, %v1689_v19  ;;  %1747 = vadd.xlane.f32.xlu1 %v1746_v63 }
 0x313   : > { %v1749_v60 = vsel %vm1631_vm6, %v8739_v14, 0.0 }
 0x314   : > { %7671 = vpow2.f32 %v1714_v44  ;;  %1750 = vadd.xlane.f32.xlu0 %v1749_v60 }
 0x319   : > { %v1664_v29 = vpop.xlane.xlu1 %1663 }
 0x31a   : > { %v1690_v5 = vsub.f32 %v8670_v62, %v1664_v29 }
 0x31b   : > { %v1667_v33 = vpop.xlane.xlu0 %1666 }
 0x31c   : > { %v8744_v40 = vpop.eup %7669  ;;  %v1716_v59 = vmul.f32 1.442695, %v1690_v5  ;;  %v1691_v61 = vsub.f32 %v8675_v43, %v1667_v33 }
 0x31d   : > { %v1752_v0 = vsel %vm1631_vm6, %v8744_v40, 0.0 }
 0x31e   : > { %v8749_v48 = vpop.eup %7671  ;;  %7673 = vpow2.f32 %v1716_v59  ;;  %v1718_v41 = vmul.f32 1.442695, %v1691_v61  ;;  %1753 = vadd.xlane.f32.xlu1 %v1752_v0 }
 0x31f   : > { %v1755_v26 = vsel %vm1631_vm6, %v8749_v48, 0.0 }
 0x320   : > { %7675 = vpow2.f32 %v1718_v41  ;;  %1756 = vadd.xlane.f32.xlu0 %v1755_v26 }
 0x325   : > { %v1670_v62 = vpop.xlane.xlu1 %1669 }
 0x326   : > { %v1692_v4 = vsub.f32 %v8680_v36, %v1670_v62 }
 0x327   : > { %v1673_v19 = vpop.xlane.xlu0 %1672 }
 0x328   : > { %v8754_v63 = vpop.eup %7673  ;;  %v1720_v43 = vmul.f32 1.442695, %v1692_v4  ;;  %v1693_v44 = vsub.f32 %v8685_v3, %v1673_v19 }
 0x329   : > { %v1758_v60 = vsel %vm1631_vm6, %v8754_v63, 0.0 }
 0x32a   : > { %v8759_v29 = vpop.eup %7675  ;;  %7677 = vpow2.f32 %v1720_v43  ;;  %v1722_v5 = vmul.f32 1.442695, %v1693_v44  ;;  %1759 = vadd.xlane.f32.xlu1 %v1758_v60 }
 0x32b   : > { %v1761_v33 = vsel %vm1631_vm6, %v8759_v29, 0.0 }
 0x32c   : > { %7679 = vpow2.f32 %v1722_v5  ;;  %1762 = vadd.xlane.f32.xlu0 %v1761_v33 }
 0x331   : > { %v1676_v36 = vpop.xlane.xlu1 %1675 }
 0x332   : > { %v1694_v59 = vsub.f32 %v8690_v15, %v1676_v36 }
 0x333   : > { %v1679_v61 = vpop.xlane.xlu0 %1678 }
 0x334   : > { %v8764_v0 = vpop.eup %7677  ;;  %v1724_v3 = vmul.f32 1.442695, %v1694_v59  ;;  %v1695_v41 = vsub.f32 %v8695_v10, %v1679_v61 }
 0x335   : > { %v1764_v26 = vsel %vm1631_vm6, %v8764_v0, 0.0  ;;  %v8815_v60 = vpop.permute.xlu1 %2188 }
 0x336   : > { %v8769_v62 = vpop.eup %7679  ;;  %7681 = vpow2.f32 %v1724_v3  ;;  %v1726_v4 = vmul.f32 1.442695, %v1695_v41  ;;  %1765 = vadd.xlane.f32.xlu1 %v1764_v26 }
 0x337   : > { %v1767_v19 = vsel %vm1631_vm6, %v8769_v62, 0.0 }
 0x338   : > { %7683 = vpow2.f32 %v1726_v4  ;;  %1768 = vadd.xlane.f32.xlu0 %v1767_v19  ;;  %v10686_v19 = vmov 0.0  }
 0x340   : > { %v8773_v15 = vpop.eup %7681 }
 0x341   : > { %v1770_v43 = vsel %vm1631_vm6, %v8773_v15, 0.0 }
 0x342   : > { %v8777_v44 = vpop.eup %7683  ;;  %1771 = vadd.xlane.f32.xlu1 %v1770_v43 }
 0x343   : > { %v1773_v10 = vsel %vm1631_vm6, %v8777_v44, 0.0 }
 0x344   : > { %1774 = vadd.xlane.f32.xlu0 %v1773_v10 }
 0x353   : > { %2185 = vrot.lane.b32.xlu1 %v8457_v16, %s7984_s22 }
 0x357   : > { %2294 = vrot.lane.b32.xlu1 %v8500_v11, %s7984_s22 }
 0x35a   : > { %2241 = vrot.lane.b32.xlu0 %v8483_v32, %s7984_s22 }
 0x35b   : > { %2347 = vrot.lane.b32.xlu1 %v8521_v38, %s7984_s22 }
 0x35e   : > { %2238 = vrot.lane.b32.xlu0 %v8477_v31, %s7984_s22 }
 0x35f   : > { %2400 = vrot.lane.b32.xlu1 %v8538_v12, %s7984_s22 }
 0x362   : > { %2291 = vrot.lane.b32.xlu0 %v8496_v9, %s7984_s22 }
 0x363   : > { %2453 = vrot.lane.b32.xlu1 %v8559_v57, %s7984_s22 }
 0x366   : > { %2344 = vrot.lane.b32.xlu0 %v8515_v37, %s7984_s22 }
 0x367   : > { %2506 = vrot.lane.b32.xlu1 %v8576_v22, %s7984_s22 }
 0x36a   : > { %2397 = vrot.lane.b32.xlu0 %v8534_v8, %s7984_s22 }
 0x36b   : > { %2559 = vrot.lane.b32.xlu1 %v8598_v20, %s7984_s22 }
 0x36e   : > { %2450 = vrot.lane.b32.xlu0 %v8553_v53, %s7984_s22 }
 0x36f   : > { %2556 = vrot.lane.b32.xlu1 %v8591_v35, %s7984_s22 }
 0x372   : > { %2503 = vrot.lane.b32.xlu0 %v8572_v21, %s7984_s22 }
 0x373   : > { %2825 = vrot.lane.b32.xlu1 %v8485_v52, %s7984_s22 }
 0x376   : > { %2873 = vrot.lane.b32.xlu0 %v8479_v51, %s7984_s22 }
 0x377   : > { %2921 = vrot.lane.b32.xlu1 %v8523_v47, %s7984_s22 }
 0x37b   : > { %2969 = vrot.lane.b32.xlu1 %v8517_v46, %s7984_s22  ;;  %v1730_v5 = vpop.xlane.xlu1 %1729 }
 0x37c   : > { %7685 = vrcp.f32 %v1730_v5 }
 0x37d   : > { %v1733_v33 = vpop.xlane.xlu0 %1732 }
 0x37e   : > { %7687 = vrcp.f32 %v1733_v33 }
 0x386   : > { %v7686_v36 = vpop.eup %7685 }
 0x387   : > { %v1736_v59 = vpop.xlane.xlu1 %1735  ;;  %v1792_v3 = vmul.f32 %v7686_v36, %v8704_v45 }
 0x388   : > { %v7688_v61 = vpop.eup %7687  ;;  %7689 = vrcp.f32 %v1736_v59 }
 0x389   : > { %v1793_v41 = vmul.f32 %v7688_v61, %v8708_v1 }
 0x38b   : > { %v1739_v26 = vpop.xlane.xlu0 %1738  ;;  %v1808_v4 = vpack.c.bf16 %v1793_v41, %v1792_v3 }
 0x38c   : > { %7691 = vrcp.f32 %v1739_v26 }
 0x38d   : > { %7177 = vmatmul.mubr.msk.bf16.vlgmr.msra.gmra.mrb[40].mxu0 %vm1631_vm6, %v1808_v4 }
 0x38e   : > { %7187 = vmatpush3.bf16.msra.mxu0 %v8523_v47  ;;  %7188 = vmatprep.mubr.msk.bf16.mxu0 %vm7986_vm3, %v10686_v19 }
 0x38f   : > { %7198 = vmatprep.subr.bf16.mxu0 %v10686_v19 }
 0x392   : > { %v7690_v10 = vpop.eup %7689 }
 0x393   : > { %v1742_v43 = vpop.xlane.xlu1 %1741  ;;  %v1794_v1 = vmul.f32 %v7690_v10, %v8714_v13 }
 0x394   : > { %7693 = vrcp.f32 %v1742_v43 }
 0x395   : > { %v1745_v5 = vpop.xlane.xlu0 %1744 }
 0x396   : > { %v7692_v45 = vpop.eup %7691  ;;  %7695 = vrcp.f32 %v1745_v5 }
 0x397   : > { %v1795_v33 = vmul.f32 %v7692_v45, %v8719_v30 }
 0x399   : > { %v1809_v36 = vpack.c.bf16 %v1795_v33, %v1794_v1 }
 0x39b   : > { %7183 = vmatmul.mubr.msk.bf16.vlgmr.msra.gmra.mrb[40].mxu1 %vm1631_vm6, %v1809_v36 }
 0x39c   : > { %7193 = vmatpush3.bf16.msra.mxu1 %v8517_v46  ;;  %7194 = vmatprep.mubr.msk.bf16.mxu1 %vm7986_vm3, %v10686_v19 }
 0x39d   : > { %7204 = vmatprep.subr.bf16.mxu1 %v10686_v19 }
 0x39e   : > { %v7694_v59 = vpop.eup %7693 }
 0x39f   : > { %v1748_v61 = vpop.xlane.xlu1 %1747  ;;  %v1796_v41 = vmul.f32 %v7694_v59, %v8724_v39 }
 0x3a0   : > { %v7696_v3 = vpop.eup %7695  ;;  %7697 = vrcp.f32 %v1748_v61 }
 0x3a1   : > { %v1797_v13 = vmul.f32 %v7696_v3, %v8729_v27  ;;  %v1751_v26 = vpop.xlane.xlu0 %1750 }
 0x3a2   : > { %7699 = vrcp.f32 %v1751_v26 }
 0x3a3   : > { %v1810_v30 = vpack.c.bf16 %v1797_v13, %v1796_v41 }
 0x3a5   : > { %7189 = vmatmul.mubr.msk.bf16.vlgmr.msra.gmra.mrb[44].mxu0 %vm1631_vm6, %v1810_v30 }
 0x3a6   : > { %7199 = vmatpush3.bf16.msra.mxu0 %v8561_v58  ;;  %7200 = vmatprep.mubr.msk.bf16.mxu0 %vm7986_vm3, %v10686_v19 }
 0x3a7   : > { %7210 = vmatprep.subr.bf16.mxu0 %v10686_v19 }
 0x3aa   : > { %v7698_v4 = vpop.eup %7697 }
 0x3ab   : > { %v1754_v43 = vpop.xlane.xlu1 %1753  ;;  %v1798_v39 = vmul.f32 %v7698_v4, %v8734_v18 }
 0x3ac   : > { %v7700_v10 = vpop.eup %7699  ;;  %7701 = vrcp.f32 %v1754_v43 }
 0x3ad   : > { %v1799_v27 = vmul.f32 %v7700_v10, %v8739_v14  ;;  %v1757_v5 = vpop.xlane.xlu0 %1756 }
 0x3ae   : > { %7703 = vrcp.f32 %v1757_v5 }
 0x3af   : > { %v1811_v45 = vpack.c.bf16 %v1799_v27, %v1798_v39 }
 0x3b1   : > { %7195 = vmatmul.mubr.msk.bf16.vlgmr.msra.gmra.mrb[44].mxu1 %vm1631_vm6, %v1811_v45  ;;  %v2194_v45 = vsel %vm672_vm0, %v8815_v60, 0 }
 0x3b2   : > { %7205 = vmatpush3.bf16.msra.mxu1 %v8555_v56  ;;  %7206 = vmatprep.mubr.msk.bf16.mxu1 %vm7986_vm3, %v10686_v19 }
 0x3b3   : > { %7216 = vmatprep.subr.bf16.mxu1 %v10686_v19 }
 0x3b6   : > { %v7702_v1 = vpop.eup %7701 }
 0x3b7   : > { %v1760_v33 = vpop.xlane.xlu1 %1759  ;;  %v1800_v18 = vmul.f32 %v7702_v1, %v8744_v40 }
 0x3b8   : > { %v7704_v36 = vpop.eup %7703  ;;  %7705 = vrcp.f32 %v1760_v33 }
 0x3b9   : > { %v1801_v14 = vmul.f32 %v7704_v36, %v8749_v48  ;;  %v1763_v59 = vpop.xlane.xlu0 %1762 }
 0x3ba   : > { %7707 = vrcp.f32 %v1763_v59 }
 0x3bb   : > { %v1812_v61 = vpack.c.bf16 %v1801_v14, %v1800_v18 }
 0x3bd   : > { %7201 = vmatmul.mubr.msk.bf16.vlgmr.msra.gmra.mrb[48].mxu0 %vm1631_vm6, %v1812_v61 }
 0x3be   : > { %7211 = vmatpush3.bf16.msra.mxu0 %v8600_v25  ;;  %7212 = vmatprep.mubr.msk.bf16.mxu0 %vm7986_vm3, %v10686_v19 }
 0x3bf   : > { %7222 = vmatprep.subr.bf16.mxu0 %v10686_v19 }
 0x3c2   : > { %v7706_v3 = vpop.eup %7705 }
 0x3c3   : > { %v1766_v41 = vpop.xlane.xlu1 %1765  ;;  %v1802_v40 = vmul.f32 %v7706_v3, %v8754_v63 }
 0x3c4   : > { %v7708_v13 = vpop.eup %7707  ;;  %7709 = vrcp.f32 %v1766_v41 }
 0x3c5   : > { %v1803_v48 = vmul.f32 %v7708_v13, %v8759_v29  ;;  %v1769_v26 = vpop.xlane.xlu0 %1768 }
 0x3c6   : > { %7711 = vrcp.f32 %v1769_v26 }
 0x3c7   : > { %v1813_v30 = vpack.c.bf16 %v1803_v48, %v1802_v40 }
 0x3c9   : > { %7207 = vmatmul.mubr.msk.bf16.vlgmr.msra.gmra.mrb[48].mxu1 %vm1631_vm6, %v1813_v30 }
 0x3ca   : > { %7217 = vmatpush3.bf16.msra.mxu1 %v8594_v34  ;;  %7218 = vmatprep.mubr.msk.bf16.mxu1 %vm7986_vm3, %v10686_v19 }
 0x3cb   : > { %7228 = vmatprep.subr.bf16.mxu1 %v10686_v19 }
 0x3ce   : > { %v7710_v4 = vpop.eup %7709 }
 0x3cf   : > { %v1772_v43 = vpop.xlane.xlu1 %1771  ;;  %v1804_v63 = vmul.f32 %v7710_v4, %v8764_v0 }
 0x3d0   : > { %v7712_v10 = vpop.eup %7711  ;;  %7713 = vrcp.f32 %v1772_v43 }
 0x3d1   : > { %v1805_v29 = vmul.f32 %v7712_v10, %v8769_v62  ;;  %v1775_v39 = vpop.xlane.xlu0 %1774 }
 0x3d2   : > { %7715 = vrcp.f32 %v1775_v39 }
 0x3d3   : > { %v2186_v27 = vpop.permute.xlu1 %2185  ;;  %v1814_v5 = vpack.c.bf16 %v1805_v29, %v1804_v63 }
 0x3d5   : > { %7213 = vmatmul.mubr.msk.bf16.vlgmr.msra.gmra.mrb[52].mxu0 %vm1631_vm6, %v1814_v5  ;;  %v2242_v1 = vpop.permute.xlu0 %2241 }
 0x3d6   : > { %7223 = vmatpush3.bf16.xpose.msra.mxu0 %v2194_v45  ;;  %7224 = vmatprep.mubr.msk.bf16.mxu0 %vm7986_vm3, %v10686_v19  ;;  %v2247_v13 = vsel %vm672_vm0, %v2242_v1, 0 }
 0x3d7   : > { %v2295_v33 = vpop.permute.xlu1 %2294  ;;  %7234 = vmatprep.subr.bf16.mxu0 %v10686_v19 }
 0x3d8   : > { %v2300_v60 = vsel %vm672_vm0, %v2295_v33, 0 }
 0x3d9   : > { %v2239_v0 = vpop.permute.xlu0 %2238 }
 0x3da   : > { %v7714_v36 = vpop.eup %7713 }
 0x3db   : > { %v2348_v62 = vpop.permute.xlu1 %2347  ;;  %v1806_v14 = vmul.f32 %v7714_v36, %v8773_v15 }
 0x3dc   : > { %v7716_v18 = vpop.eup %7715  ;;  %v2353_v30 = vsel %vm672_vm0, %v2348_v62, 0 }
 0x3dd   : > { %v1807_v59 = vmul.f32 %v7716_v18, %v8777_v44  ;;  %7225 = vmatmul.mubr.msk.bf16.vlgmr.msra.gmra.mrb[56].mxu0 %vm672_vm0, %v2186_v27  ;;  %v2292_v61 = vpop.permute.xlu0 %2291 }
 0x3de   : > { %7235 = vmatpush3.bf16.xpose.msra.mxu0 %v2300_v60  ;;  %7236 = vmatprep.mubr.msk.bf16.mxu0 %vm7986_vm3, %v10686_v19 }
 0x3df   : > { %v2401_v3 = vpop.permute.xlu1 %2400  ;;  %v1815_v41 = vpack.c.bf16 %v1807_v59, %v1806_v14  ;;  %7246 = vmatprep.subr.bf16.mxu0 %v10686_v19 }
 0x3e0   : > { %v2406_v40 = vsel %vm672_vm0, %v2401_v3, 0 }
 0x3e1   : > { %7219 = vmatmul.mubr.msk.bf16.vlgmr.msra.gmra.mrb[52].mxu1 %vm1631_vm6, %v1815_v41  ;;  %v2345_v15 = vpop.permute.xlu0 %2344 }
 0x3e2   : > { %7229 = vmatpush3.bf16.xpose.msra.mxu1 %v2247_v13  ;;  %7230 = vmatprep.mubr.msk.bf16.mxu1 %vm7986_vm3, %v10686_v19 }
 0x3e3   : > { %v2454_v44 = vpop.permute.xlu1 %2453  ;;  %7240 = vmatprep.subr.bf16.mxu1 %v10686_v19 }
 0x3e4   : > { %v2459_v29 = vsel %vm672_vm0, %v2454_v44, 0 }
 0x3e5   : > { %7237 = vmatmul.mubr.msk.bf16.vlgmr.msra.gmra.mrb[60].mxu0 %vm672_vm0, %v2292_v61  ;;  %v2398_v26 = vpop.permute.xlu0 %2397 }
 0x3e6   : > { %7247 = vmatpush3.bf16.xpose.msra.mxu0 %v2406_v40  ;;  %7248 = vmatprep.mubr.msk.bf16.mxu0 %vm7986_vm3, %v10686_v19 }
 0x3e7   : > { %v2507_v48 = vpop.permute.xlu1 %2506  ;;  %7258 = vmatprep.subr.bf16.mxu0 %v10686_v19 }
 0x3e8   : > { %v2512_v43 = vsel %vm672_vm0, %v2507_v48, 0 }
 0x3e9   : > { %7231 = vmatmul.mubr.msk.bf16.vlgmr.msra.gmra.mrb[56].mxu1 %vm672_vm0, %v2239_v0  ;;  %v2451_v10 = vpop.permute.xlu0 %2450 }
 0x3ea   : > { %7241 = vmatpush3.bf16.xpose.msra.mxu1 %v2353_v30  ;;  %7242 = vmatprep.mubr.msk.bf16.mxu1 %vm7986_vm3, %v10686_v19 }
 0x3eb   : > { %v2560_v4 = vpop.permute.xlu1 %2559  ;;  %7252 = vmatprep.subr.bf16.mxu1 %v10686_v19 }
 0x3ec   : > { %v2565_v5 = vsel %vm672_vm0, %v2560_v4, 0 }
 0x3ed   : > { %7249 = vmatmul.mubr.msk.bf16.vlgmr.msra.gmra.mrb[64].mxu0 %vm672_vm0, %v2398_v26  ;;  %v2504_v27 = vpop.permute.xlu0 %2503 }
 0x3ee   : > { %7259 = vmatpush3.bf16.xpose.msra.mxu0 %v2512_v43  ;;  %7260 = vmatprep.mubr.msk.bf16.mxu0 %vm7986_vm3, %v10686_v19 }
 0x3ef   : > { %v2557_v63 = vpop.permute.xlu1 %2556  ;;  %7270 = vmatprep.subr.bf16.mxu0 %v10686_v19 }
 0x3f1   : > { %7243 = vmatmul.mubr.msk.bf16.vlgmr.msra.gmra.mrb[60].mxu1 %vm672_vm0, %v2345_v15  ;;  %v2874_v45 = vpop.permute.xlu0 %2873 }
 0x3f2   : > { %7253 = vmatpush3.bf16.xpose.msra.mxu1 %v2459_v29  ;;  %7254 = vmatprep.mubr.msk.bf16.mxu1 %vm7986_vm3, %v10686_v19 }
 0x3f3   : > { %v2826_v39 = vpop.permute.xlu1 %2825  ;;  %7264 = vmatprep.subr.bf16.mxu1 %v10686_v19 }
 0x3f5   : > { %7261 = vmatmul.mubr.msk.bf16.vlgmr.msra.gmra.mrb[68].mxu0 %vm672_vm0, %v2504_v27 }
 0x3f6   : > { %7271 = vmatpush3.bf16.msra.mxu0 %v2826_v39  ;;  %7272 = vmatprep.mubr.msk.bf16.mxu0 %vm7986_vm3, %v10686_v19 }
 0x3f7   : > { %7282 = vmatprep.subr.bf16.mxu0 %v10686_v19 }
 0x3f9   : > { %7255 = vmatmul.mubr.msk.bf16.vlgmr.msra.gmra.mrb[64].mxu1 %vm672_vm0, %v2451_v10 }
 0x3fa   : > { %7265 = vmatpush3.bf16.xpose.msra.mxu1 %v2565_v5  ;;  %7266 = vmatprep.mubr.msk.bf16.mxu1 %vm7986_vm3, %v10686_v19 }
 0x3fb   : > { %7276 = vmatprep.subr.bf16.mxu1 %v10686_v19 }
 0x401   : > { %7267 = vmatmul.mubr.msk.bf16.vlgmr.msra.gmra.mrb[68].mxu1 %vm672_vm0, %v2557_v63 }
 0x402   : > { %7277 = vmatpush3.bf16.msra.mxu1 %v2874_v45  ;;  %7278 = vmatprep.mubr.msk.bf16.mxu1 %vm7986_vm3, %v10686_v19 }
 0x403   : > { %7288 = vmatprep.subr.bf16.mxu1 %v10686_v19 }
 0x460   : > { %v1853_v1 = vpop.f32.mrb[40].mxu0 }
 0x461   : > { %2168 = vst.msk [vmem:[#allocation2] sm:$0xff] %vm672_vm0, %v1853_v1  ;;  %v7178_v33 = vpop.f32.mrb[41].mxu0 }
 0x462   : > { %v1856_v0 = vpop.f32.mrb[42].mxu0 }
 0x463   : > { %2169 = vst.msk [vmem:[#allocation2 + $0x8] sm:$0xff] %vm672_vm0, %v1856_v0  ;;  %v7179_v36 = vpop.f32.mrb[43].mxu0 }
 0x46e   : > { %v1897_v62 = vpop.f32.mrb[40].mxu1 }
 0x46f   : > { %2170 = vst.msk [vmem:[#allocation2 + $0x10] sm:$0xff] %vm672_vm0, %v1897_v62  ;;  %v7184_v18 = vpop.f32.mrb[41].mxu1 }
 0x470   : > { %v1900_v14 = vpop.f32.mrb[42].mxu1 }
 0x471   : > { %2171 = vst.msk [vmem:[#allocation2 + $0x18] sm:$0xff] %vm672_vm0, %v1900_v14  ;;  %v7185_v59 = vpop.f32.mrb[43].mxu1 }
 0x478   : > { %v1941_v60 = vpop.f32.mrb[44].mxu0 }
 0x479   : > { %2172 = vst.msk [vmem:[#allocation2 + $0x20] sm:$0xff] %vm672_vm0, %v1941_v60  ;;  %v7190_v61 = vpop.f32.mrb[45].mxu0 }
 0x47a   : > { %v1944_v3 = vpop.f32.mrb[46].mxu0 }
 0x47b   : > { %2173 = vst.msk [vmem:[#allocation2 + $0x28] sm:$0xff] %vm672_vm0, %v1944_v3  ;;  %v7191_v41 = vpop.f32.mrb[47].mxu0 }
 0x484   : > { %v1985_v13 = vpop.f32.mrb[44].mxu1 }
 0x485   : > { %2174 = vst.msk [vmem:[#allocation2 + $0x30] sm:$0xff] %vm672_vm0, %v1985_v13  ;;  %v7196_v15 = vpop.f32.mrb[45].mxu1 }
 0x486   : > { %v1988_v44 = vpop.f32.mrb[46].mxu1 }
 0x487   : > { %2175 = vst.msk [vmem:[#allocation2 + $0x38] sm:$0xff] %vm672_vm0, %v1988_v44  ;;  %v7197_v40 = vpop.f32.mrb[47].mxu1 }
 0x490   : > { %v2029_v48 = vpop.f32.mrb[48].mxu0 }
 0x491   : > { %2176 = vst.msk [vmem:[#allocation2 + $0x40] sm:$0xff] %vm672_vm0, %v2029_v48  ;;  %v7202_v26 = vpop.f32.mrb[49].mxu0 }
 0x492   : > { %v2032_v30 = vpop.f32.mrb[50].mxu0 }
 0x493   : > { %2177 = vst.msk [vmem:[#allocation2 + $0x48] sm:$0xff] %vm672_vm0, %v2032_v30  ;;  %v7203_v4 = vpop.f32.mrb[51].mxu0 }
 0x49c   : > { %v2073_v43 = vpop.f32.mrb[48].mxu1 }
 0x49d   : > { %2178 = vst.msk [vmem:[#allocation2 + $0x50] sm:$0xff] %vm672_vm0, %v2073_v43  ;;  %v7208_v10 = vpop.f32.mrb[49].mxu1 }
 0x49e   : > { %v2076_v63 = vpop.f32.mrb[50].mxu1 }
 0x49f   : > { %2179 = vst.msk [vmem:[#allocation2 + $0x58] sm:$0xff] %vm672_vm0, %v2076_v63  ;;  %v7209_v29 = vpop.f32.mrb[51].mxu1 }
 0x4a8   : > { %v2117_v39 = vpop.f32.mrb[52].mxu0 }
 0x4a9   : > { %2180 = vst.msk [vmem:[#allocation2 + $0x60] sm:$0xff] %vm672_vm0, %v2117_v39  ;;  %v7214_v27 = vpop.f32.mrb[53].mxu0 }
 0x4aa   : > { %v2120_v5 = vpop.f32.mrb[54].mxu0 }
 0x4ab   : > { %2181 = vst.msk [vmem:[#allocation2 + $0x68] sm:$0xff] %vm672_vm0, %v2120_v5  ;;  %v7215_v45 = vpop.f32.mrb[55].mxu0 }
 0x4b0   : > { %v2230_v1 = vpop.f32.mrb[56].mxu0 }
 0x4b1   : > { %v2608_v33 = vmul.f32 0.17677669, %v2230_v1  ;;  %v7226_v0 = vpop.f32.mrb[57].mxu0 }
 0x4b2   : > { %v2233_v36 = vpop.f32.mrb[58].mxu0 }
 0x4b3   : > { %v8931_v62 = vadd.f32 %v2608_v33, %v8615_v28  ;;  %v2609_v18 = vmul.f32 0.17677669, %v2233_v36  ;;  %v7227_v14 = vpop.f32.mrb[59].mxu0 }
 0x4b4   : > { %v2161_v59 = vpop.f32.mrb[52].mxu1 }
 0x4b5   : > { %v8934_v60 = vadd.f32 %v2609_v18, %v8617_v42  ;;  %2182 = vst.msk [vmem:[#allocation2 + $0x70] sm:$0xff] %vm672_vm0, %v2161_v59  ;;  %v7220_v61 = vpop.f32.mrb[53].mxu1  ;;  %v2640_v3 = vsel %vm1631_vm6, %v8931_v62, -inf }
 0x4b6   : > { %2641 = vmax.xlane.f32.xlu0 %v2640_v3  ;;  %v2164_v41 = vpop.f32.mrb[54].mxu1 }
 0x4b7   : > { %2183 = vst.msk [vmem:[#allocation2 + $0x78] sm:$0xff] %vm672_vm0, %v2164_v41  ;;  %v7221_v13 = vpop.f32.mrb[55].mxu1  ;;  %v2643_v15 = vsel %vm1631_vm6, %v8934_v60, -inf }
 0x4b8   : > { %2644 = vmax.xlane.f32.xlu1 %v2643_v15  ;;  %v2336_v44 = vpop.f32.mrb[60].mxu0 }
 0x4b9   : > { %v2612_v40 = vmul.f32 0.17677669, %v2336_v44  ;;  %v7238_v48 = vpop.f32.mrb[61].mxu0 }
 0x4ba   : > { %v2339_v26 = vpop.f32.mrb[62].mxu0 }
 0x4bb   : > { %v8943_v30 = vadd.f32 %v2612_v40, %v8615_v28  ;;  %v7239_v4 = vpop.f32.mrb[63].mxu0  ;;  %v2613_v33 = vmul.f32 0.17677669, %v2339_v26 }
 0x4bc   : > { %v2283_v43 = vpop.f32.mrb[56].mxu1 }
 0x4bd   : > { %v2610_v10 = vmul.f32 0.17677669, %v2283_v43  ;;  %v7232_v63 = vpop.f32.mrb[57].mxu1  ;;  %v2652_v29 = vsel %vm1631_vm6, %v8943_v30, -inf  ;;  %v8956_v41 = vadd.f32 %v2613_v33, %v8617_v42 }
 0x4be   : > { %2653 = vmax.xlane.f32.xlu1 %v2652_v29  ;;  %v2286_v39 = vpop.f32.mrb[58].mxu1 }
 0x4bf   : > { %v8948_v27 = vadd.f32 %v2610_v10, %v8615_v28  ;;  %v2611_v5 = vmul.f32 0.17677669, %v2286_v39  ;;  %v7233_v45 = vpop.f32.mrb[59].mxu1 }
 0x4c0   : > { %v2442_v1 = vpop.f32.mrb[64].mxu0 }
 0x4c1   : > { %v8951_v0 = vadd.f32 %v2611_v5, %v8617_v42  ;;  %v7250_v36 = vpop.f32.mrb[65].mxu0  ;;  %v2646_v18 = vsel %vm1631_vm6, %v8948_v27, -inf  ;;  %v2616_v61 = vmul.f32 0.17677669, %v2442_v1  ;;  %v2655_v5 = vsel %vm1631_vm6, %v8956_v41, -inf }
 0x4c2   : > { %v2445_v14 = vpop.f32.mrb[66].mxu0  ;;  %2647 = vmax.xlane.f32.xlu0 %v2646_v18 }
 0x4c3   : > { %v7251_v59 = vpop.f32.mrb[67].mxu0  ;;  %v2649_v44 = vsel %vm1631_vm6, %v8951_v0, -inf  ;;  %v8964_v43 = vadd.f32 %v2616_v61, %v8615_v28  ;;  %v2617_v10 = vmul.f32 0.17677669, %v2445_v14 }
 0x4c4   : > { %v2389_v3 = vpop.f32.mrb[60].mxu1 }
 0x4c5   : > { %v2614_v13 = vmul.f32 0.17677669, %v2389_v3  ;;  %v7244_v15 = vpop.f32.mrb[61].mxu1  ;;  %v8974_v36 = vadd.f32 %v2617_v10, %v8617_v42  ;;  %v2664_v14 = vsel %vm1631_vm6, %v8964_v43, -inf }
 0x4c6   : > { %2650 = vmax.xlane.f32.xlu0 %v2649_v44  ;;  %v2392_v40 = vpop.f32.mrb[62].mxu1 }
 0x4c7   : > { %v8961_v48 = vadd.f32 %v2614_v13, %v8615_v28  ;;  %v2615_v26 = vmul.f32 0.17677669, %v2392_v40  ;;  %v7245_v4 = vpop.f32.mrb[63].mxu1 }
 0x4c8   : > { %v2548_v63 = vpop.f32.mrb[68].mxu0  ;;  %v2667_v4 = vsel %vm1631_vm6, %v8974_v36, -inf }
 0x4c9   : > { %v8967_v29 = vadd.f32 %v2615_v26, %v8617_v42  ;;  %v7262_v39 = vpop.f32.mrb[69].mxu0  ;;  %v2658_v45 = vsel %vm1631_vm6, %v8961_v48, -inf  ;;  %v2620_v59 = vmul.f32 0.17677669, %v2548_v63 }
 0x4ca   : > { %v2551_v1 = vpop.f32.mrb[70].mxu0  ;;  %2656 = vmax.xlane.f32.xlu0 %v2655_v5  ;;  %2659 = vmax.xlane.f32.xlu1 %v2658_v45 }
 0x4cb   : > { %v7263_v33 = vpop.f32.mrb[71].mxu0  ;;  %v2661_v13 = vsel %vm1631_vm6, %v8967_v29, -inf  ;;  %v8986_v10 = vadd.f32 %v2620_v59, %v8615_v28  ;;  %v2621_v63 = vmul.f32 0.17677669, %v2551_v1 }
 0x4cc   : > { %v2495_v18 = vpop.f32.mrb[64].mxu1 }
 0x4cd   : > { %v2618_v61 = vmul.f32 0.17677669, %v2495_v18  ;;  %v7256_v3 = vpop.f32.mrb[65].mxu1  ;;  %v8994_v33 = vadd.f32 %v2621_v63, %v8617_v42 }
 0x4ce   : > { %2665 = vmax.xlane.f32.xlu1 %v2664_v14  ;;  %2662 = vmax.xlane.f32.xlu0 %v2661_v13  ;;  %v2498_v15 = vpop.f32.mrb[66].mxu1 }
 0x4cf   : > { %v8981_v44 = vadd.f32 %v2618_v61, %v8615_v28  ;;  %v2619_v40 = vmul.f32 0.17677669, %v2498_v15  ;;  %v7257_v26 = vpop.f32.mrb[67].mxu1  ;;  %v2676_v61 = vsel %vm1631_vm6, %v8986_v10, -inf }
 0x4d0   : > { %v2679_v26 = vsel %vm1631_vm6, %v8994_v33, -inf }
 0x4d1   : > { %v8989_v39 = vadd.f32 %v2619_v40, %v8617_v42  ;;  %v2670_v5 = vsel %vm1631_vm6, %v8981_v44, -inf }
 0x4d2   : > { %2668 = vmax.xlane.f32.xlu0 %v2667_v4  ;;  %2671 = vmax.xlane.f32.xlu1 %v2670_v5  ;;  %v9020_v5 = vpop.permute.xlu1 %2921 }
 0x4d3   : > { %v2673_v1 = vsel %vm1631_vm6, %v8989_v39, -inf }
 0x4d4   : > { %v2601_v45 = vpop.f32.mrb[68].mxu1 }
 0x4d5   : > { %v2622_v18 = vmul.f32 0.17677669, %v2601_v45  ;;  %v7268_v14 = vpop.f32.mrb[69].mxu1 }
 0x4d6   : > { %2677 = vmax.xlane.f32.xlu1 %v2676_v61  ;;  %2674 = vmax.xlane.f32.xlu0 %v2673_v1  ;;  %v2604_v59 = vpop.f32.mrb[70].mxu1  ;;  %v9022_v45 = vpop.permute.xlu1 %2969 }
 0x4d7   : > { %v9001_v3 = vadd.f32 %v2622_v18, %v8615_v28  ;;  %v2623_v13 = vmul.f32 0.17677669, %v2604_v59  ;;  %v7269_v15 = vpop.f32.mrb[71].mxu1 }
 0x4d9   : > { %v9004_v40 = vadd.f32 %v2623_v13, %v8617_v42  ;;  %v2682_v4 = vsel %vm1631_vm6, %v9001_v3, -inf }
 0x4da   : > { %2680 = vmax.xlane.f32.xlu0 %v2679_v26  ;;  %2683 = vmax.xlane.f32.xlu1 %v2682_v4 }
 0x4db   : > { %v2685_v63 = vsel %vm1631_vm6, %v9004_v40, -inf }
 0x4de   : > { %2686 = vmax.xlane.f32.xlu0 %v2685_v63 }
 0x4eb   : > { %3065 = vrot.lane.b32.xlu1 %v8555_v56, %s7984_s22 }
 0x4ef   : > { %3161 = vrot.lane.b32.xlu1 %v8594_v34, %s7984_s22 }
 0x4f4   : > { %3017 = vrot.lane.b32.xlu0 %v8561_v58, %s7984_s22 }
 0x4f8   : > { %3113 = vrot.lane.b32.xlu0 %v8600_v25, %s7984_s22 }
 0x543   : > { %v2642_v18 = vpop.xlane.xlu0 %2641 }
 0x544   : > { %v2688_v14 = vsub.f32 %v8931_v62, %v2642_v18 }
 0x545   : > { %v2645_v61 = vpop.xlane.xlu1 %2644 }
 0x546   : > { %v2704_v1 = vmul.f32 1.442695, %v2688_v14  ;;  %v2689_v59 = vsub.f32 %v8934_v60, %v2645_v61 }
 0x548   : > { %7717 = vpow2.f32 %v2704_v1  ;;  %v2706_v13 = vmul.f32 1.442695, %v2689_v59 }
 0x54a   : > { %7719 = vpow2.f32 %v2706_v13 }
 0x54b   : > { %v2654_v15 = vpop.xlane.xlu1 %2653 }
 0x54c   : > { %v2692_v26 = vsub.f32 %v8943_v30, %v2654_v15 }
 0x54e   : > { %v2712_v49 = vmul.f32 1.442695, %v2692_v26 }
 0x54f   : > { %v2648_v4 = vpop.xlane.xlu0 %2647 }
 0x550   : > { %v2690_v63 = vsub.f32 %v8948_v27, %v2648_v4 }
 0x552   : > { %v9028_v2 = vpop.eup %7717  ;;  %v2708_v50 = vmul.f32 1.442695, %v2690_v63 }
 0x553   : > { %v2651_v23 = vpop.xlane.xlu0 %2650  ;;  %v2736_v62 = vsel %vm1631_vm6, %v9028_v2, 0.0 }
 0x554   : > { %v9032_v18 = vpop.eup %7719  ;;  %7721 = vpow2.f32 %v2708_v50  ;;  %v2691_v60 = vsub.f32 %v8951_v0, %v2651_v23  ;;  %2737 = vadd.xlane.f32.xlu1 %v2736_v62 }
 0x555   : > { %v2739_v30 = vsel %vm1631_vm6, %v9032_v18, 0.0  ;;  %7723 = vpow2.f32 %v2712_v49 }
 0x556   : > { %v2710_v14 = vmul.f32 1.442695, %v2691_v60  ;;  %2740 = vadd.xlane.f32.xlu0 %v2739_v30 }
 0x557   : > { %v2657_v27 = vpop.xlane.xlu0 %2656  ;;  %v2660_v61 = vpop.xlane.xlu1 %2659 }
 0x558   : > { %7725 = vpow2.f32 %v2710_v14  ;;  %v2693_v1 = vsub.f32 %v8956_v41, %v2657_v27  ;;  %v2694_v59 = vsub.f32 %v8961_v48, %v2660_v61 }
 0x55a   : > { %v2714_v13 = vmul.f32 1.442695, %v2693_v1  ;;  %v2716_v15 = vmul.f32 1.442695, %v2694_v59 }
 0x55b   : > { %v2666_v26 = vpop.xlane.xlu1 %2665  ;;  %v2663_v50 = vpop.xlane.xlu0 %2662 }
 0x55c   : > { %7727 = vpow2.f32 %v2714_v13  ;;  %v2696_v23 = vsub.f32 %v8964_v43, %v2666_v26  ;;  %v2695_v0 = vsub.f32 %v8967_v29, %v2663_v50 }
 0x55d   : > { %7729 = vpow2.f32 %v2716_v15 }
 0x55e   : > { %v9041_v49 = vpop.eup %7721  ;;  %v2720_v4 = vmul.f32 1.442695, %v2696_v23  ;;  %v2718_v63 = vmul.f32 1.442695, %v2695_v0 }
 0x55f   : > { %v2669_v62 = vpop.xlane.xlu0 %2668  ;;  %v2672_v60 = vpop.xlane.xlu1 %2671  ;;  %v2742_v41 = vsel %vm1631_vm6, %v9041_v49, 0.0 }
 0x560   : > { %v9045_v48 = vpop.eup %7723  ;;  %7731 = vpow2.f32 %v2720_v4  ;;  %v2697_v30 = vsub.f32 %v8974_v36, %v2669_v62  ;;  %v2698_v14 = vsub.f32 %v8981_v44, %v2672_v60  ;;  %2743 = vadd.xlane.f32.xlu1 %v2742_v41 }
 0x561   : > { %7733 = vpow2.f32 %v2718_v63  ;;  %v2748_v59 = vsel %vm1631_vm6, %v9045_v48, 0.0 }
 0x562   : > { %v9049_v43 = vpop.eup %7725  ;;  %v2722_v29 = vmul.f32 1.442695, %v2697_v30  ;;  %v2724_v27 = vmul.f32 1.442695, %v2698_v14 }
 0x563   : > { %v2678_v61 = vpop.xlane.xlu1 %2677  ;;  %v2675_v1 = vpop.xlane.xlu0 %2674  ;;  %v2745_v13 = vsel %vm1631_vm6, %v9049_v43, 0.0 }
 0x564   : > { %7735 = vpow2.f32 %v2722_v29  ;;  %v2700_v15 = vsub.f32 %v8986_v10, %v2678_v61  ;;  %v2699_v36 = vsub.f32 %v8989_v39, %v2675_v1  ;;  %2749 = vadd.xlane.f32.xlu1 %v2748_v59  ;;  %2746 = vadd.xlane.f32.xlu0 %v2745_v13 }
 0x565   : > { %7737 = vpow2.f32 %v2724_v27 }
 0x566   : > { %v9057_v44 = vpop.eup %7727  ;;  %v2728_v26 = vmul.f32 1.442695, %v2700_v15  ;;  %v2726_v50 = vmul.f32 1.442695, %v2699_v36 }
 0x567   : > { %v9059_v23 = vpop.eup %7729  ;;  %v2681_v0 = vpop.xlane.xlu0 %2680  ;;  %v2751_v63 = vsel %vm1631_vm6, %v9057_v44, 0.0 }
 0x568   : > { %v2684_v4 = vpop.xlane.xlu1 %2683  ;;  %7739 = vpow2.f32 %v2728_v26  ;;  %v2701_v62 = vsub.f32 %v8994_v33, %v2681_v0  ;;  %v2754_v39 = vsel %vm1631_vm6, %v9059_v23, 0.0  ;;  %2752 = vadd.xlane.f32.xlu0 %v2751_v63 }
 0x569   : > { %v2702_v10 = vsub.f32 %v9001_v3, %v2684_v4  ;;  %7741 = vpow2.f32 %v2726_v50  ;;  %2755 = vadd.xlane.f32.xlu1 %v2754_v39 }
 0x56a   : > { %v9067_v60 = vpop.eup %7731  ;;  %v2730_v41 = vmul.f32 1.442695, %v2701_v62 }
 0x56b   : > { %v2732_v30 = vmul.f32 1.442695, %v2702_v10  ;;  %v9069_v14 = vpop.eup %7733  ;;  %v2687_v29 = vpop.xlane.xlu0 %2686  ;;  %v2760_v27 = vsel %vm1631_vm6, %v9067_v60, 0.0 }
 0x56c   : > { %7743 = vpow2.f32 %v2730_v41  ;;  %v2703_v33 = vsub.f32 %v9004_v40, %v2687_v29  ;;  %v2757_v3 = vsel %vm1631_vm6, %v9069_v14, 0.0  ;;  %v9144_v41 = vpop.permute.xlu1 %3065 }
 0x56d   : > { %7745 = vpow2.f32 %v2732_v30  ;;  %2761 = vadd.xlane.f32.xlu1 %v2760_v27  ;;  %2758 = vadd.xlane.f32.xlu0 %v2757_v3 }
 0x56e   : > { %v9076_v61 = vpop.eup %7735  ;;  %v2734_v1 = vmul.f32 1.442695, %v2703_v33 }
 0x56f   : > { %v9078_v59 = vpop.eup %7737  ;;  %v2763_v13 = vsel %vm1631_vm6, %v9076_v61, 0.0  ;;  %v3018_v30 = vpop.permute.xlu0 %3017 }
 0x570   : > { %7747 = vpow2.f32 %v2734_v1  ;;  %v2766_v15 = vsel %vm1631_vm6, %v9078_v59, 0.0  ;;  %v9146_v29 = vpop.permute.xlu1 %3161 }
 0x571   : > { %2767 = vadd.xlane.f32.xlu1 %v2766_v15  ;;  %2764 = vadd.xlane.f32.xlu0 %v2763_v13 }
 0x572   : > { %v9084_v40 = vpop.eup %7739 }
 0x573   : > { %v9086_v36 = vpop.eup %7741  ;;  %v2772_v26 = vsel %vm1631_vm6, %v9084_v40, 0.0  ;;  %v9148_v27 = vpop.permute.xlu0 %3113 }
 0x574   : > { %v2769_v50 = vsel %vm1631_vm6, %v9086_v36, 0.0 }
 0x575   : > { %2773 = vadd.xlane.f32.xlu1 %v2772_v26  ;;  %2770 = vadd.xlane.f32.xlu0 %v2769_v50 }
 0x576   : > { %v9092_v0 = vpop.eup %7743 }
 0x577   : > { %v9094_v4 = vpop.eup %7745  ;;  %v2775_v63 = vsel %vm1631_vm6, %v9092_v0, 0.0 }
 0x578   : > { %v2778_v62 = vsel %vm1631_vm6, %v9094_v4, 0.0 }
 0x579   : > { %2779 = vadd.xlane.f32.xlu1 %v2778_v62  ;;  %2776 = vadd.xlane.f32.xlu0 %v2775_v63 }
 0x57a   : > { %v9100_v10 = vpop.eup %7747 }
 0x57b   : > { %v2781_v39 = vsel %vm1631_vm6, %v9100_v10, 0.0 }
 0x57d   : > { %2782 = vadd.xlane.f32.xlu0 %v2781_v39 }
 0x58a   : > { %3342 = vrot.lane.b32.xlu1 %v8483_v32, %s7981_s20 }
 0x58e   : > { %3393 = vrot.lane.b32.xlu1 %v8500_v11, %s7981_s20 }
 0x592   : > { %3444 = vrot.lane.b32.xlu1 %v8521_v38, %s7981_s20 }
 0x593   : > { %3291 = vrot.lane.b32.xlu0 %v8459_v17, %s7981_s20 }
 0x596   : > { %3495 = vrot.lane.b32.xlu1 %v8538_v12, %s7981_s20 }
 0x597   : > { %3289 = vrot.lane.b32.xlu0 %v8457_v16, %s7981_s20 }
 0x59a   : > { %3546 = vrot.lane.b32.xlu1 %v8559_v57, %s7981_s20 }
 0x59b   : > { %3340 = vrot.lane.b32.xlu0 %v8477_v31, %s7981_s20 }
 0x59e   : > { %3597 = vrot.lane.b32.xlu1 %v8576_v22, %s7981_s20 }
 0x59f   : > { %3391 = vrot.lane.b32.xlu0 %v8496_v9, %s7981_s20 }
 0x5a2   : > { %3648 = vrot.lane.b32.xlu1 %v8598_v20, %s7981_s20 }
 0x5a3   : > { %3442 = vrot.lane.b32.xlu0 %v8515_v37, %s7981_s20 }
 0x5a6   : > { %3646 = vrot.lane.b32.xlu1 %v8591_v35, %s7981_s20 }
 0x5a7   : > { %3493 = vrot.lane.b32.xlu0 %v8534_v8, %s7981_s20 }
 0x5aa   : > { %3913 = vrot.lane.b32.xlu1 %v8485_v52, %s7981_s20 }
 0x5ab   : > { %3544 = vrot.lane.b32.xlu0 %v8553_v53, %s7981_s20 }
 0x5ae   : > { %4007 = vrot.lane.b32.xlu1 %v8523_v47, %s7981_s20 }
 0x5af   : > { %3595 = vrot.lane.b32.xlu0 %v8572_v21, %s7981_s20 }
 0x5b2   : > { %4054 = vrot.lane.b32.xlu1 %v8517_v46, %s7981_s20 }
 0x5b3   : > { %3960 = vrot.lane.b32.xlu0 %v8479_v51, %s7981_s20 }
 0x5e1   : > { %v2738_v33 = vpop.xlane.xlu1 %2737 }
 0x5e2   : > { %7749 = vrcp.f32 %v2738_v33 }
 0x5e3   : > { %v2741_v3 = vpop.xlane.xlu0 %2740 }
 0x5e4   : > { %7751 = vrcp.f32 %v2741_v3 }
 0x5ec   : > { %v7750_v1 = vpop.eup %7749 }
 0x5ed   : > { %v2744_v13 = vpop.xlane.xlu1 %2743  ;;  %v2800_v26 = vmul.f32 %v7750_v1, %v9028_v2 }
 0x5ee   : > { %v7752_v15 = vpop.eup %7751  ;;  %7753 = vrcp.f32 %v2744_v13 }
 0x5ef   : > { %v2801_v50 = vmul.f32 %v7752_v15, %v9032_v18 }
 0x5f1   : > { %v2750_v63 = vpop.xlane.xlu1 %2749  ;;  %v2747_v62 = vpop.xlane.xlu0 %2746  ;;  %v2816_v39 = vpack.c.bf16 %v2801_v50, %v2800_v26 }
 0x5f2   : > { %7755 = vrcp.f32 %v2747_v62 }
 0x5f3   : > { %7273 = vmatmul.mubr.msk.bf16.vlgmr.msra.gmra.mrb[72].mxu0 %vm1631_vm6, %v2816_v39  ;;  %7757 = vrcp.f32 %v2750_v63 }
 0x5f4   : > { %7283 = vmatpush3.bf16.msra.mxu0 %v9020_v5  ;;  %7284 = vmatprep.mubr.msk.bf16.mxu0 %vm7986_vm3, %v10686_v19 }
 0x5f5   : > { %v2753_v33 = vpop.xlane.xlu0 %2752  ;;  %7294 = vmatprep.subr.bf16.mxu0 %v10686_v19 }
 0x5f6   : > { %v2756_v3 = vpop.xlane.xlu1 %2755  ;;  %7759 = vrcp.f32 %v2753_v33 }
 0x5f7   : > { %7761 = vrcp.f32 %v2756_v3 }
 0x5f8   : > { %v7754_v1 = vpop.eup %7753 }
 0x5f9   : > { %v2802_v26 = vmul.f32 %v7754_v1, %v9041_v49 }
 0x5fa   : > { %v2762_v2 = vpop.xlane.xlu1 %2761  ;;  %v2759_v18 = vpop.xlane.xlu0 %2758 }
 0x5fb   : > { %7763 = vrcp.f32 %v2759_v18 }
 0x5fc   : > { %v7756_v13 = vpop.eup %7755  ;;  %7765 = vrcp.f32 %v2762_v2 }
 0x5fd   : > { %v7758_v15 = vpop.eup %7757  ;;  %v2803_v50 = vmul.f32 %v7756_v13, %v9049_v43 }
 0x5fe   : > { %v2768_v5 = vpop.xlane.xlu1 %2767  ;;  %v2765_v63 = vpop.xlane.xlu0 %2764  ;;  %v2804_v24 = vmul.f32 %v7758_v15, %v9045_v48 }
 0x5ff   : > { %7767 = vrcp.f32 %v2765_v63  ;;  %v2817_v39 = vpack.c.bf16 %v2803_v50, %v2802_v26 }
 0x600   : > { %v7760_v62 = vpop.eup %7759  ;;  %7769 = vrcp.f32 %v2768_v5 }
 0x601   : > { %v2805_v33 = vmul.f32 %v7760_v62, %v9057_v44  ;;  %7279 = vmatmul.mubr.msk.bf16.vlgmr.msra.gmra.mrb[72].mxu1 %vm1631_vm6, %v2817_v39  ;;  %v7762_v43 = vpop.eup %7761 }
 0x602   : > { %v2774_v3 = vpop.xlane.xlu1 %2773  ;;  %v2771_v18 = vpop.xlane.xlu0 %2770  ;;  %7289 = vmatpush3.bf16.msra.mxu1 %v9022_v45  ;;  %7290 = vmatprep.mubr.msk.bf16.mxu1 %vm7986_vm3, %v10686_v19  ;;  %v2806_v45 = vmul.f32 %v7762_v43, %v9059_v23 }
 0x603   : > { %v2818_v49 = vpack.c.bf16 %v2805_v33, %v2804_v24  ;;  %7771 = vrcp.f32 %v2771_v18  ;;  %7300 = vmatprep.subr.bf16.mxu1 %v10686_v19 }
 0x604   : > { %7773 = vrcp.f32 %v2774_v3 }
 0x605   : > { %7285 = vmatmul.mubr.msk.bf16.vlgmr.msra.gmra.mrb[76].mxu0 %vm1631_vm6, %v2818_v49  ;;  %v7764_v48 = vpop.eup %7763 }
 0x606   : > { %v2780_v44 = vpop.xlane.xlu1 %2779  ;;  %7295 = vmatpush3.bf16.msra.mxu0 %v3018_v30  ;;  %v2777_v2 = vpop.xlane.xlu0 %2776  ;;  %7296 = vmatprep.mubr.msk.bf16.mxu0 %vm7986_vm3, %v10686_v19  ;;  %v2807_v24 = vmul.f32 %v7764_v48, %v9069_v14 }
 0x607   : > { %7306 = vmatprep.subr.bf16.mxu0 %v10686_v19  ;;  %v7766_v1 = vpop.eup %7765  ;;  %7775 = vrcp.f32 %v2777_v2 }
 0x608   : > { %7777 = vrcp.f32 %v2780_v44  ;;  %v2819_v13 = vpack.c.bf16 %v2807_v24, %v2806_v45  ;;  %v2808_v5 = vmul.f32 %v7766_v1, %v9067_v60 }
 0x609   : > { %v7768_v15 = vpop.eup %7767 }
 0x60a   : > { %v3343_v26 = vpop.permute.xlu1 %3342  ;;  %v2783_v50 = vpop.xlane.xlu0 %2782  ;;  %v2809_v30 = vmul.f32 %v7768_v15, %v9076_v61  ;;  %7291 = vmatmul.mubr.msk.bf16.vlgmr.msra.gmra.mrb[76].mxu1 %vm1631_vm6, %v2819_v13 }
 0x60b   : > { %7779 = vrcp.f32 %v2783_v50  ;;  %v7770_v63 = vpop.eup %7769  ;;  %7301 = vmatpush3.bf16.msra.mxu1 %v9144_v41  ;;  %7302 = vmatprep.mubr.msk.bf16.mxu1 %vm7986_vm3, %v10686_v19  ;;  %v3348_v24 = vsel %vm672_vm0, %v3343_v26, 0 }
 0x60c   : > { %v2820_v23 = vpack.c.bf16 %v2809_v30, %v2808_v5  ;;  %7312 = vmatprep.subr.bf16.mxu1 %v10686_v19  ;;  %v2810_v33 = vmul.f32 %v7770_v63, %v9078_v59 }
 0x60d   : > { %v7772_v14 = vpop.eup %7771 }
 0x60e   : > { %v3394_v62 = vpop.permute.xlu1 %3393  ;;  %v3292_v39 = vpop.permute.xlu0 %3291  ;;  %v2811_v60 = vmul.f32 %v7772_v14, %v9086_v36  ;;  %7297 = vmatmul.mubr.msk.bf16.vlgmr.msra.gmra.mrb[80].mxu0 %vm1631_vm6, %v2820_v23 }
 0x60f   : > { %v7774_v61 = vpop.eup %7773  ;;  %7307 = vmatpush3.bf16.msra.mxu0 %v9148_v27  ;;  %7308 = vmatprep.mubr.msk.bf16.mxu0 %vm7986_vm3, %v10686_v19 }
 0x610   : > { %v2821_v41 = vpack.c.bf16 %v2811_v60, %v2810_v33  ;;  %7318 = vmatprep.subr.bf16.mxu0 %v10686_v19  ;;  %v2812_v43 = vmul.f32 %v7774_v61, %v9084_v40  ;;  %v3297_v40 = vsel %vm672_vm0, %v3292_v39, 0 }
 0x611   : > { %v7776_v3 = vpop.eup %7775 }
 0x612   : > { %v3290_v18 = vpop.permute.xlu0 %3289  ;;  %v7778_v49 = vpop.eup %7777  ;;  %v2813_v59 = vmul.f32 %v7776_v3, %v9092_v0  ;;  %7303 = vmatmul.mubr.msk.bf16.vlgmr.msra.gmra.mrb[80].mxu1 %vm1631_vm6, %v2821_v41 }
 0x613   : > { %v3445_v36 = vpop.permute.xlu1 %3444  ;;  %7313 = vmatpush3.bf16.msra.mxu1 %v9146_v29  ;;  %7314 = vmatprep.mubr.msk.bf16.mxu1 %vm7986_vm3, %v10686_v19  ;;  %v2814_v44 = vmul.f32 %v7778_v49, %v9094_v4 }
 0x614   : > { %v2822_v48 = vpack.c.bf16 %v2813_v59, %v2812_v43  ;;  %7324 = vmatprep.subr.bf16.mxu1 %v10686_v19  ;;  %v3450_v13 = vsel %vm672_vm0, %v3445_v36, 0 }
 0x615   : > { %v7780_v27 = vpop.eup %7779 }
 0x616   : > { %v2815_v2 = vmul.f32 %v7780_v27, %v9100_v10  ;;  %7309 = vmatmul.mubr.msk.bf16.vlgmr.msra.gmra.mrb[84].mxu0 %vm1631_vm6, %v2822_v48  ;;  %v3341_v0 = vpop.permute.xlu0 %3340  ;;  %v3399_v10 = vsel %vm672_vm0, %v3394_v62, 0 }
 0x617   : > { %7320 = vmatprep.mubr.msk.bf16.mxu0 %vm7986_vm3, %v10686_v19  ;;  %v3496_v29 = vpop.permute.xlu1 %3495 }
 0x618   : > { %v2823_v45 = vpack.c.bf16 %v2815_v2, %v2814_v44  ;;  %7319 = vmatpush3.bf16.xpose.msra.mxu0 %v3297_v40  ;;  %v3501_v50 = vsel %vm672_vm0, %v3496_v29, 0 }
 0x619   : > { %7330 = vmatprep.subr.bf16.mxu0 %v10686_v19 }
 0x61a   : > { %7315 = vmatmul.mubr.msk.bf16.vlgmr.msra.gmra.mrb[84].mxu1 %vm1631_vm6, %v2823_v45  ;;  %v3392_v4 = vpop.permute.xlu0 %3391 }
 0x61b   : > { %7326 = vmatprep.mubr.msk.bf16.mxu1 %vm7986_vm3, %v10686_v19  ;;  %v3547_v1 = vpop.permute.xlu1 %3546 }
 0x61c   : > { %7325 = vmatpush3.bf16.xpose.msra.mxu1 %v3348_v24  ;;  %v3552_v30 = vsel %vm672_vm0, %v3547_v1, 0 }
 0x61d   : > { %7336 = vmatprep.subr.bf16.mxu1 %v10686_v19 }
 0x61e   : > { %v3443_v15 = vpop.permute.xlu0 %3442 }
 0x61f   : > { %7321 = vmatmul.mubr.msk.bf16.vlgmr.msra.gmra.mrb[88].mxu0 %vm672_vm0, %v3290_v18  ;;  %v3598_v26 = vpop.permute.xlu1 %3597 }
 0x620   : > { %7331 = vmatpush3.bf16.xpose.msra.mxu0 %v3399_v10  ;;  %7332 = vmatprep.mubr.msk.bf16.mxu0 %vm7986_vm3, %v10686_v19  ;;  %v3603_v23 = vsel %vm672_vm0, %v3598_v26, 0 }
 0x621   : > { %7342 = vmatprep.subr.bf16.mxu0 %v10686_v19 }
 0x622   : > { %v3494_v5 = vpop.permute.xlu0 %3493 }
 0x623   : > { %7327 = vmatmul.mubr.msk.bf16.vlgmr.msra.gmra.mrb[88].mxu1 %vm672_vm0, %v3341_v0  ;;  %v3649_v63 = vpop.permute.xlu1 %3648 }
 0x624   : > { %7337 = vmatpush3.bf16.xpose.msra.mxu1 %v3450_v13  ;;  %7338 = vmatprep.mubr.msk.bf16.mxu1 %vm7986_vm3, %v10686_v19  ;;  %v3654_v39 = vsel %vm672_vm0, %v3649_v63, 0 }
 0x625   : > { %7348 = vmatprep.subr.bf16.mxu1 %v10686_v19 }
 0x626   : > { %v3545_v14 = vpop.permute.xlu0 %3544 }
 0x627   : > { %7333 = vmatmul.mubr.msk.bf16.vlgmr.msra.gmra.mrb[92].mxu0 %vm672_vm0, %v3392_v4  ;;  %v3647_v62 = vpop.permute.xlu1 %3646 }
 0x628   : > { %7343 = vmatpush3.bf16.xpose.msra.mxu0 %v3501_v50  ;;  %7344 = vmatprep.mubr.msk.bf16.mxu0 %vm7986_vm3, %v10686_v19 }
 0x629   : > { %7354 = vmatprep.subr.bf16.mxu0 %v10686_v19 }
 0x62a   : > { %v3596_v33 = vpop.permute.xlu0 %3595 }
 0x62b   : > { %7339 = vmatmul.mubr.msk.bf16.vlgmr.msra.gmra.mrb[92].mxu1 %vm672_vm0, %v3443_v15  ;;  %v3914_v60 = vpop.permute.xlu1 %3913 }
 0x62c   : > { %7349 = vmatpush3.bf16.xpose.msra.mxu1 %v3552_v30  ;;  %7350 = vmatprep.mubr.msk.bf16.mxu1 %vm7986_vm3, %v10686_v19 }
 0x62d   : > { %7360 = vmatprep.subr.bf16.mxu1 %v10686_v19 }
 0x62e   : > { %v3961_v61 = vpop.permute.xlu0 %3960 }
 0x62f   : > { %7345 = vmatmul.mubr.msk.bf16.vlgmr.msra.gmra.mrb[96].mxu0 %vm672_vm0, %v3494_v5 }
 0x630   : > { %7355 = vmatpush3.bf16.xpose.msra.mxu0 %v3603_v23  ;;  %7356 = vmatprep.mubr.msk.bf16.mxu0 %vm7986_vm3, %v10686_v19 }
 0x631   : > { %7366 = vmatprep.subr.bf16.mxu0 %v10686_v19 }
 0x633   : > { %7351 = vmatmul.mubr.msk.bf16.vlgmr.msra.gmra.mrb[96].mxu1 %vm672_vm0, %v3545_v14 }
 0x634   : > { %7361 = vmatpush3.bf16.xpose.msra.mxu1 %v3654_v39  ;;  %7362 = vmatprep.mubr.msk.bf16.mxu1 %vm7986_vm3, %v10686_v19 }
 0x635   : > { %7372 = vmatprep.subr.bf16.mxu1 %v10686_v19 }
 0x637   : > { %7357 = vmatmul.mubr.msk.bf16.vlgmr.msra.gmra.mrb[100].mxu0 %vm672_vm0, %v3596_v33 }
 0x638   : > { %7367 = vmatpush3.bf16.msra.mxu0 %v3914_v60  ;;  %7368 = vmatprep.mubr.msk.bf16.mxu0 %vm7986_vm3, %v10686_v19 }
 0x639   : > { %7378 = vmatprep.subr.bf16.mxu0 %v10686_v19 }
 0x63b   : > { %7363 = vmatmul.mubr.msk.bf16.vlgmr.msra.gmra.mrb[100].mxu1 %vm672_vm0, %v3647_v62 }
 0x63c   : > { %7373 = vmatpush3.bf16.msra.mxu1 %v3961_v61  ;;  %7374 = vmatprep.mubr.msk.bf16.mxu1 %vm7986_vm3, %v10686_v19 }
 0x63d   : > { %7384 = vmatprep.subr.bf16.mxu1 %v10686_v19 }
 0x6c6   : > { %v9243_v41 = vpop.f32.mrb[72].mxu0 }
 0x6c7   : > { %v7274_v3 = vpop.f32.mrb[73].mxu0 }
 0x6c8   : > { %v9245_v18 = vpop.f32.mrb[74].mxu0 }
 0x6c9   : > { %v7275_v49 = vpop.f32.mrb[75].mxu0 }
 0x6d4   : > { %v9247_v43 = vpop.f32.mrb[72].mxu1 }
 0x6d5   : > { %v7280_v59 = vpop.f32.mrb[73].mxu1 }
 0x6d6   : > { %v9249_v36 = vpop.f32.mrb[74].mxu1 }
 0x6d7   : > { %v7281_v27 = vpop.f32.mrb[75].mxu1 }
 0x6d8   : > { %v9251_v48 = vpop.f32.mrb[76].mxu0 }
 0x6d9   : > { %10687 = vst [vmem:[#allocation20_spill] sm:$0xff] %v9251_v48  ;;  %v7286_v44 = vpop.f32.mrb[77].mxu0 }
 0x6da   : > { %v9253_v2 = vpop.f32.mrb[78].mxu0 }
 0x6db   : > { %v7287_v40 = vpop.f32.mrb[79].mxu0 }
 0x6dd   : > { %v9255_v0 = vpop.f32.mrb[76].mxu1 }
 0x6de   : > { %10688 = vst [vmem:[#allocation21_spill] sm:$0xff] %v9255_v0  ;;  %v7292_v45 = vpop.f32.mrb[77].mxu1 }
 0x6df   : > { %v9257_v29 = vpop.f32.mrb[78].mxu1 }
 0x6e0   : > { %10689 = vst [vmem:[#allocation22_spill] sm:$0xff] %v9257_v29  ;;  %v7293_v24 = vpop.f32.mrb[79].mxu1 }
 0x6e1   : > { %v9259_v4 = vpop.f32.mrb[80].mxu0 }
 0x6e2   : > { %10690 = vst [vmem:[#allocation23_spill] sm:$0xff] %v9259_v4  ;;  %v7298_v10 = vpop.f32.mrb[81].mxu0 }
 0x6e3   : > { %v9261_v1 = vpop.f32.mrb[82].mxu0 }
 0x6e4   : > { %10691 = vst [vmem:[#allocation24_spill] sm:$0xff] %v9261_v1  ;;  %v7299_v13 = vpop.f32.mrb[83].mxu0 }
 0x6e5   : > { %v9263_v15 = vpop.f32.mrb[80].mxu1 }
 0x6e6   : > { %10692 = vst [vmem:[#allocation25_spill] sm:$0xff] %v9263_v15  ;;  %v7304_v26 = vpop.f32.mrb[81].mxu1 }
 0x6e7   : > { %v9265_v50 = vpop.f32.mrb[82].mxu1 }
 0x6e8   : > { %10693 = vst [vmem:[#allocation26_spill] sm:$0xff] %v9265_v50  ;;  %v7305_v5 = vpop.f32.mrb[83].mxu1 }
 0x6e9   : > { %v9267_v30 = vpop.f32.mrb[84].mxu0 }
 0x6ea   : > { %10694 = vst [vmem:[#allocation27_spill] sm:$0xff] %v9267_v30  ;;  %v7310_v63 = vpop.f32.mrb[85].mxu0 }
 0x6eb   : > { %v9269_v23 = vpop.f32.mrb[86].mxu0 }
 0x6ec   : > { %10695 = vst [vmem:[#allocation28_spill] sm:$0xff] %v9269_v23  ;;  %v7311_v14 = vpop.f32.mrb[87].mxu0 }
 0x6ed   : > { %v9271_v62 = vpop.f32.mrb[84].mxu1 }
 0x6ee   : > { %10696 = vst [vmem:[#allocation29_spill] sm:$0xff] %v9271_v62  ;;  %v7316_v39 = vpop.f32.mrb[85].mxu1 }
 0x6ef   : > { %v9273_v33 = vpop.f32.mrb[86].mxu1 }
 0x6f0   : > { %10697 = vst [vmem:[#allocation30_spill] sm:$0xff] %v9273_v33  ;;  %v7317_v60 = vpop.f32.mrb[87].mxu1 }
 0x6f2   : > { %v3333_v61 = vpop.f32.mrb[88].mxu0 }
 0x6f3   : > { %v3697_v3 = vmul.f32 0.17677669, %v3333_v61  ;;  %v7322_v49 = vpop.f32.mrb[89].mxu0 }
 0x6f4   : > { %v3336_v59 = vpop.f32.mrb[90].mxu0 }
 0x6f5   : > { %v9276_v27 = vadd.f32 %v3697_v3, %v8615_v28  ;;  %v3698_v44 = vmul.f32 0.17677669, %v3336_v59  ;;  %v7323_v40 = vpop.f32.mrb[91].mxu0 }
 0x6f6   : > { %v3384_v45 = vpop.f32.mrb[88].mxu1 }
 0x6f7   : > { %v9279_v24 = vadd.f32 %v3698_v44, %v8617_v42  ;;  %v3699_v10 = vmul.f32 0.17677669, %v3384_v45  ;;  %v7328_v13 = vpop.f32.mrb[89].mxu1  ;;  %v3729_v26 = vsel %vm1631_vm6, %v9276_v27, -inf }
 0x6f8   : > { %3730 = vmax.xlane.f32.xlu0 %v3729_v26  ;;  %v3387_v5 = vpop.f32.mrb[90].mxu1 }
 0x6f9   : > { %v9284_v63 = vadd.f32 %v3699_v10, %v8615_v28  ;;  %v3700_v14 = vmul.f32 0.17677669, %v3387_v5  ;;  %v7329_v39 = vpop.f32.mrb[91].mxu1  ;;  %v3732_v60 = vsel %vm1631_vm6, %v9279_v24, -inf }
 0x6fa   : > { %3733 = vmax.xlane.f32.xlu1 %v3732_v60  ;;  %v3435_v61 = vpop.f32.mrb[92].mxu0 }
 0x6fb   : > { %v9289_v3 = vadd.f32 %v3700_v14, %v8617_v42  ;;  %v3701_v49 = vmul.f32 0.17677669, %v3435_v61  ;;  %v7334_v59 = vpop.f32.mrb[93].mxu0  ;;  %v3735_v44 = vsel %vm1631_vm6, %v9284_v63, -inf }
 0x6fc   : > { %v3438_v40 = vpop.f32.mrb[94].mxu0  ;;  %3736 = vmax.xlane.f32.xlu0 %v3735_v44 }
 0x6fd   : > { %v9294_v45 = vadd.f32 %v3701_v49, %v8615_v28  ;;  %v3702_v10 = vmul.f32 0.17677669, %v3438_v40  ;;  %v7335_v13 = vpop.f32.mrb[95].mxu0  ;;  %v3738_v61 = vsel %vm1631_vm6, %v9289_v3, -inf }
 0x6fe   : > { %v3486_v26 = vpop.f32.mrb[92].mxu1 }
 0x6ff   : > { %v9297_v5 = vadd.f32 %v3702_v10, %v8617_v42  ;;  %v3703_v39 = vmul.f32 0.17677669, %v3486_v26  ;;  %v7340_v60 = vpop.f32.mrb[93].mxu1  ;;  %v3741_v14 = vsel %vm1631_vm6, %v9294_v45, -inf }
 0x700   : > { %3742 = vmax.xlane.f32.xlu1 %v3741_v14  ;;  %3739 = vmax.xlane.f32.xlu0 %v3738_v61  ;;  %v3489_v59 = vpop.f32.mrb[94].mxu1 }
 0x701   : > { %v9304_v49 = vadd.f32 %v3703_v39, %v8615_v28  ;;  %v3704_v44 = vmul.f32 0.17677669, %v3489_v59  ;;  %v7341_v40 = vpop.f32.mrb[95].mxu1  ;;  %v3744_v6 = vsel %vm1631_vm6, %v9297_v5, -inf }
 0x702   : > { %v3537_v13 = vpop.f32.mrb[96].mxu0 }
 0x703   : > { %v9307_v10 = vadd.f32 %v3704_v44, %v8617_v42  ;;  %v3705_v26 = vmul.f32 0.17677669, %v3537_v13  ;;  %v7346_v60 = vpop.f32.mrb[97].mxu0  ;;  %v3747_v7 = vsel %vm1631_vm6, %v9304_v49, -inf }
 0x704   : > { %v3540_v14 = vpop.f32.mrb[98].mxu0  ;;  %3745 = vmax.xlane.f32.xlu0 %v3744_v6  ;;  %3748 = vmax.xlane.f32.xlu1 %v3747_v7 }
 0x705   : > { %v9314_v39 = vadd.f32 %v3705_v26, %v8615_v28  ;;  %v3706_v61 = vmul.f32 0.17677669, %v3540_v14  ;;  %v7347_v59 = vpop.f32.mrb[99].mxu0  ;;  %v3750_v55 = vsel %vm1631_vm6, %v9307_v10, -inf }
 0x706   : > { %v3588_v40 = vpop.f32.mrb[96].mxu1 }
 0x707   : > { %v9317_v44 = vadd.f32 %v3706_v61, %v8617_v42  ;;  %v3707_v13 = vmul.f32 0.17677669, %v3588_v40  ;;  %v7352_v60 = vpop.f32.mrb[97].mxu1  ;;  %v3753_v54 = vsel %vm1631_vm6, %v9314_v39, -inf }
 0x708   : > { %3754 = vmax.xlane.f32.xlu1 %v3753_v54  ;;  %3751 = vmax.xlane.f32.xlu0 %v3750_v55  ;;  %v3591_v6 = vpop.f32.mrb[98].mxu1 }
 0x709   : > { %v9324_v7 = vadd.f32 %v3707_v13, %v8615_v28  ;;  %v3708_v26 = vmul.f32 0.17677669, %v3591_v6  ;;  %v7353_v14 = vpop.f32.mrb[99].mxu1  ;;  %v3756_v62 = vsel %vm1631_vm6, %v9317_v44, -inf }
 0x70a   : > { %v3639_v59 = vpop.f32.mrb[100].mxu0 }
 0x70b   : > { %v9327_v61 = vadd.f32 %v3708_v26, %v8617_v42  ;;  %v3709_v40 = vmul.f32 0.17677669, %v3639_v59  ;;  %v7358_v60 = vpop.f32.mrb[101].mxu0  ;;  %v3759_v33 = vsel %vm1631_vm6, %v9324_v7, -inf }
 0x70c   : > { %v3642_v54 = vpop.f32.mrb[102].mxu0  ;;  %3757 = vmax.xlane.f32.xlu0 %v3756_v62  ;;  %3760 = vmax.xlane.f32.xlu1 %v3759_v33 }
 0x70d   : > { %v9334_v55 = vadd.f32 %v3709_v40, %v8615_v28  ;;  %v3710_v13 = vmul.f32 0.17677669, %v3642_v54  ;;  %v7359_v6 = vpop.f32.mrb[103].mxu0  ;;  %v3762_v23 = vsel %vm1631_vm6, %v9327_v61, -inf }
 0x70e   : > { %v3690_v14 = vpop.f32.mrb[100].mxu1 }
 0x70f   : > { %v9337_v26 = vadd.f32 %v3710_v13, %v8617_v42  ;;  %v3711_v59 = vmul.f32 0.17677669, %v3690_v14  ;;  %v7364_v60 = vpop.f32.mrb[101].mxu1  ;;  %v3765_v30 = vsel %vm1631_vm6, %v9334_v55, -inf }
 0x710   : > { %3766 = vmax.xlane.f32.xlu1 %v3765_v30  ;;  %3763 = vmax.xlane.f32.xlu0 %v3762_v23  ;;  %v3693_v62 = vpop.f32.mrb[102].mxu1  ;;  %v9363_v23 = vpop.permute.xlu1 %4007 }
 0x711   : > { %v9344_v33 = vadd.f32 %v3711_v59, %v8615_v28  ;;  %v3712_v40 = vmul.f32 0.17677669, %v3693_v62  ;;  %v7365_v54 = vpop.f32.mrb[103].mxu1  ;;  %v3768_v13 = vsel %vm1631_vm6, %v9337_v26, -inf }
 0x713   : > { %v9347_v6 = vadd.f32 %v3712_v40, %v8617_v42  ;;  %v3771_v14 = vsel %vm1631_vm6, %v9344_v33, -inf }
 0x714   : > { %3769 = vmax.xlane.f32.xlu0 %v3768_v13  ;;  %3772 = vmax.xlane.f32.xlu1 %v3771_v14  ;;  %v9365_v59 = vpop.permute.xlu1 %4054 }
 0x715   : > { %v3774_v30 = vsel %vm1631_vm6, %v9347_v6, -inf }
 0x718   : > { %3775 = vmax.xlane.f32.xlu0 %v3774_v30 }
 0x725   : > { %4148 = vrot.lane.b32.xlu1 %v8555_v56, %s7981_s20 }
 0x729   : > { %4242 = vrot.lane.b32.xlu1 %v8594_v34, %s7981_s20 }
 0x72e   : > { %4101 = vrot.lane.b32.xlu0 %v8561_v58, %s7981_s20 }
 0x732   : > { %4195 = vrot.lane.b32.xlu0 %v8600_v25, %s7981_s20 }
 0x785   : > { %v3731_v60 = vpop.xlane.xlu0 %3730 }
 0x786   : > { %v3777_v62 = vsub.f32 %v9276_v27, %v3731_v60 }
 0x787   : > { %v3734_v40 = vpop.xlane.xlu1 %3733 }
 0x788   : > { %v3793_v54 = vmul.f32 1.442695, %v3777_v62  ;;  %v3778_v13 = vsub.f32 %v9279_v24, %v3734_v40 }
 0x789   : > { %v3737_v14 = vpop.xlane.xlu0 %3736 }
 0x78a   : > { %7781 = vpow2.f32 %v3793_v54  ;;  %v3795_v30 = vmul.f32 1.442695, %v3778_v13  ;;  %v3779_v15 = vsub.f32 %v9284_v63, %v3737_v14 }
 0x78c   : > { %7783 = vpow2.f32 %v3795_v30  ;;  %v3797_v4 = vmul.f32 1.442695, %v3779_v15 }
 0x78d   : > { %v3743_v50 = vpop.xlane.xlu1 %3742  ;;  %v3740_v1 = vpop.xlane.xlu0 %3739 }
 0x78e   : > { %7785 = vpow2.f32 %v3797_v4  ;;  %v3781_v0 = vsub.f32 %v9294_v45, %v3743_v50  ;;  %v3780_v48 = vsub.f32 %v9289_v3, %v3740_v1 }
 0x790   : > { %v3801_v29 = vmul.f32 1.442695, %v3781_v0  ;;  %v3799_v27 = vmul.f32 1.442695, %v3780_v48 }
 0x791   : > { %v3746_v60 = vpop.xlane.xlu0 %3745  ;;  %v3749_v62 = vpop.xlane.xlu1 %3748 }
 0x792   : > { %7787 = vpow2.f32 %v3801_v29  ;;  %v3782_v24 = vsub.f32 %v9297_v5, %v3746_v60  ;;  %v3783_v40 = vsub.f32 %v9304_v49, %v3749_v62 }
 0x793   : > { %7789 = vpow2.f32 %v3799_v27 }
 0x794   : > { %v9374_v63 = vpop.eup %7781  ;;  %v3803_v15 = vmul.f32 1.442695, %v3782_v24  ;;  %v3805_v54 = vmul.f32 1.442695, %v3783_v40 }
 0x795   : > { %v3755_v13 = vpop.xlane.xlu1 %3754  ;;  %v3752_v4 = vpop.xlane.xlu0 %3751  ;;  %v3825_v50 = vsel %vm1631_vm6, %v9374_v63, 0.0 }
 0x796   : > { %v9378_v1 = vpop.eup %7783  ;;  %7791 = vpow2.f32 %v3803_v15  ;;  %v3785_v48 = vsub.f32 %v9314_v39, %v3755_v13  ;;  %v3784_v0 = vsub.f32 %v9307_v10, %v3752_v4  ;;  %3826 = vadd.xlane.f32.xlu1 %v3825_v50 }
 0x797   : > { %7793 = vpow2.f32 %v3805_v54  ;;  %v3828_v29 = vsel %vm1631_vm6, %v9378_v1, 0.0 }
 0x798   : > { %v9384_v3 = vpop.eup %7785  ;;  %v3809_v45 = vmul.f32 1.442695, %v3785_v48  ;;  %v3807_v5 = vmul.f32 1.442695, %v3784_v0  ;;  %3829 = vadd.xlane.f32.xlu0 %v3828_v29 }
 0x799   : > { %v3758_v49 = vpop.xlane.xlu0 %3757  ;;  %v3761_v14 = vpop.xlane.xlu1 %3760  ;;  %v3831_v30 = vsel %vm1631_vm6, %v9384_v3, 0.0 }
 0x79a   : > { %7795 = vpow2.f32 %v3809_v45  ;;  %v3786_v39 = vsub.f32 %v9317_v44, %v3758_v49  ;;  %v3787_v10 = vsub.f32 %v9324_v7, %v3761_v14  ;;  %3832 = vadd.xlane.f32.xlu1 %v3831_v30 }
 0x79b   : > { %7797 = vpow2.f32 %v3807_v5 }
 0x79c   : > { %v9390_v27 = vpop.eup %7787  ;;  %v3811_v60 = vmul.f32 1.442695, %v3786_v39  ;;  %v3813_v62 = vmul.f32 1.442695, %v3787_v10 }
 0x79d   : > { %v9392_v24 = vpop.eup %7789  ;;  %v3767_v40 = vpop.xlane.xlu1 %3766  ;;  %v3837_v54 = vsel %vm1631_vm6, %v9390_v27, 0.0 }
 0x79e   : > { %v3764_v15 = vpop.xlane.xlu0 %3763  ;;  %7799 = vpow2.f32 %v3811_v60  ;;  %v3789_v13 = vsub.f32 %v9334_v55, %v3767_v40  ;;  %3838 = vadd.xlane.f32.xlu1 %v3837_v54  ;;  %v3834_v7 = vsel %vm1631_vm6, %v9392_v24, 0.0 }
 0x79f   : > { %v3788_v44 = vsub.f32 %v9327_v61, %v3764_v15  ;;  %7801 = vpow2.f32 %v3813_v62  ;;  %3835 = vadd.xlane.f32.xlu0 %v3834_v7 }
 0x7a0   : > { %v9400_v4 = vpop.eup %7791  ;;  %v3817_v50 = vmul.f32 1.442695, %v3789_v13 }
 0x7a1   : > { %v3815_v48 = vmul.f32 1.442695, %v3788_v44  ;;  %v9402_v0 = vpop.eup %7793  ;;  %v3773_v45 = vpop.xlane.xlu1 %3772  ;;  %v3840_v5 = vsel %vm1631_vm6, %v9400_v4, 0.0 }
 0x7a2   : > { %v3770_v29 = vpop.xlane.xlu0 %3769  ;;  %7803 = vpow2.f32 %v3817_v50  ;;  %v3791_v55 = vsub.f32 %v9344_v33, %v3773_v45  ;;  %v3843_v49 = vsel %vm1631_vm6, %v9402_v0, 0.0 }
 0x7a3   : > { %v3790_v61 = vsub.f32 %v9337_v26, %v3770_v29  ;;  %7805 = vpow2.f32 %v3815_v48  ;;  %3844 = vadd.xlane.f32.xlu1 %v3843_v49  ;;  %3841 = vadd.xlane.f32.xlu0 %v3840_v5 }
 0x7a4   : > { %v9410_v14 = vpop.eup %7795  ;;  %v3821_v39 = vmul.f32 1.442695, %v3791_v55 }
 0x7a5   : > { %v3819_v30 = vmul.f32 1.442695, %v3790_v61  ;;  %v9412_v10 = vpop.eup %7797  ;;  %v3849_v62 = vsel %vm1631_vm6, %v9410_v14, 0.0 }
 0x7a6   : > { %v3776_v60 = vpop.xlane.xlu0 %3775  ;;  %v3846_v33 = vsel %vm1631_vm6, %v9412_v10, 0.0 }
 0x7a7   : > { %7807 = vpow2.f32 %v3819_v30  ;;  %v3792_v26 = vsub.f32 %v9347_v6, %v3776_v60  ;;  %3850 = vadd.xlane.f32.xlu1 %v3849_v62  ;;  %3847 = vadd.xlane.f32.xlu0 %v3846_v33 }
 0x7a8   : > { %7809 = vpow2.f32 %v3821_v39  ;;  %v9419_v40 = vpop.eup %7799 }
 0x7a9   : > { %v3823_v15 = vmul.f32 1.442695, %v3792_v26  ;;  %v9421_v54 = vpop.eup %7801  ;;  %v3852_v13 = vsel %vm1631_vm6, %v9419_v40, 0.0 }
 0x7aa   : > { %v3855_v44 = vsel %vm1631_vm6, %v9421_v54, 0.0 }
 0x7ab   : > { %7811 = vpow2.f32 %v3823_v15  ;;  %3856 = vadd.xlane.f32.xlu1 %v3855_v44  ;;  %3853 = vadd.xlane.f32.xlu0 %v3852_v13 }
 0x7ac   : > { %v9427_v6 = vpop.eup %7803 }
 0x7ad   : > { %v9429_v7 = vpop.eup %7805  ;;  %v3861_v50 = vsel %vm1631_vm6, %v9427_v6, 0.0 }
 0x7ae   : > { %v3858_v48 = vsel %vm1631_vm6, %v9429_v7, 0.0 }
 0x7af   : > { %3862 = vadd.xlane.f32.xlu1 %v3861_v50  ;;  %3859 = vadd.xlane.f32.xlu0 %v3858_v48 }
 0x7b1   : > { %v9435_v29 = vpop.eup %7807 }
 0x7b2   : > { %v9437_v45 = vpop.eup %7809  ;;  %v3864_v5 = vsel %vm1631_vm6, %v9435_v29, 0.0 }
 0x7b3   : > { %v3867_v61 = vsel %vm1631_vm6, %v9437_v45, 0.0  ;;  %3865 = vadd.xlane.f32.xlu0 %v3864_v5 }
 0x7b4   : > { %3868 = vadd.xlane.f32.xlu1 %v3867_v61 }
 0x7b5   : > { %v9443_v55 = vpop.eup %7811 }
 0x7b6   : > { %v3870_v49 = vsel %vm1631_vm6, %v9443_v55, 0.0 }
 0x7b7   : > { %3871 = vadd.xlane.f32.xlu0 %v3870_v49 }
 0x7c5   : > { %4423 = vrot.lane.b32.xlu1 %v8483_v32, %s7982_s21 }
 0x7c9   : > { %4421 = vrot.lane.b32.xlu1 %v8477_v31, %s7982_s21 }
 0x7cd   : > { %4525 = vrot.lane.b32.xlu1 %v8521_v38, %s7982_s21  ;;  %4372 = vrot.lane.b32.xlu0 %v8459_v17, %s7982_s21  ;;  %v4102_v17 = vpop.permute.xlu0 %4101 }
 0x7d1   : > { %4523 = vrot.lane.b32.xlu1 %v8515_v37, %s7982_s21  ;;  %4370 = vrot.lane.b32.xlu0 %v8457_v16, %s7982_s21  ;;  %v9481_v16 = vpop.permute.xlu1 %4148  ;;  %v9485_v32 = vpop.permute.xlu0 %4195 }
 0x7d5   : > { %4627 = vrot.lane.b32.xlu1 %v8559_v57, %s7982_s21  ;;  %4474 = vrot.lane.b32.xlu0 %v8500_v11, %s7982_s21  ;;  %v9483_v31 = vpop.permute.xlu1 %4242 }
 0x7d9   : > { %4625 = vrot.lane.b32.xlu1 %v8553_v53, %s7982_s21  ;;  %4472 = vrot.lane.b32.xlu0 %v8496_v9, %s7982_s21 }
 0x7dd   : > { %4729 = vrot.lane.b32.xlu1 %v8598_v20, %s7982_s21  ;;  %4576 = vrot.lane.b32.xlu0 %v8538_v12, %s7982_s21 }
 0x7e1   : > { %4727 = vrot.lane.b32.xlu1 %v8591_v35, %s7982_s21  ;;  %4574 = vrot.lane.b32.xlu0 %v8534_v8, %s7982_s21 }
 0x7e5   : > { %4994 = vrot.lane.b32.xlu1 %v8485_v52, %s7982_s21  ;;  %4678 = vrot.lane.b32.xlu0 %v8576_v22, %s7982_s21 }
 0x7e9   : > { %4676 = vrot.lane.b32.xlu0 %v8572_v21, %s7982_s21 }
 0x823   : > { %v3827_v9 = vpop.xlane.xlu1 %3826 }
 0x824   : > { %7813 = vrcp.f32 %v3827_v9 }
 0x825   : > { %v3830_v11 = vpop.xlane.xlu0 %3829 }
 0x826   : > { %7815 = vrcp.f32 %v3830_v11 }
 0x827   : > { %v3833_v37 = vpop.xlane.xlu1 %3832 }
 0x828   : > { %7817 = vrcp.f32 %v3833_v37 }
 0x82b   : > { %v3839_v52 = vpop.xlane.xlu1 %3838 }
 0x82c   : > { %v3836_v38 = vpop.xlane.xlu0 %3835 }
 0x82d   : > { %7819 = vrcp.f32 %v3836_v38 }
 0x82e   : > { %v7814_v8 = vpop.eup %7813  ;;  %7821 = vrcp.f32 %v3839_v52 }
 0x82f   : > { %v3889_v21 = vmul.f32 %v7814_v8, %v9374_v63 }
 0x830   : > { %v7816_v12 = vpop.eup %7815  ;;  %v3845_v53 = vpop.xlane.xlu1 %3844 }
 0x831   : > { %v3842_v57 = vpop.xlane.xlu0 %3841  ;;  %v3890_v22 = vmul.f32 %v7816_v12, %v9378_v1 }
 0x832   : > { %7823 = vrcp.f32 %v3842_v57  ;;  %v7818_v39 = vpop.eup %7817 }
 0x833   : > { %v3905_v35 = vpack.c.bf16 %v3890_v22, %v3889_v21  ;;  %7825 = vrcp.f32 %v3845_v53  ;;  %v3891_v63 = vmul.f32 %v7818_v39, %v9384_v3 }
 0x834   : > { %v3851_v20 = vpop.xlane.xlu1 %3850 }
 0x835   : > { %v3848_v30 = vpop.xlane.xlu0 %3847  ;;  %7369 = vmatmul.mubr.msk.bf16.vlgmr.msra.gmra.mrb[104].mxu0 %vm1631_vm6, %v3905_v35 }
 0x836   : > { %7827 = vrcp.f32 %v3848_v30  ;;  %7379 = vmatpush3.bf16.msra.mxu0 %v9363_v23  ;;  %7380 = vmatprep.mubr.msk.bf16.mxu0 %vm7986_vm3, %v10686_v19 }
 0x837   : > { %v7820_v60 = vpop.eup %7819  ;;  %7390 = vmatprep.subr.bf16.mxu0 %v10686_v19  ;;  %7829 = vrcp.f32 %v3851_v20 }
 0x838   : > { %v3892_v1 = vmul.f32 %v7820_v60, %v9392_v24  ;;  %v3857_v62 = vpop.xlane.xlu1 %3856  ;;  %v7822_v33 = vpop.eup %7821 }
 0x839   : > { %v3854_v26 = vpop.xlane.xlu0 %3853  ;;  %v3893_v50 = vmul.f32 %v7822_v33, %v9390_v27 }
 0x83a   : > { %7831 = vrcp.f32 %v3854_v26  ;;  %v3906_v15 = vpack.c.bf16 %v3892_v1, %v3891_v63 }
 0x83b   : > { %7833 = vrcp.f32 %v3857_v62 }
 0x83c   : > { %v7824_v13 = vpop.eup %7823  ;;  %v3863_v44 = vpop.xlane.xlu1 %3862  ;;  %7375 = vmatmul.mubr.msk.bf16.vlgmr.msra.gmra.mrb[104].mxu1 %vm1631_vm6, %v3906_v15 }
 0x83d   : > { %v3860_v23 = vpop.xlane.xlu0 %3859  ;;  %v3894_v48 = vmul.f32 %v7824_v13, %v9400_v4  ;;  %7385 = vmatpush3.bf16.msra.mxu1 %v9365_v59  ;;  %7386 = vmatprep.mubr.msk.bf16.mxu1 %vm7986_vm3, %v10686_v19  ;;  %v7826_v3 = vpop.eup %7825 }
 0x83e   : > { %7835 = vrcp.f32 %v3860_v23  ;;  %7396 = vmatprep.subr.bf16.mxu1 %v10686_v19  ;;  %v3895_v9 = vmul.f32 %v7826_v3, %v9402_v0 }
 0x83f   : > { %v3907_v24 = vpack.c.bf16 %v3894_v48, %v3893_v50  ;;  %7837 = vrcp.f32 %v3863_v44 }
 0x840   : > { %v7828_v5 = vpop.eup %7827 }
 0x841   : > { %v3869_v61 = vpop.xlane.xlu1 %3868  ;;  %v3866_v49 = vpop.xlane.xlu0 %3865  ;;  %v3896_v27 = vmul.f32 %v7828_v5, %v9412_v10  ;;  %7381 = vmatmul.mubr.msk.bf16.vlgmr.msra.gmra.mrb[108].mxu0 %vm1631_vm6, %v3907_v24 }
 0x842   : > { %v7830_v4 = vpop.eup %7829  ;;  %7391 = vmatpush3.bf16.msra.mxu0 %v4102_v17  ;;  %7839 = vrcp.f32 %v3866_v49  ;;  %7392 = vmatprep.mubr.msk.bf16.mxu0 %vm7986_vm3, %v10686_v19 }
 0x843   : > { %7841 = vrcp.f32 %v3869_v61  ;;  %v3908_v59 = vpack.c.bf16 %v3896_v27, %v3895_v9  ;;  %7402 = vmatprep.subr.bf16.mxu0 %v10686_v19  ;;  %v3897_v38 = vmul.f32 %v7830_v4, %v9410_v14 }
 0x844   : > { %v7832_v11 = vpop.eup %7831 }
 0x845   : > { %v4424_v37 = vpop.permute.xlu1 %4423  ;;  %v3872_v52 = vpop.xlane.xlu0 %3871  ;;  %v3898_v0 = vmul.f32 %v7832_v11, %v9419_v40  ;;  %7387 = vmatmul.mubr.msk.bf16.vlgmr.msra.gmra.mrb[108].mxu1 %vm1631_vm6, %v3908_v59 }
 0x846   : > { %7843 = vrcp.f32 %v3872_v52  ;;  %v7834_v10 = vpop.eup %7833  ;;  %7397 = vmatpush3.bf16.msra.mxu1 %v9481_v16  ;;  %7398 = vmatprep.mubr.msk.bf16.mxu1 %vm7986_vm3, %v10686_v19 }
 0x847   : > { %v3909_v17 = vpack.c.bf16 %v3898_v0, %v3897_v38  ;;  %7408 = vmatprep.subr.bf16.mxu1 %v10686_v19  ;;  %v3899_v57 = vmul.f32 %v7834_v10, %v9421_v54 }
 0x848   : > { %v7836_v8 = vpop.eup %7835 }
 0x849   : > { %v4422_v12 = vpop.permute.xlu1 %4421  ;;  %v4373_v53 = vpop.permute.xlu0 %4372  ;;  %v3900_v14 = vmul.f32 %v7836_v8, %v9429_v7  ;;  %7393 = vmatmul.mubr.msk.bf16.vlgmr.msra.gmra.mrb[112].mxu0 %vm1631_vm6, %v3909_v17 }
 0x84a   : > { %v7838_v40 = vpop.eup %7837  ;;  %7403 = vmatpush3.bf16.msra.mxu0 %v9485_v32  ;;  %7404 = vmatprep.mubr.msk.bf16.mxu0 %vm7986_vm3, %v10686_v19 }
 0x84b   : > { %v3910_v16 = vpack.c.bf16 %v3900_v14, %v3899_v57  ;;  %7414 = vmatprep.subr.bf16.mxu0 %v10686_v19  ;;  %v3901_v20 = vmul.f32 %v7838_v40, %v9427_v6  ;;  %v4378_v6 = vsel %vm672_vm0, %v4373_v53, 0 }
 0x84c   : > { %v7840_v21 = vpop.eup %7839 }
 0x84d   : > { %v4371_v22 = vpop.permute.xlu0 %4370  ;;  %v7842_v35 = vpop.eup %7841  ;;  %v3902_v54 = vmul.f32 %v7840_v21, %v9435_v29  ;;  %7399 = vmatmul.mubr.msk.bf16.vlgmr.msra.gmra.mrb[112].mxu1 %vm1631_vm6, %v3910_v16 }
 0x84e   : > { %v4526_v7 = vpop.permute.xlu1 %4525  ;;  %7409 = vmatpush3.bf16.msra.mxu1 %v9483_v31  ;;  %7410 = vmatprep.mubr.msk.bf16.mxu1 %vm7986_vm3, %v10686_v19  ;;  %v3903_v39 = vmul.f32 %v7842_v35, %v9437_v45  ;;  %v4429_v45 = vsel %vm672_vm0, %v4424_v37, 0 }
 0x84f   : > { %v3911_v30 = vpack.c.bf16 %v3902_v54, %v3901_v20  ;;  %7420 = vmatprep.subr.bf16.mxu1 %v10686_v19  ;;  %v4531_v33 = vsel %vm672_vm0, %v4526_v7, 0 }
 0x850   : > { %v7844_v32 = vpop.eup %7843 }
 0x851   : > { %v3904_v60 = vmul.f32 %v7844_v32, %v9443_v55  ;;  %v4475_v63 = vpop.permute.xlu0 %4474  ;;  %7405 = vmatmul.mubr.msk.bf16.vlgmr.msra.gmra.mrb[116].mxu0 %vm1631_vm6, %v3911_v30 }
 0x852   : > { %7416 = vmatprep.mubr.msk.bf16.mxu0 %vm7986_vm3, %v10686_v19  ;;  %v4524_v31 = vpop.permute.xlu1 %4523  ;;  %v4480_v55 = vsel %vm672_vm0, %v4475_v63, 0 }
 0x853   : > { %v3912_v29 = vpack.c.bf16 %v3904_v60, %v3903_v39  ;;  %7415 = vmatpush3.bf16.xpose.msra.mxu0 %v4378_v6 }
 0x854   : > { %7426 = vmatprep.subr.bf16.mxu0 %v10686_v19 }
 0x855   : > { %7411 = vmatmul.mubr.msk.bf16.vlgmr.msra.gmra.mrb[116].mxu1 %vm1631_vm6, %v3912_v29  ;;  %v4473_v1 = vpop.permute.xlu0 %4472 }
 0x856   : > { %7422 = vmatprep.mubr.msk.bf16.mxu1 %vm7986_vm3, %v10686_v19  ;;  %v4628_v62 = vpop.permute.xlu1 %4627 }
 0x857   : > { %7421 = vmatpush3.bf16.xpose.msra.mxu1 %v4429_v45  ;;  %v4633_v23 = vsel %vm672_vm0, %v4628_v62, 0 }
 0x858   : > { %7432 = vmatprep.subr.bf16.mxu1 %v10686_v19 }
 0x859   : > { %v4577_v26 = vpop.permute.xlu0 %4576 }
 0x85a   : > { %7417 = vmatmul.mubr.msk.bf16.vlgmr.msra.gmra.mrb[120].mxu0 %vm672_vm0, %v4371_v22  ;;  %v4626_v15 = vpop.permute.xlu1 %4625  ;;  %v4582_v44 = vsel %vm672_vm0, %v4577_v26, 0 }
 0x85b   : > { %7427 = vmatpush3.bf16.xpose.msra.mxu0 %v4480_v55  ;;  %7428 = vmatprep.mubr.msk.bf16.mxu0 %vm7986_vm3, %v10686_v19 }
 0x85c   : > { %7438 = vmatprep.subr.bf16.mxu0 %v10686_v19 }
 0x85d   : > { %v4575_v13 = vpop.permute.xlu0 %4574 }
 0x85e   : > { %7423 = vmatmul.mubr.msk.bf16.vlgmr.msra.gmra.mrb[120].mxu1 %vm672_vm0, %v4422_v12  ;;  %v4730_v50 = vpop.permute.xlu1 %4729 }
 0x85f   : > { %7433 = vmatpush3.bf16.xpose.msra.mxu1 %v4531_v33  ;;  %7434 = vmatprep.mubr.msk.bf16.mxu1 %vm7986_vm3, %v10686_v19  ;;  %v4735_v5 = vsel %vm672_vm0, %v4730_v50, 0 }
 0x860   : > { %7444 = vmatprep.subr.bf16.mxu1 %v10686_v19 }
 0x861   : > { %v4679_v48 = vpop.permute.xlu0 %4678 }
 0x862   : > { %7429 = vmatmul.mubr.msk.bf16.vlgmr.msra.gmra.mrb[124].mxu0 %vm672_vm0, %v4473_v1  ;;  %v4684_v3 = vsel %vm672_vm0, %v4679_v48, 0  ;;  %v4728_v24 = vpop.permute.xlu1 %4727 }
 0x863   : > { %7439 = vmatpush3.bf16.xpose.msra.mxu0 %v4582_v44  ;;  %7440 = vmatprep.mubr.msk.bf16.mxu0 %vm7986_vm3, %v10686_v19 }
 0x864   : > { %7450 = vmatprep.subr.bf16.mxu0 %v10686_v19 }
 0x865   : > { %v4677_v61 = vpop.permute.xlu0 %4676 }
 0x866   : > { %7435 = vmatmul.mubr.msk.bf16.vlgmr.msra.gmra.mrb[124].mxu1 %vm672_vm0, %v4524_v31  ;;  %v4995_v49 = vpop.permute.xlu1 %4994 }
 0x867   : > { %7445 = vmatpush3.bf16.xpose.msra.mxu1 %v4633_v23  ;;  %7446 = vmatprep.mubr.msk.bf16.mxu1 %vm7986_vm3, %v10686_v19 }
 0x868   : > { %7456 = vmatprep.subr.bf16.mxu1 %v10686_v19 }
 0x86a   : > { %7441 = vmatmul.mubr.msk.bf16.vlgmr.msra.gmra.mrb[128].mxu0 %vm672_vm0, %v4575_v13 }
 0x86b   : > { %7451 = vmatpush3.bf16.xpose.msra.mxu0 %v4684_v3  ;;  %7452 = vmatprep.mubr.msk.bf16.mxu0 %vm7986_vm3, %v10686_v19 }
 0x86c   : > { %7462 = vmatprep.subr.bf16.mxu0 %v10686_v19 }
 0x86e   : > { %7447 = vmatmul.mubr.msk.bf16.vlgmr.msra.gmra.mrb[128].mxu1 %vm672_vm0, %v4626_v15 }
 0x86f   : > { %7457 = vmatpush3.bf16.xpose.msra.mxu1 %v4735_v5  ;;  %7458 = vmatprep.mubr.msk.bf16.mxu1 %vm7986_vm3, %v10686_v19 }
 0x870   : > { %7468 = vmatprep.subr.bf16.mxu1 %v10686_v19 }
 0x872   : > { %7453 = vmatmul.mubr.msk.bf16.vlgmr.msra.gmra.mrb[132].mxu0 %vm672_vm0, %v4677_v61 }
 0x873   : > { %7463 = vmatpush3.bf16.msra.mxu0 %v4995_v49  ;;  %7464 = vmatprep.mubr.msk.bf16.mxu0 %vm7986_vm3, %v10686_v19 }
 0x874   : > { %7474 = vmatprep.subr.bf16.mxu0 %v10686_v19 }
 0x876   : > { %7459 = vmatmul.mubr.msk.bf16.vlgmr.msra.gmra.mrb[132].mxu1 %vm672_vm0, %v4728_v24 }
 0x877   : > { %7470 = vmatprep.mubr.msk.bf16.mxu1 %vm7986_vm3, %v10686_v19 }
 0x908   : > { %v9579_v9 = vpop.f32.mrb[104].mxu0 }
 0x909   : > { %v7370_v27 = vpop.f32.mrb[105].mxu0 }
 0x90a   : > { %v9581_v4 = vpop.f32.mrb[106].mxu0 }
 0x90b   : > { %v7371_v59 = vpop.f32.mrb[107].mxu0 }
 0x90f   : > { %v9583_v11 = vpop.f32.mrb[104].mxu1 }
 0x910   : > { %v7376_v37 = vpop.f32.mrb[105].mxu1 }
 0x911   : > { %v9585_v52 = vpop.f32.mrb[106].mxu1 }
 0x912   : > { %v7377_v38 = vpop.f32.mrb[107].mxu1 }
 0x914   : > { %v9587_v0 = vpop.f32.mrb[108].mxu0 }
 0x915   : > { %v7382_v10 = vpop.f32.mrb[109].mxu0 }
 0x916   : > { %v9589_v17 = vpop.f32.mrb[110].mxu0 }
 0x917   : > { %v7383_v8 = vpop.f32.mrb[111].mxu0 }
 0x918   : > { %v9591_v12 = vpop.f32.mrb[108].mxu1 }
 0x919   : > { %v7388_v53 = vpop.f32.mrb[109].mxu1 }
 0x91a   : > { %v9593_v57 = vpop.f32.mrb[110].mxu1 }
 0x91b   : > { %v7389_v14 = vpop.f32.mrb[111].mxu1 }
 0x91c   : > { %v9595_v40 = vpop.f32.mrb[112].mxu0 }
 0x91d   : > { %v7394_v16 = vpop.f32.mrb[113].mxu0 }
 0x91e   : > { %v9597_v21 = vpop.f32.mrb[114].mxu0 }
 0x91f   : > { %v7395_v22 = vpop.f32.mrb[115].mxu0 }
 0x920   : > { %v9599_v35 = vpop.f32.mrb[112].mxu1 }
 0x921   : > { %v7400_v20 = vpop.f32.mrb[113].mxu1 }
 0x922   : > { %v9601_v54 = vpop.f32.mrb[114].mxu1 }
 0x923   : > { %v7401_v7 = vpop.f32.mrb[115].mxu1 }
 0x924   : > { %v9603_v32 = vpop.f32.mrb[116].mxu0 }
 0x925   : > { %v7406_v30 = vpop.f32.mrb[117].mxu0 }
 0x926   : > { %v9605_v39 = vpop.f32.mrb[118].mxu0 }
 0x927   : > { %v7407_v60 = vpop.f32.mrb[119].mxu0 }
 0x928   : > { %v9607_v63 = vpop.f32.mrb[116].mxu1 }
 0x929   : > { %v7412_v6 = vpop.f32.mrb[117].mxu1 }
 0x92a   : > { %v9609_v29 = vpop.f32.mrb[118].mxu1 }
 0x92b   : > { %v7413_v31 = vpop.f32.mrb[119].mxu1 }
 0x92d   : > { %v4414_v1 = vpop.f32.mrb[120].mxu0 }
 0x92e   : > { %v4778_v45 = vmul.f32 0.17677669, %v4414_v1  ;;  %v7418_v55 = vpop.f32.mrb[121].mxu0 }
 0x92f   : > { %v4417_v62 = vpop.f32.mrb[122].mxu0 }
 0x930   : > { %v9612_v26 = vadd.f32 %v4778_v45, %v8615_v28  ;;  %v4779_v33 = vmul.f32 0.17677669, %v4417_v62  ;;  %v7419_v15 = vpop.f32.mrb[123].mxu0 }
 0x931   : > { %v4465_v13 = vpop.f32.mrb[120].mxu1 }
 0x932   : > { %v9615_v44 = vadd.f32 %v4779_v33, %v8617_v42  ;;  %v4780_v23 = vmul.f32 0.17677669, %v4465_v13  ;;  %v7424_v50 = vpop.f32.mrb[121].mxu1  ;;  %v4810_v48 = vsel %vm1631_vm6, %v9612_v26, -inf }
 0x933   : > { %4811 = vmax.xlane.f32.xlu0 %v4810_v48  ;;  %v4468_v3 = vpop.f32.mrb[122].mxu1 }
 0x934   : > { %v9620_v24 = vadd.f32 %v4780_v23, %v8615_v28  ;;  %v4781_v5 = vmul.f32 0.17677669, %v4468_v3  ;;  %v7425_v61 = vpop.f32.mrb[123].mxu1  ;;  %v4813_v49 = vsel %vm1631_vm6, %v9615_v44, -inf }
 0x935   : > { %4814 = vmax.xlane.f32.xlu1 %v4813_v49  ;;  %v4516_v27 = vpop.f32.mrb[124].mxu0 }
 0x936   : > { %v9625_v59 = vadd.f32 %v4781_v5, %v8617_v42  ;;  %v4782_v37 = vmul.f32 0.17677669, %v4516_v27  ;;  %v7430_v38 = vpop.f32.mrb[125].mxu0  ;;  %v4816_v10 = vsel %vm1631_vm6, %v9620_v24, -inf }
 0x937   : > { %v4519_v8 = vpop.f32.mrb[126].mxu0  ;;  %4817 = vmax.xlane.f32.xlu0 %v4816_v10 }
 0x938   : > { %v9630_v53 = vadd.f32 %v4782_v37, %v8615_v28  ;;  %v4783_v14 = vmul.f32 0.17677669, %v4519_v8  ;;  %v7431_v16 = vpop.f32.mrb[127].mxu0  ;;  %v4819_v6 = vsel %vm1631_vm6, %v9625_v59, -inf }
 0x939   : > { %v4567_v22 = vpop.f32.mrb[124].mxu1 }
 0x93a   : > { %v9633_v20 = vadd.f32 %v4783_v14, %v8617_v42  ;;  %v4784_v7 = vmul.f32 0.17677669, %v4567_v22  ;;  %v7436_v30 = vpop.f32.mrb[125].mxu1  ;;  %v4822_v60 = vsel %vm1631_vm6, %v9630_v53, -inf }
 0x93b   : > { %4823 = vmax.xlane.f32.xlu1 %v4822_v60  ;;  %4820 = vmax.xlane.f32.xlu0 %v4819_v6  ;;  %v4570_v31 = vpop.f32.mrb[126].mxu1 }
 0x93c   : > { %v9640_v1 = vadd.f32 %v4784_v7, %v8615_v28  ;;  %v4785_v45 = vmul.f32 0.17677669, %v4570_v31  ;;  %v7437_v55 = vpop.f32.mrb[127].mxu1  ;;  %v4825_v23 = vsel %vm1631_vm6, %v9633_v20, -inf }
 0x93d   : > { %v4618_v62 = vpop.f32.mrb[128].mxu0 }
 0x93e   : > { %v9643_v33 = vadd.f32 %v4785_v45, %v8617_v42  ;;  %v4786_v15 = vmul.f32 0.17677669, %v4618_v62  ;;  %v7442_v13 = vpop.f32.mrb[129].mxu0  ;;  %v4828_v50 = vsel %vm1631_vm6, %v9640_v1, -inf }
 0x93f   : > { %v4621_v48 = vpop.f32.mrb[130].mxu0  ;;  %4826 = vmax.xlane.f32.xlu0 %v4825_v23  ;;  %4829 = vmax.xlane.f32.xlu1 %v4828_v50 }
 0x940   : > { %v9650_v3 = vadd.f32 %v4786_v15, %v8615_v28  ;;  %v7443_v5 = vpop.f32.mrb[131].mxu0  ;;  %v4831_v38 = vsel %vm1631_vm6, %v9643_v33, -inf  ;;  %v4787_v62 = vmul.f32 0.17677669, %v4621_v48 }
 0x941   : > { %v4669_v61 = vpop.f32.mrb[128].mxu1 }
 0x942   : > { %v4788_v49 = vmul.f32 0.17677669, %v4669_v61  ;;  %v7448_v27 = vpop.f32.mrb[129].mxu1  ;;  %v4834_v37 = vsel %vm1631_vm6, %v9650_v3, -inf  ;;  %v9666_v13 = vadd.f32 %v4787_v62, %v8617_v42 }
 0x943   : > { %4835 = vmax.xlane.f32.xlu1 %v4834_v37  ;;  %4832 = vmax.xlane.f32.xlu0 %v4831_v38  ;;  %v4672_v10 = vpop.f32.mrb[130].mxu1 }
 0x944   : > { %v9657_v8 = vadd.f32 %v4788_v49, %v8615_v28  ;;  %v7449_v14 = vpop.f32.mrb[131].mxu1  ;;  %v4789_v15 = vmul.f32 0.17677669, %v4672_v10 }
 0x945   : > { %v4720_v16 = vpop.f32.mrb[132].mxu0 }
 0x946   : > { %v7454_v22 = vpop.f32.mrb[133].mxu0  ;;  %v4840_v7 = vsel %vm1631_vm6, %v9657_v8, -inf  ;;  %v4790_v23 = vmul.f32 0.17677669, %v4720_v16  ;;  %v9669_v50 = vadd.f32 %v4789_v15, %v8617_v42 }
 0x947   : > { %v4723_v30 = vpop.f32.mrb[134].mxu0  ;;  %4841 = vmax.xlane.f32.xlu1 %v4840_v7 }
 0x948   : > { %v7455_v60 = vpop.f32.mrb[135].mxu0  ;;  %v9672_v5 = vadd.f32 %v4790_v23, %v8615_v28  ;;  %v4791_v61 = vmul.f32 0.17677669, %v4723_v30 }
 0x949   : > { %v4771_v6 = vpop.f32.mrb[132].mxu1 }
 0x94a   : > { %v7460_v31 = vpop.f32.mrb[133].mxu1  ;;  %v4792_v49 = vmul.f32 0.17677669, %v4771_v6  ;;  %v9679_v48 = vadd.f32 %v4791_v61, %v8617_v42  ;;  %v4846_v38 = vsel %vm1631_vm6, %v9672_v5, -inf }
 0x94b   : > { %v4774_v45 = vpop.f32.mrb[134].mxu1 }
 0x94c   : > { %v7461_v55 = vpop.f32.mrb[135].mxu1  ;;  %v9682_v27 = vadd.f32 %v4792_v49, %v8615_v28  ;;  %v4793_v37 = vmul.f32 0.17677669, %v4774_v45  ;;  %v4849_v14 = vsel %vm1631_vm6, %v9679_v48, -inf }
 0x94e   : > { %v9687_v10 = vadd.f32 %v4793_v37, %v8617_v42  ;;  %v4852_v16 = vsel %vm1631_vm6, %v9682_v27, -inf }
 0x950   : > { %v4855_v28 = vsel %vm1631_vm6, %v9687_v10, -inf }
 0x958   : > { %5088 = vrot.lane.b32.xlu1 %v8523_v47, %s7982_s21  ;;  %v4837_v47 = vsel %vm1631_vm6, %v9666_v13, -inf }
 0x959   : > { %5041 = vrot.lane.b32.xlu0 %v8479_v51, %s7982_s21  ;;  %v4843_v51 = vsel %vm1631_vm6, %v9669_v50, -inf }
 0x978   : > { %4838 = vmax.xlane.f32.xlu0 %v4837_v47 }
 0x97c   : > { %4847 = vmax.xlane.f32.xlu1 %v4846_v38  ;;  %4844 = vmax.xlane.f32.xlu0 %v4843_v51 }
 0x980   : > { %4850 = vmax.xlane.f32.xlu0 %v4849_v14  ;;  %4853 = vmax.xlane.f32.xlu1 %v4852_v16 }
 0x984   : > { %4856 = vmax.xlane.f32.xlu0 %v4855_v28 }
 0x9c0   : > { %v4812_v22 = vpop.xlane.xlu0 %4811 }
 0x9c1   : > { %v4858_v7 = vsub.f32 %v9612_v26, %v4812_v22 }
 0x9c2   : > { %v4815_v30 = vpop.xlane.xlu1 %4814 }
 0x9c3   : > { %v4874_v60 = vmul.f32 1.442695, %v4858_v7  ;;  %v4859_v42 = vsub.f32 %v9615_v44, %v4815_v30 }
 0x9c4   : > { %v4818_v6 = vpop.xlane.xlu0 %4817 }
 0x9c5   : > { %7845 = vpow2.f32 %v4874_v60  ;;  %v4876_v31 = vmul.f32 1.442695, %v4859_v42  ;;  %v4860_v45 = vsub.f32 %v9620_v24, %v4818_v6 }
 0x9c7   : > { %7847 = vpow2.f32 %v4876_v31  ;;  %v4878_v55 = vmul.f32 1.442695, %v4860_v45 }
 0x9c8   : > { %v4824_v62 = vpop.xlane.xlu1 %4823  ;;  %v4821_v15 = vpop.xlane.xlu0 %4820 }
 0x9c9   : > { %7849 = vpow2.f32 %v4878_v55  ;;  %v4862_v23 = vsub.f32 %v9630_v53, %v4824_v62  ;;  %v4861_v61 = vsub.f32 %v9625_v59, %v4821_v15 }
 0x9cb   : > { %v4882_v49 = vmul.f32 1.442695, %v4862_v23  ;;  %v4880_v26 = vmul.f32 1.442695, %v4861_v61 }
 0x9cc   : > { %v4827_v47 = vpop.xlane.xlu0 %4826  ;;  %v4830_v51 = vpop.xlane.xlu1 %4829 }
 0x9cd   : > { %7851 = vpow2.f32 %v4882_v49  ;;  %v4864_v44 = vsub.f32 %v9640_v1, %v4830_v51  ;;  %v4863_v45 = vsub.f32 %v9633_v20, %v4827_v47 }
 0x9ce   : > { %7853 = vpow2.f32 %v4880_v26 }
 0x9cf   : > { %v9701_v37 = vpop.eup %7845  ;;  %v4886_v24 = vmul.f32 1.442695, %v4864_v44  ;;  %v4884_v62 = vmul.f32 1.442695, %v4863_v45 }
 0x9d0   : > { %v4833_v38 = vpop.xlane.xlu0 %4832  ;;  %v4906_v14 = vsel %vm1631_vm6, %v9701_v37, 0.0  ;;  %v4836_v31 = vpop.xlane.xlu1 %4835 }
 0x9d1   : > { %v9705_v16 = vpop.eup %7847  ;;  %4907 = vadd.xlane.f32.xlu1 %v4906_v14  ;;  %7855 = vpow2.f32 %v4886_v24  ;;  %v4866_v55 = vsub.f32 %v9650_v3, %v4836_v31  ;;  %v4865_v15 = vsub.f32 %v9643_v33, %v4833_v38 }
 0x9d2   : > { %v4909_v59 = vsel %vm1631_vm6, %v9705_v16, 0.0  ;;  %7857 = vpow2.f32 %v4884_v62 }
 0x9d3   : > { %v9709_v53 = vpop.eup %7849  ;;  %4910 = vadd.xlane.f32.xlu0 %v4909_v59  ;;  %v4890_v61 = vmul.f32 1.442695, %v4866_v55  ;;  %v4888_v49 = vmul.f32 1.442695, %v4865_v15 }
 0x9d4   : > { %v5042_v28 = vpop.permute.xlu0 %5041  ;;  %v4912_v1 = vsel %vm1631_vm6, %v9709_v53, 0.0  ;;  %v4842_v23 = vpop.xlane.xlu1 %4841 }
 0x9d5   : > { %7469 = vmatpush3.bf16.msra.mxu1 %v5042_v28  ;;  %4913 = vadd.xlane.f32.xlu1 %v4912_v1  ;;  %v4868_v26 = vsub.f32 %v9657_v8, %v4842_v23  ;;  %7859 = vpow2.f32 %v4890_v61 }
 0x9d6   : > { %7480 = vmatprep.subr.bf16.mxu1 %v10686_v19  ;;  %7861 = vpow2.f32 %v4888_v49 }
 0x9d7   : > { %v9714_v22 = vpop.eup %7851 }
 0x9d8   : > { %v9716_v7 = vpop.eup %7853  ;;  %v4918_v30 = vsel %vm1631_vm6, %v9714_v22, 0.0  ;;  %v9734_v51 = vpop.permute.xlu1 %5088 }
 0x9d9   : > { %4919 = vadd.xlane.f32.xlu1 %v4918_v30  ;;  %v4915_v60 = vsel %vm1631_vm6, %v9716_v7, 0.0 }
 0x9da   : > { %4916 = vadd.xlane.f32.xlu0 %v4915_v60 }
 0x9db   : > { %v9722_v42 = vpop.eup %7855 }
 0x9dc   : > { %v4924_v6 = vsel %vm1631_vm6, %v9722_v42, 0.0  ;;  %v9739_v38 = vpop.eup %7857 }
 0x9dd   : > { %4925 = vadd.xlane.f32.xlu1 %v4924_v6  ;;  %v4921_v60 = vsel %vm1631_vm6, %v9739_v38, 0.0 }
 0x9df   : > { %v9741_v1 = vpop.eup %7859 }
 0x9e0   : > { %v9747_v6 = vpop.eup %7861  ;;  %v4930_v55 = vsel %vm1631_vm6, %v9741_v1, 0.0 }
 0x9ee   : > { %5182 = vrot.lane.b32.xlu1 %v8561_v58, %s7982_s21  ;;  %v4894_v58 = vmul.f32 1.442695, %v4868_v26 }
 0x9f0   : > { %5135 = vrot.lane.b32.xlu0 %v8517_v46, %s7982_s21  ;;  %7863 = vpow2.f32 %v4894_v58 }
 0xa05   : > { %v4839_v46 = vpop.xlane.xlu0 %4838 }
 0xa06   : > { %v4867_v44 = vsub.f32 %v9666_v13, %v4839_v46 }
 0xa08   : > { %v4892_v20 = vmul.f32 1.442695, %v4867_v44 }
 0xa09   : > { %v4848_v3 = vpop.xlane.xlu1 %4847  ;;  %v4845_v47 = vpop.xlane.xlu0 %4844 }
 0xa0a   : > { %7865 = vpow2.f32 %v4892_v20  ;;  %v4870_v33 = vsub.f32 %v9672_v5, %v4848_v3  ;;  %v4869_v24 = vsub.f32 %v9669_v50, %v4845_v47 }
 0xa0c   : > { %v4898_v8 = vmul.f32 1.442695, %v4870_v33  ;;  %v4896_v14 = vmul.f32 1.442695, %v4869_v24 }
 0xa0d   : > { %v4851_v59 = vpop.xlane.xlu0 %4850  ;;  %v4854_v28 = vpop.xlane.xlu1 %4853 }
 0xa0e   : > { %7867 = vpow2.f32 %v4898_v8  ;;  %v4871_v13 = vsub.f32 %v9679_v48, %v4851_v59  ;;  %v4872_v30 = vsub.f32 %v9682_v27, %v4854_v28  ;;  %v4927_v48 = vsel %vm1631_vm6, %v9747_v6, 0.0  ;;  %v9754_v27 = vpop.eup %7863 }
 0xa0f   : > { %7869 = vpow2.f32 %v4896_v14  ;;  %4922 = vadd.xlane.f32.xlu0 %v4921_v60 }
 0xa10   : > { %v4900_v50 = vmul.f32 1.442695, %v4871_v13  ;;  %v4902_v5 = vmul.f32 1.442695, %v4872_v30 }
 0xa11   : > { %v4857_v31 = vpop.xlane.xlu0 %4856 }
 0xa12   : > { %7871 = vpow2.f32 %v4900_v50  ;;  %v4873_v45 = vsub.f32 %v9687_v10, %v4857_v31  ;;  %4931 = vadd.xlane.f32.xlu1 %v4930_v55  ;;  %v4936_v10 = vsel %vm1631_vm6, %v9754_v27, 0.0 }
 0xa13   : > { %7873 = vpow2.f32 %v4902_v5  ;;  %4928 = vadd.xlane.f32.xlu0 %v4927_v48 }
 0xa14   : > { %v9756_v62 = vpop.eup %7865  ;;  %v4904_v15 = vmul.f32 1.442695, %v4873_v45 }
 0xa15   : > { %v4933_v23 = vsel %vm1631_vm6, %v9756_v62, 0.0 }
 0xa16   : > { %7875 = vpow2.f32 %v4904_v15  ;;  %4937 = vadd.xlane.f32.xlu1 %v4936_v10 }
 0xa17   : > { %4934 = vadd.xlane.f32.xlu0 %v4933_v23 }
 0xa18   : > { %v9762_v61 = vpop.eup %7867 }
 0xa19   : > { %v9764_v49 = vpop.eup %7869  ;;  %v4942_v26 = vsel %vm1631_vm6, %v9762_v61, 0.0 }
 0xa1a   : > { %v4939_v58 = vsel %vm1631_vm6, %v9764_v49, 0.0  ;;  %4943 = vadd.xlane.f32.xlu1 %v4942_v26 }
 0xa1b   : > { %4940 = vadd.xlane.f32.xlu0 %v4939_v58 }
 0xa1c   : > { %v9770_v46 = vpop.eup %7871 }
 0xa1d   : > { %v9772_v44 = vpop.eup %7873  ;;  %v4945_v20 = vsel %vm1631_vm6, %v9770_v46, 0.0 }
 0xa1e   : > { %v4948_v3 = vsel %vm1631_vm6, %v9772_v44, 0.0 }
 0xa1f   : > { %4949 = vadd.xlane.f32.xlu1 %v4948_v3  ;;  %4946 = vadd.xlane.f32.xlu0 %v4945_v20 }
 0xa20   : > { %v9778_v47 = vpop.eup %7875 }
 0xa21   : > { %v4951_v33 = vsel %vm1631_vm6, %v9778_v47, 0.0 }
 0xa23   : > { %4952 = vadd.xlane.f32.xlu0 %v4951_v33 }
 0xa30   : > { %5276 = vrot.lane.b32.xlu1 %v8600_v25, %s7982_s21  ;;  %v10700_v25 = vld [vmem:[#allocation21_spill] sm:$0xff] }
 0xa34   : > { %5323 = vrot.lane.b32.xlu1 %v8594_v34, %s7982_s21  ;;  %v10699_v34 = vld [vmem:[#allocation20_spill] sm:$0xff] }
 0xa38   : > { %3226 = vrot.lane.b32.xlu1 %v9245_v18, %s7982_s21  ;;  %v10702_v18 = vld [vmem:[#allocation26_spill] sm:$0xff] }
 0xa39   : > { %5229 = vrot.lane.b32.xlu0 %v8555_v56, %s7982_s21  ;;  %v10698_v56 = vld [vmem:[#allocation22_spill] sm:$0xff] }
 0xa3c   : > { %3230 = vrot.lane.b32.xlu1 %v9249_v36, %s7982_s21 }
 0xa3d   : > { %3224 = vrot.lane.b32.xlu0 %v9243_v41, %s7982_s21  ;;  %v10701_v41 = vld [vmem:[#allocation24_spill] sm:$0xff] }
 0xa40   : > { %4307 = vrot.lane.b32.xlu1 %v9581_v4, %s7981_s20 }
 0xa41   : > { %3228 = vrot.lane.b32.xlu0 %v9247_v43, %s7982_s21  ;;  %v10703_v43 = vld [vmem:[#allocation23_spill] sm:$0xff] }
 0xa44   : > { %4311 = vrot.lane.b32.xlu1 %v9585_v52, %s7981_s20 }
 0xa45   : > { %4305 = vrot.lane.b32.xlu0 %v9579_v9, %s7981_s20  ;;  %v10704_v9 = vld [vmem:[#allocation25_spill] sm:$0xff] }
 0xa48   : > { %3234 = vrot.lane.b32.xlu1 %v9253_v2, %s7982_s21 }
 0xa49   : > { %4309 = vrot.lane.b32.xlu0 %v9583_v11, %s7981_s20 }
 0xa4c   : > { %3238 = vrot.lane.b32.xlu1 %v10698_v56, %s7982_s21 }
 0xa4d   : > { %3232 = vrot.lane.b32.xlu0 %v10699_v34, %s7982_s21 }
 0xa50   : > { %4315 = vrot.lane.b32.xlu1 %v9589_v17, %s7981_s20 }
 0xa51   : > { %3236 = vrot.lane.b32.xlu0 %v10700_v25, %s7982_s21 }
 0xa54   : > { %4319 = vrot.lane.b32.xlu1 %v9593_v57, %s7981_s20 }
 0xa55   : > { %4313 = vrot.lane.b32.xlu0 %v9587_v0, %s7981_s20 }
 0xa58   : > { %3242 = vrot.lane.b32.xlu1 %v10701_v41, %s7982_s21 }
 0xa59   : > { %4317 = vrot.lane.b32.xlu0 %v9591_v12, %s7981_s20 }
 0xa5c   : > { %3246 = vrot.lane.b32.xlu1 %v10702_v18, %s7982_s21 }
 0xa5d   : > { %3240 = vrot.lane.b32.xlu0 %v10703_v43, %s7982_s21 }
 0xa5e   : > { %v4908_v36 = vpop.xlane.xlu1 %4907 }
 0xa5f   : > { %7877 = vrcp.f32 %v4908_v36 }
 0xa60   : > { %v4911_v2 = vpop.xlane.xlu0 %4910 }
 0xa61   : > { %3244 = vrot.lane.b32.xlu0 %v10704_v9, %s7982_s21  ;;  %7879 = vrcp.f32 %v4911_v2 }
 0xa62   : > { %v4914_v4 = vpop.xlane.xlu1 %4913 }
 0xa63   : > { %7881 = vrcp.f32 %v4914_v4 }
 0xa67   : > { %v4917_v11 = vpop.xlane.xlu0 %4916 }
 0xa68   : > { %7883 = vrcp.f32 %v4917_v11 }
 0xa69   : > { %v7878_v52 = vpop.eup %7877 }
 0xa6a   : > { %v4970_v17 = vmul.f32 %v7878_v52, %v9701_v37 }
 0xa6b   : > { %v7880_v0 = vpop.eup %7879  ;;  %v5136_v37 = vpop.permute.xlu0 %5135 }
 0xa6c   : > { %v4971_v12 = vmul.f32 %v7880_v0, %v9705_v16  ;;  %v4920_v16 = vpop.xlane.xlu1 %4919 }
 0xa6d   : > { %v7882_v24 = vpop.eup %7881  ;;  %7885 = vrcp.f32 %v4920_v16 }
 0xa6e   : > { %v4986_v57 = vpack.c.bf16 %v4971_v12, %v4970_v17  ;;  %v4972_v14 = vmul.f32 %v7882_v24, %v9709_v53 }
 0xa70   : > { %7465 = vmatmul.mubr.msk.bf16.vlgmr.msra.gmra.mrb[136].mxu0 %vm1631_vm6, %v4986_v57 }
 0xa71   : > { %7475 = vmatpush3.bf16.msra.mxu0 %v9734_v51  ;;  %7476 = vmatprep.mubr.msk.bf16.mxu0 %vm7986_vm3, %v10686_v19  ;;  %v4926_v51 = vpop.xlane.xlu1 %4925 }
 0xa72   : > { %v7884_v8 = vpop.eup %7883  ;;  %7486 = vmatprep.subr.bf16.mxu0 %v10686_v19 }
 0xa73   : > { %v4973_v59 = vmul.f32 %v7884_v8, %v9716_v7 }
 0xa75   : > { %v4987_v28 = vpack.c.bf16 %v4973_v59, %v4972_v14  ;;  %v5183_v13 = vpop.permute.xlu1 %5182 }
 0xa77   : > { %7471 = vmatmul.mubr.msk.bf16.vlgmr.msra.gmra.mrb[136].mxu1 %vm1631_vm6, %v4987_v28  ;;  %v7886_v5 = vpop.eup %7885 }
 0xa78   : > { %7481 = vmatpush3.bf16.msra.mxu1 %v5136_v37  ;;  %7482 = vmatprep.mubr.msk.bf16.mxu1 %vm7986_vm3, %v10686_v19  ;;  %v4974_v45 = vmul.f32 %v7886_v5, %v9714_v22 }
 0xa79   : > { %7492 = vmatprep.subr.bf16.mxu1 %v10686_v19 }
 0xa9c   : > { %v4923_v30 = vpop.xlane.xlu0 %4922 }
 0xa9d   : > { %7887 = vrcp.f32 %v4923_v30 }
 0xa9e   : > { %7889 = vrcp.f32 %v4926_v51 }
 0xa9f   : > { %v4932_v53 = vpop.xlane.xlu1 %4931 }
 0xaa0   : > { %v4929_v60 = vpop.xlane.xlu0 %4928 }
 0xaa1   : > { %7891 = vrcp.f32 %v4929_v60 }
 0xaa2   : > { %7893 = vrcp.f32 %v4932_v53 }
 0xaa3   : > { %v4938_v7 = vpop.xlane.xlu1 %4937 }
 0xaa4   : > { %v4935_v50 = vpop.xlane.xlu0 %4934 }
 0xaa5   : > { %7895 = vrcp.f32 %v4935_v50 }
 0xaa6   : > { %7897 = vrcp.f32 %v4938_v7 }
 0xaa7   : > { %v7888_v31 = vpop.eup %7887  ;;  %v4944_v48 = vpop.xlane.xlu1 %4943 }
 0xaa8   : > { %v4975_v55 = vmul.f32 %v7888_v31, %v9739_v38  ;;  %v4941_v15 = vpop.xlane.xlu0 %4940  ;;  %v7890_v23 = vpop.eup %7889 }
 0xaa9   : > { %7899 = vrcp.f32 %v4941_v15  ;;  %v4976_v3 = vmul.f32 %v7890_v23, %v9722_v42  ;;  %v7607_v15 = vld [vmem:[%s10634_s4 + $0x10] sm:$0xff]   ;;  %v7608_v23 = vld [vmem:[%s10634_s4 + $0x18] sm:$0xff]  }
 0xaaa   : > { %v4988_v10 = vpack.c.bf16 %v4975_v55, %v4974_v45  ;;  %7901 = vrcp.f32 %v4944_v48  ;;  %v7605_v55 = vld [vmem:[%s10634_s4] sm:$0xff]   ;;  %v7606_v48 = vld [vmem:[%s10634_s4 + $0x8] sm:$0xff]  }
 0xaab   : > { %v7892_v26 = vpop.eup %7891 }
 0xaac   : > { %v4950_v58 = vpop.xlane.xlu1 %4949  ;;  %7477 = vmatmul.mubr.msk.bf16.vlgmr.msra.gmra.mrb[140].mxu0 %vm1631_vm6, %v4988_v10  ;;  %v4947_v20 = vpop.xlane.xlu0 %4946  ;;  %v4977_v33 = vmul.f32 %v7892_v26, %v9747_v6  ;;  %v7609_v10 = vld [vmem:[%s10634_s4 + $0x20] sm:$0xff]   ;;  %v7610_v26 = vld [vmem:[%s10634_s4 + $0x28] sm:$0xff]  }
 0xaad   : > { %7487 = vmatpush3.bf16.msra.mxu0 %v5183_v13  ;;  %7488 = vmatprep.mubr.msk.bf16.mxu0 %vm7986_vm3, %v10686_v19  ;;  %v7894_v22 = vpop.eup %7893  ;;  %7903 = vrcp.f32 %v4947_v20 }
 0xaae   : > { %7498 = vmatprep.subr.bf16.mxu0 %v10686_v19  ;;  %7905 = vrcp.f32 %v4950_v58  ;;  %v4989_v38 = vpack.c.bf16 %v4977_v33, %v4976_v3  ;;  %v4978_v41 = vmul.f32 %v7894_v22, %v9741_v1  ;;  %v7611_v58 = vld [vmem:[%s10634_s4 + $0x30] sm:$0xff]   ;;  %v7612_v33 = vld [vmem:[%s10634_s4 + $0x38] sm:$0xff]  }
 0xaaf   : > { %v7896_v56 = vpop.eup %7895 }
 0xab0   : > { %v5277_v34 = vpop.permute.xlu1 %5276  ;;  %v4953_v25 = vpop.xlane.xlu0 %4952  ;;  %v4979_v18 = vmul.f32 %v7896_v56, %v9756_v62  ;;  %7483 = vmatmul.mubr.msk.bf16.vlgmr.msra.gmra.mrb[140].mxu1 %vm1631_vm6, %v4989_v38 }
 0xab1   : > { %7907 = vrcp.f32 %v4953_v25  ;;  %v7898_v42 = vpop.eup %7897  ;;  %7494 = vmatprep.mubr.msk.bf16.mxu1 %vm7986_vm3, %v10686_v19 }
 0xab2   : > { %v4990_v6 = vpack.c.bf16 %v4979_v18, %v4978_v41  ;;  %v4980_v9 = vmul.f32 %v7898_v42, %v9754_v27 }
 0xab3   : > { %v7900_v43 = vpop.eup %7899 }
 0xab4   : > { %v5324_v36 = vpop.permute.xlu1 %5323  ;;  %v5230_v2 = vpop.permute.xlu0 %5229  ;;  %v4981_v4 = vmul.f32 %v7900_v43, %v9764_v49  ;;  %7489 = vmatmul.mubr.msk.bf16.vlgmr.msra.gmra.mrb[144].mxu0 %vm1631_vm6, %v4990_v6 }
 0xab5   : > { %7493 = vmatpush3.bf16.msra.mxu1 %v5230_v2  ;;  %v7902_v1 = vpop.eup %7901  ;;  %7499 = vmatpush3.bf16.msra.mxu0 %v5277_v34 }
 0xab6   : > { %7504 = vmatprep.subr.bf16.mxu1 %v10686_v19  ;;  %v4991_v62 = vpack.c.bf16 %v4981_v4, %v4980_v9  ;;  %7500 = vmatprep.mubr.msk.bf16.mxu0 %vm7986_vm3, %v10686_v19  ;;  %v4982_v27 = vmul.f32 %v7902_v1, %v9762_v61 }
 0xab7   : > { %v7904_v11 = vpop.eup %7903  ;;  %7510 = vmatprep.subr.bf16.mxu0 %v7605_v55 }
 0xab8   : > { %v3227_v52 = vpop.permute.xlu1 %3226  ;;  %v3225_v0 = vpop.permute.xlu0 %3224  ;;  %v4983_v49 = vmul.f32 %v7904_v11, %v9770_v46  ;;  %7495 = vmatmul.mubr.msk.bf16.vlgmr.msra.gmra.mrb[144].mxu1 %vm1631_vm6, %v4991_v62  ;;  %v10706_v62 = vld [vmem:[#allocation28_spill] sm:$0xff] }
 0xab9   : > { %v7906_v17 = vpop.eup %7905  ;;  %3274 = vst.msk [vmem:[#allocation2 + $0x8] sm:$0xff] %vm3272_vm7, %v3227_v52  ;;  %3273 = vst.msk [vmem:[#allocation2] sm:$0xff] %vm3272_vm7, %v3225_v0  ;;  %7505 = vmatpush3.bf16.msra.mxu1 %v5324_v36  ;;  %7506 = vmatprep.mubr.msk.bf16.mxu1 %vm7986_vm3, %v10686_v19  ;;  %v10705_v19 = vmov 0   ;;  %v10707_v52 = vld [vmem:[#allocation27_spill] sm:$0xff] }
 0xaba   : > { %v4992_v57 = vpack.c.bf16 %v4983_v49, %v4982_v27  ;;  %v4984_v24 = vmul.f32 %v7906_v17, %v9772_v44  ;;  %v10708_v17 = vld [vmem:[#allocation30_spill] sm:$0xff] }
 0xabb   : > { %v7908_v12 = vpop.eup %7907 }
 0xabc   : > { %v4985_v8 = vmul.f32 %v7908_v12, %v9778_v47  ;;  %v3231_v14 = vpop.permute.xlu1 %3230  ;;  %v3229_v61 = vpop.permute.xlu0 %3228  ;;  %7501 = vmatmul.mubr.msk.bf16.vlgmr.msra.gmra.mrb[148].mxu0 %vm1631_vm6, %v4992_v57 }
 0xabd   : > { %3276 = vst.msk [vmem:[#allocation2 + $0x18] sm:$0xff] %vm3272_vm7, %v3231_v14  ;;  %3275 = vst.msk [vmem:[#allocation2 + $0x10] sm:$0xff] %vm3272_vm7, %v3229_v61  ;;  %7511 = vmatpush3.bf16.msra.mxu0 %v7605_v55  ;;  %v10709_v14 = vld [vmem:[#allocation29_spill] sm:$0xff] }
 0xabe   : > { %v4993_v46 = vpack.c.bf16 %v4985_v8, %v4984_v24  ;;  %7512 = vmatprep.subr.bf16.mxu0 %v7606_v48 }
 0xac0   : > { %v4308_v59 = vpop.permute.xlu1 %4307  ;;  %v4306_v28 = vpop.permute.xlu0 %4305  ;;  %7507 = vmatmul.mubr.msk.bf16.vlgmr.msra.gmra.mrb[148].mxu1 %vm1631_vm6, %v4993_v46 }
 0xac1   : > { %4355 = vst.msk [vmem:[#allocation2 + $0x8] sm:$0xff] %vm4353_vm8, %v4308_v59  ;;  %4354 = vst.msk [vmem:[#allocation2] sm:$0xff] %vm4353_vm8, %v4306_v28  ;;  %6030 = vmatprep.mubr.bf16.mxu1 %v10705_v19  ;;  %7513 = vmatpush3.bf16.msra.mxu0 %v7606_v48 }
 0xac2   : > { %7514 = vmatprep.subr.bf16.mxu0 %v7607_v15 }
 0xac4   : > { %v4312_v44 = vpop.permute.xlu1 %4311  ;;  %v4310_v47 = vpop.permute.xlu0 %4309 }
 0xac5   : > { %4357 = vst.msk [vmem:[#allocation2 + $0x18] sm:$0xff] %vm4353_vm8, %v4312_v44  ;;  %4356 = vst.msk [vmem:[#allocation2 + $0x10] sm:$0xff] %vm4353_vm8, %v4310_v47  ;;  %7515 = vmatpush3.bf16.msra.mxu0 %v7607_v15 }
 0xac6   : > { %7516 = vmatprep.subr.bf16.mxu0 %v7608_v23 }
 0xac8   : > { %v3235_v37 = vpop.permute.xlu1 %3234  ;;  %v3233_v16 = vpop.permute.xlu0 %3232 }
 0xac9   : > { %3278 = vst.msk [vmem:[#allocation2 + $0x28] sm:$0xff] %vm3272_vm7, %v3235_v37  ;;  %3277 = vst.msk [vmem:[#allocation2 + $0x20] sm:$0xff] %vm3272_vm7, %v3233_v16  ;;  %7517 = vmatpush3.bf16.msra.mxu0 %v7608_v23 }
 0xaca   : > { %7518 = vmatprep.subr.bf16.mxu0 %v7609_v10 }
 0xacc   : > { %v3239_v51 = vpop.permute.xlu1 %3238  ;;  %v3237_v13 = vpop.permute.xlu0 %3236 }
 0xacd   : > { %3280 = vst.msk [vmem:[#allocation2 + $0x38] sm:$0xff] %vm3272_vm7, %v3239_v51  ;;  %3279 = vst.msk [vmem:[#allocation2 + $0x30] sm:$0xff] %vm3272_vm7, %v3237_v13  ;;  %7519 = vmatpush3.bf16.msra.mxu0 %v7609_v10 }
 0xace   : > { %7520 = vmatprep.subr.bf16.mxu0 %v7610_v26 }
 0xad0   : > { %v4316_v30 = vpop.permute.xlu1 %4315  ;;  %v4314_v53 = vpop.permute.xlu0 %4313 }
 0xad1   : > { %4359 = vst.msk [vmem:[#allocation2 + $0x28] sm:$0xff] %vm4353_vm8, %v4316_v30  ;;  %4358 = vst.msk [vmem:[#allocation2 + $0x20] sm:$0xff] %vm4353_vm8, %v4314_v53  ;;  %7521 = vmatpush3.bf16.msra.mxu0 %v7610_v26 }
 0xad2   : > { %7522 = vmatprep.subr.bf16.mxu0 %v7611_v58 }
 0xad4   : > { %v4320_v60 = vpop.permute.xlu1 %4319  ;;  %v4318_v7 = vpop.permute.xlu0 %4317 }
 0xad5   : > { %4361 = vst.msk [vmem:[#allocation2 + $0x38] sm:$0xff] %vm4353_vm8, %v4320_v60  ;;  %4360 = vst.msk [vmem:[#allocation2 + $0x30] sm:$0xff] %vm4353_vm8, %v4318_v7  ;;  %7523 = vmatpush3.bf16.msra.mxu0 %v7611_v58 }
 0xad6   : > { %7524 = vmatprep.subr.bf16.mxu0 %v7612_v33 }
 0xad8   : > { %v3243_v50 = vpop.permute.xlu1 %3242  ;;  %v3241_v5 = vpop.permute.xlu0 %3240 }
 0xad9   : > { %3282 = vst.msk [vmem:[#allocation2 + $0x48] sm:$0xff] %vm3272_vm7, %v3243_v50  ;;  %3281 = vst.msk [vmem:[#allocation2 + $0x40] sm:$0xff] %vm3272_vm7, %v3241_v5  ;;  %7525 = vmatpush3.bf16.msra.mxu0 %v7612_v33 }
 0xadc   : > { %v3247_v31 = vpop.permute.xlu1 %3246  ;;  %v3245_v45 = vpop.permute.xlu0 %3244 }
 0xadd   : > { %3284 = vst.msk [vmem:[#allocation2 + $0x58] sm:$0xff] %vm3272_vm7, %v3247_v31  ;;  %3283 = vst.msk [vmem:[#allocation2 + $0x50] sm:$0xff] %vm3272_vm7, %v3245_v45 }
 0xb43   : > { %v5034_v20 = vpop.f32.mrb[136].mxu0 }
 0xb44   : > { %5386 = vrot.lane.b32.xlu0 %v5034_v20, %s7984_s22  ;;  %v7466_v3 = vpop.f32.mrb[137].mxu0 }
 0xb45   : > { %v5037_v22 = vpop.f32.mrb[138].mxu0 }
 0xb46   : > { %5388 = vrot.lane.b32.xlu1 %v5037_v22, %s7984_s22  ;;  %v7467_v38 = vpop.f32.mrb[139].mxu0 }
 0xb4a   : > { %v5081_v56 = vpop.f32.mrb[136].mxu1 }
 0xb4b   : > { %5390 = vrot.lane.b32.xlu0 %v5081_v56, %s7984_s22  ;;  %v7472_v34 = vpop.f32.mrb[137].mxu1 }
 0xb4c   : > { %v5084_v25 = vpop.f32.mrb[138].mxu1 }
 0xb4d   : > { %5392 = vrot.lane.b32.xlu1 %v5084_v25, %s7984_s22  ;;  %v7473_v41 = vpop.f32.mrb[139].mxu1 }
 0xb4f   : > { %4321 = vrot.lane.b32.xlu0 %v9595_v40, %s7981_s20 }
 0xb51   : > { %4323 = vrot.lane.b32.xlu1 %v9597_v21, %s7981_s20 }
 0xb55   : > { %4327 = vrot.lane.b32.xlu1 %v9601_v54, %s7981_s20 }
 0xb7f   : > { %v5128_v18 = vpop.f32.mrb[140].mxu0 }
 0xb80   : > { %v7478_v42 = vpop.f32.mrb[141].mxu0  ;;  %5394 = vrot.lane.b32.xlu0 %v5128_v18, %s7984_s22 }
 0xb81   : > { %v5131_v6 = vpop.f32.mrb[142].mxu0 }
 0xb82   : > { %v7479_v43 = vpop.f32.mrb[143].mxu0  ;;  %5396 = vrot.lane.b32.xlu1 %v5131_v6, %s7984_s22 }
 0xb83   : > { %v5175_v36 = vpop.f32.mrb[140].mxu1 }
 0xb84   : > { %4325 = vrot.lane.b32.xlu0 %v9599_v35, %s7981_s20  ;;  %v7484_v2 = vpop.f32.mrb[141].mxu1 }
 0xb85   : > { %v5178_v40 = vpop.f32.mrb[142].mxu1 }
 0xb86   : > { %5400 = vrot.lane.b32.xlu1 %v5178_v40, %s7984_s22  ;;  %v7485_v21 = vpop.f32.mrb[143].mxu1 }
 0xb87   : > { %v5222_v9 = vpop.f32.mrb[144].mxu0 }
 0xb88   : > { %5398 = vrot.lane.b32.xlu0 %v5175_v36, %s7984_s22  ;;  %v7490_v54 = vpop.f32.mrb[145].mxu0 }
 0xb89   : > { %v5225_v4 = vpop.f32.mrb[146].mxu0 }
 0xb8a   : > { %v7491_v1 = vpop.f32.mrb[147].mxu0  ;;  %3250 = vrot.lane.b32.xlu1 %v10706_v62, %s7982_s21 }
 0xb8b   : > { %v5269_v11 = vpop.f32.mrb[144].mxu1 }
 0xb8c   : > { %3248 = vrot.lane.b32.xlu0 %v10707_v52, %s7982_s21  ;;  %v7496_v0 = vpop.f32.mrb[145].mxu1 }
 0xb8d   : > { %v5272_v35 = vpop.f32.mrb[146].mxu1 }
 0xb8e   : > { %3254 = vrot.lane.b32.xlu1 %v10708_v17, %s7982_s21  ;;  %v7497_v27 = vpop.f32.mrb[147].mxu1  ;;  %v6820_v17 = vld [vmem:[%s10635_s5] ss:$0 sm:$0xff] }
 0xb8f   : > { %v5316_v49 = vpop.f32.mrb[148].mxu0 }
 0xb90   : > { %5402 = vrot.lane.b32.xlu0 %v5222_v9, %s7984_s22  ;;  %v7502_v12 = vpop.f32.mrb[149].mxu0 }
 0xb91   : > { %v5319_v57 = vpop.f32.mrb[150].mxu0 }
 0xb92   : > { %v7503_v24 = vpop.f32.mrb[151].mxu0  ;;  %5404 = vrot.lane.b32.xlu1 %v5225_v4, %s7984_s22 }
 0xb93   : > { %v5363_v8 = vpop.f32.mrb[148].mxu1 }
 0xb94   : > { %3252 = vrot.lane.b32.xlu0 %v10709_v14, %s7982_s21  ;;  %v7508_v61 = vpop.f32.mrb[149].mxu1  ;;  %v10710_v14 = vld [vmem:[#allocation4_spill] sm:$0xff] }
 0xb95   : > { %v5366_v46 = vpop.f32.mrb[150].mxu1 }
 0xb96   : > { %5408 = vrot.lane.b32.xlu1 %v5272_v35, %s7984_s22  ;;  %v7509_v59 = vpop.f32.mrb[151].mxu1 }
 0xb97   : > { %v10711_v59 = vld [vmem:[#allocation3_spill] sm:$0xff] }
 0xb98   : > { %5406 = vrot.lane.b32.xlu0 %v5269_v11, %s7984_s22 }
 0xb9a   : > { %4331 = vrot.lane.b32.xlu1 %v9605_v39, %s7981_s20 }
 0xb9c   : > { %4329 = vrot.lane.b32.xlu0 %v9603_v32, %s7981_s20 }
 0xb9e   : > { %4335 = vrot.lane.b32.xlu1 %v9609_v29, %s7981_s20 }
 0xba0   : > { %4333 = vrot.lane.b32.xlu0 %v9607_v63, %s7981_s20 }
 0xba2   : > { %5412 = vrot.lane.b32.xlu1 %v5319_v57, %s7984_s22 }
 0xba4   : > { %5410 = vrot.lane.b32.xlu0 %v5316_v49, %s7984_s22 }
 0xba6   : > { %5416 = vrot.lane.b32.xlu1 %v5366_v46, %s7984_s22 }
 0xba8   : > { %5414 = vrot.lane.b32.xlu0 %v5363_v8, %s7984_s22  ;;  %s10564_s22 = scalar_lea.vmem %s10644_s14, %s6868_s26 }
 0xbb6   : > { %v5387_v28 = vpop.permute.xlu0 %5386 }
 0xbb7   : > { %5435 = vst.msk [vmem:[#allocation2] sm:$0xff] %vm5434_vm9, %v5387_v28 }
 0xbb8   : > { %v5389_v39 = vpop.permute.xlu1 %5388 }
 0xbb9   : > { %5436 = vst.msk [vmem:[#allocation2 + $0x8] sm:$0xff] %vm5434_vm9, %v5389_v39  ;;  %v10712_v39 = vld [vmem:[#allocation6_spill] sm:$0xff] }
 0xbbd   : > { %v5391_v32 = vpop.permute.xlu0 %5390 }
 0xbbe   : > { %5437 = vst.msk [vmem:[#allocation2 + $0x10] sm:$0xff] %vm5434_vm9, %v5391_v32  ;;  %v5451_v63 = vld [vmem:[#allocation2] sm:$0xff] }
 0xbbf   : > { %v5393_v29 = vpop.permute.xlu1 %5392 }
 0xbc0   : > { %5438 = vst.msk [vmem:[#allocation2 + $0x18] sm:$0xff] %vm5434_vm9, %v5393_v29  ;;  %v5452_v44 = vld [vmem:[#allocation2 + $0x8] sm:$0xff] }
 0xbc1   : > { %v4322_v47 = vpop.permute.xlu0 %4321  ;;  %v5467_v37 = vpack.c.bf16 %v5452_v44, %v5451_v63  ;;  %v10713_v63 = vld [vmem:[#allocation5_spill] sm:$0xff] }
 0xbc2   : > { %4362 = vst.msk [vmem:[#allocation2 + $0x40] sm:$0xff] %vm4353_vm8, %v4322_v47 }
 0xbc3   : > { %v4324_v16 = vpop.permute.xlu1 %4323  ;;  %7526 = vmatprep.mubr.bf16.mxu0 %v5467_v37 }
 0xbc4   : > { %4363 = vst.msk [vmem:[#allocation2 + $0x48] sm:$0xff] %vm4353_vm8, %v4324_v16 }
 0xbc5   : > { %v5453_v13 = vld [vmem:[#allocation2 + $0x10] sm:$0xff] }
 0xbc7   : > { %v4328_v51 = vpop.permute.xlu1 %4327  ;;  %v5454_v30 = vld [vmem:[#allocation2 + $0x18] sm:$0xff] }
 0xbc8   : > { %4365 = vst.msk [vmem:[#allocation2 + $0x58] sm:$0xff] %vm4353_vm8, %v4328_v51  ;;  %v5468_v53 = vpack.c.bf16 %v5454_v30, %v5453_v13 }
 0xbca   : > { %7527 = vmatmul.mubr.bf16.vlgmr.msra.gmra.mrb[152].mxu0 %v5468_v53  ;;  %v10714_v53 = vld [vmem:[#allocation8_spill] sm:$0xff] }
 0xbf2   : > { %v5395_v60 = vpop.permute.xlu0 %5394 }
 0xbf3   : > { %5439 = vst.msk [vmem:[#allocation2 + $0x20] sm:$0xff] %vm5434_vm9, %v5395_v60 }
 0xbf4   : > { %v5397_v7 = vpop.permute.xlu1 %5396 }
 0xbf5   : > { %5440 = vst.msk [vmem:[#allocation2 + $0x28] sm:$0xff] %vm5434_vm9, %v5397_v7 }
 0xbf6   : > { %v4326_v50 = vpop.permute.xlu0 %4325 }
 0xbf7   : > { %4364 = vst.msk [vmem:[#allocation2 + $0x50] sm:$0xff] %vm4353_vm8, %v4326_v50 }
 0xbf8   : > { %v5401_v5 = vpop.permute.xlu1 %5400 }
 0xbf9   : > { %5442 = vst.msk [vmem:[#allocation2 + $0x38] sm:$0xff] %vm5434_vm9, %v5401_v5  ;;  %v10715_v5 = vld [vmem:[#allocation7_spill] sm:$0xff] }
 0xbfa   : > { %v5399_v31 = vpop.permute.xlu0 %5398  ;;  %v5455_v45 = vld [vmem:[#allocation2 + $0x20] sm:$0xff] }
 0xbfb   : > { %5441 = vst.msk [vmem:[#allocation2 + $0x30] sm:$0xff] %vm5434_vm9, %v5399_v31 }
 0xbfc   : > { %v5456_v55 = vld [vmem:[#allocation2 + $0x28] sm:$0xff]  ;;  %v3251_v48 = vpop.permute.xlu1 %3250 }
 0xbfd   : > { %v5469_v15 = vpack.c.bf16 %v5456_v55, %v5455_v45  ;;  %3286 = vst.msk [vmem:[#allocation2 + $0x68] sm:$0xff] %vm3272_vm7, %v3251_v48  ;;  %v10716_v45 = vld [vmem:[#allocation10_spill] sm:$0xff]  ;;  %v10717_v48 = vld [vmem:[#allocation9_spill] sm:$0xff] }
 0xbfe   : > { %v3249_v23 = vpop.permute.xlu0 %3248 }
 0xbff   : > { %3285 = vst.msk [vmem:[#allocation2 + $0x60] sm:$0xff] %vm3272_vm7, %v3249_v23  ;;  %7530 = vmatprep.mubr.bf16.mxu0 %v5469_v15 }
 0xc00   : > { %v3255_v10 = vpop.permute.xlu1 %3254  ;;  %v5458_v20 = vld [vmem:[#allocation2 + $0x38] sm:$0xff] }
 0xc01   : > { %3288 = vst.msk [vmem:[#allocation2 + $0x78] sm:$0xff] %vm3272_vm7, %v3255_v10 }
 0xc02   : > { %v5403_v26 = vpop.permute.xlu0 %5402  ;;  %v5457_v58 = vld [vmem:[#allocation2 + $0x30] sm:$0xff] }
 0xc03   : > { %5443 = vst.msk [vmem:[#allocation2 + $0x40] sm:$0xff] %vm5434_vm9, %v5403_v26  ;;  %v5470_v3 = vpack.c.bf16 %v5458_v20, %v5457_v58 }
 0xc04   : > { %v5405_v33 = vpop.permute.xlu1 %5404 }
 0xc05   : > { %7531 = vmatmul.mubr.bf16.gmra.mrb[156].mxu0 %v5470_v3  ;;  %5444 = vst.msk [vmem:[#allocation2 + $0x48] sm:$0xff] %vm5434_vm9, %v5405_v33  ;;  %v10718_v33 = vld [vmem:[#allocation12_spill] sm:$0xff] }
 0xc06   : > { %v3253_v22 = vpop.permute.xlu0 %3252 }
 0xc07   : > { %3287 = vst.msk [vmem:[#allocation2 + $0x70] sm:$0xff] %vm3272_vm7, %v3253_v22 }
 0xc08   : > { %v5409_v38 = vpop.permute.xlu1 %5408 }
 0xc09   : > { %5446 = vst.msk [vmem:[#allocation2 + $0x58] sm:$0xff] %vm5434_vm9, %v5409_v38 }
 0xc0a   : > { %v5407_v56 = vpop.permute.xlu0 %5406  ;;  %v5459_v25 = vld [vmem:[#allocation2 + $0x40] sm:$0xff] }
 0xc0b   : > { %5445 = vst.msk [vmem:[#allocation2 + $0x50] sm:$0xff] %vm5434_vm9, %v5407_v56 }
 0xc0c   : > { %v4332_v34 = vpop.permute.xlu1 %4331  ;;  %v5460_v41 = vld [vmem:[#allocation2 + $0x48] sm:$0xff] }
 0xc0d   : > { %4367 = vst.msk [vmem:[#allocation2 + $0x68] sm:$0xff] %vm4353_vm8, %v4332_v34  ;;  %v5471_v42 = vpack.c.bf16 %v5460_v41, %v5459_v25  ;;  %v10719_v34 = vld [vmem:[#allocation11_spill] sm:$0xff]  ;;  %v10720_v41 = vld [vmem:[#allocation14_spill] sm:$0xff] }
 0xc0e   : > { %v4330_v18 = vpop.permute.xlu0 %4329 }
 0xc0f   : > { %4366 = vst.msk [vmem:[#allocation2 + $0x60] sm:$0xff] %vm4353_vm8, %v4330_v18  ;;  %7534 = vmatprep.mubr.bf16.mxu0 %v5471_v42  ;;  %v10721_v42 = vld [vmem:[#allocation13_spill] sm:$0xff] }
 0xc10   : > { %v4336_v6 = vpop.permute.xlu1 %4335  ;;  %v5462_v2 = vld [vmem:[#allocation2 + $0x58] sm:$0xff] }
 0xc11   : > { %4369 = vst.msk [vmem:[#allocation2 + $0x78] sm:$0xff] %vm4353_vm8, %v4336_v6 }
 0xc12   : > { %v4334_v43 = vpop.permute.xlu0 %4333  ;;  %v5461_v36 = vld [vmem:[#allocation2 + $0x50] sm:$0xff] }
 0xc13   : > { %4368 = vst.msk [vmem:[#allocation2 + $0x70] sm:$0xff] %vm4353_vm8, %v4334_v43  ;;  %v5472_v40 = vpack.c.bf16 %v5462_v2, %v5461_v36 }
 0xc14   : > { %v5413_v21 = vpop.permute.xlu1 %5412 }
 0xc15   : > { %7535 = vmatmul.mubr.bf16.gmra.mrb[160].mxu0 %v5472_v40  ;;  %5448 = vst.msk [vmem:[#allocation2 + $0x68] sm:$0xff] %vm5434_vm9, %v5413_v21 }
 0xc16   : > { %v5411_v9 = vpop.permute.xlu0 %5410 }
 0xc17   : > { %5447 = vst.msk [vmem:[#allocation2 + $0x60] sm:$0xff] %vm5434_vm9, %v5411_v9 }
 0xc18   : > { %v5417_v54 = vpop.permute.xlu1 %5416 }
 0xc19   : > { %5450 = vst.msk [vmem:[#allocation2 + $0x78] sm:$0xff] %vm5434_vm9, %v5417_v54  ;;  %v10722_v54 = vld [vmem:[#allocation16_spill] sm:$0xff] }
 0xc1a   : > { %v5415_v4 = vpop.permute.xlu0 %5414 }
 0xc1b   : > { %5449 = vst.msk [vmem:[#allocation2 + $0x70] sm:$0xff] %vm5434_vm9, %v5415_v4 }
 0xc1c   : > { %v5464_v62 = vld [vmem:[#allocation2 + $0x68] sm:$0xff] }
 0xc1e   : > { %v5463_v1 = vld [vmem:[#allocation2 + $0x60] sm:$0xff] }
 0xc1f   : > { %v5473_v11 = vpack.c.bf16 %v5464_v62, %v5463_v1 }
 0xc20   : > { %v5466_v0 = vld [vmem:[#allocation2 + $0x78] sm:$0xff] }
 0xc21   : > { %7538 = vmatprep.mubr.bf16.mxu0 %v5473_v11  ;;  %v10723_v11 = vld [vmem:[#allocation15_spill] sm:$0xff] }
 0xc22   : > { %v5465_v52 = vld [vmem:[#allocation2 + $0x70] sm:$0xff] }
 0xc23   : > { %v5474_v35 = vpack.c.bf16 %v5466_v0, %v5465_v52  ;;  %v10724_v0 = vld [vmem:[#allocation18_spill] sm:$0xff] }
 0xc25   : > { %7539 = vmatmul.mubr.bf16.gmra.mrb[164].mxu0 %v5474_v35 }
 0xc9d   : > { %v7528_v27 = vpop.f32.mrb[152].mxu0 }
 0xc9e   : > { %v5580_v49 = vpop.f32.mrb[153].mxu0  ;;  %v5589_v8 = vadd.f32 %v7528_v27, %v6820_v17  ;;  %v10725_v27 = vld [vmem:[#allocation17_spill] sm:$0xff] }
 0xc9f   : > { %v5581_v12 = vadd.f32 %v6820_v17, %v5580_v49  ;;  %v7529_v57 = vpop.f32.mrb[154].mxu0 }
 0xca0   : > { %v5583_v24 = vpop.f32.mrb[155].mxu0  ;;  %v9993_v32 = vadd.f32 %v5589_v8, %v10712_v39  ;;  %v5592_v29 = vadd.f32 %v7529_v57, %v6820_v17  ;;  %v7618_v57 = vld [vmem:[%s10638_s8 + $0x14] ss:$8 sps:$4 sm:$0xff]  }
 0xca1   : > { %v9986_v61 = vadd.f32 %v5581_v12, %v10710_v14  ;;  %v5584_v46 = vadd.f32 %v6820_v17, %v5583_v24  ;;  %v7615_v12 = vld [vmem:[%s10638_s8 + $0x4] ss:$8 sps:$4 sm:$0xff]   ;;  %v7616_v24 = vld [vmem:[%s10638_s8 + $0x10] ss:$8 sps:$4 sm:$0xff]  }
 0xca2   : > { %v9998_v44 = vadd.f32 %v5592_v29, %v10713_v63  ;;  %5998 = vmatprep.subr.bf16.mxu1 %v7615_v12 }
 0xca3   : > { %v9989_v28 = vadd.f32 %v5584_v46, %v10711_v59  ;;  %5659 = vadd.xlane.f32.xlu0 %v9986_v61 }
 0xca5   : > { %5661 = vadd.xlane.f32.xlu1 %v9989_v28 }
 0xca7   : > { %5663 = vadd.xlane.f32.xlu0 %v9993_v32 }
 0xcab   : > { %5665 = vadd.xlane.f32.xlu0 %v9998_v44 }
 0xcd8   : > { %v7532_v47 = vpop.f32.mrb[156].mxu0 }
 0xcd9   : > { %v5596_v37 = vpop.f32.mrb[157].mxu0  ;;  %v5605_v30 = vadd.f32 %v7532_v47, %v6820_v17 }
 0xcda   : > { %v5597_v16 = vadd.f32 %v6820_v17, %v5596_v37  ;;  %v7533_v51 = vpop.f32.mrb[158].mxu0 }
 0xcdb   : > { %v5599_v13 = vpop.f32.mrb[159].mxu0  ;;  %v5608_v50 = vadd.f32 %v7533_v51, %v6820_v17  ;;  %v10009_v55 = vadd.f32 %v5605_v30, %v10716_v45  ;;  %v7625_v45 = vld [vmem:[%s10638_s8 + $0x40] ss:$8 sps:$4 sm:$0xff]  }
 0xcdc   : > { %v10002_v60 = vadd.f32 %v5597_v16, %v10714_v53  ;;  %v5600_v7 = vadd.f32 %v6820_v17, %v5599_v13 }
 0xcdd   : > { %v10013_v15 = vadd.f32 %v5608_v50, %v10717_v48  ;;  %v7622_v50 = vld [vmem:[%s10638_s8 + $0x30] ss:$8 sps:$4 sm:$0xff]   ;;  %v7630_v48 = vld [vmem:[%s10638_s8 + $0x54] ss:$8 sps:$4 sm:$0xff]  }
 0xcde   : > { %v10005_v31 = vadd.f32 %v5600_v7, %v10715_v5  ;;  %5667 = vadd.xlane.f32.xlu1 %v10002_v60  ;;  %v7619_v7 = vld [vmem:[%s10638_s8 + $0x20] ss:$8 sps:$4 sm:$0xff]   ;;  %v7627_v5 = vld [vmem:[%s10638_s8 + $0x44] ss:$8 sps:$4 sm:$0xff]  }
 0xce0   : > { %5669 = vadd.xlane.f32.xlu0 %v10005_v31 }
 0xce2   : > { %5671 = vadd.xlane.f32.xlu1 %v10009_v55 }
 0xce4   : > { %5673 = vadd.xlane.f32.xlu0 %v10013_v15 }
 0xce8   : > { %v7536_v23 = vpop.f32.mrb[160].mxu0 }
 0xce9   : > { %v5612_v10 = vpop.f32.mrb[161].mxu0  ;;  %v5621_v3 = vadd.f32 %v7536_v23, %v6820_v17  ;;  %v7628_v23 = vld [vmem:[%s10638_s8 + $0x50] ss:$8 sps:$4 sm:$0xff]  }
 0xcea   : > { %v5613_v26 = vadd.f32 %v6820_v17, %v5612_v10  ;;  %v7537_v58 = vpop.f32.mrb[162].mxu0  ;;  %v7631_v10 = vld [vmem:[%s10638_s8 + $0x60] ss:$8 sps:$4 sm:$0xff]  }
 0xceb   : > { %v5615_v20 = vpop.f32.mrb[163].mxu0  ;;  %v5624_v56 = vadd.f32 %v7537_v58, %v6820_v17  ;;  %v10025_v18 = vadd.f32 %v5621_v3, %v10720_v41  ;;  %v7636_v58 = vld [vmem:[%s10638_s8 + $0x74] ss:$8 sps:$4 sm:$0xff]  }
 0xcec   : > { %v10018_v22 = vadd.f32 %v5613_v26, %v10718_v33  ;;  %v5616_v38 = vadd.f32 %v6820_v17, %v5615_v20  ;;  %v7633_v26 = vld [vmem:[%s10638_s8 + $0x64] ss:$8 sps:$4 sm:$0xff]   ;;  %v7634_v20 = vld [vmem:[%s10638_s8 + $0x70] ss:$8 sps:$4 sm:$0xff]  }
 0xced   : > { %v10029_v6 = vadd.f32 %v5624_v56, %v10721_v42 }
 0xcee   : > { %v10021_v25 = vadd.f32 %v5616_v38, %v10719_v34  ;;  %5675 = vadd.xlane.f32.xlu1 %v10018_v22 }
 0xcf0   : > { %5677 = vadd.xlane.f32.xlu0 %v10021_v25 }
 0xcf2   : > { %5679 = vadd.xlane.f32.xlu1 %v10025_v18 }
 0xcf4   : > { %5681 = vadd.xlane.f32.xlu0 %v10029_v6 }
 0xcf8   : > { %v7540_v43 = vpop.f32.mrb[164].mxu0 }
 0xcf9   : > { %v5628_v36 = vpop.f32.mrb[165].mxu0  ;;  %v5637_v9 = vadd.f32 %v7540_v43, %v6820_v17 }
 0xcfa   : > { %v5629_v2 = vadd.f32 %v6820_v17, %v5628_v36  ;;  %v7541_v40 = vpop.f32.mrb[166].mxu0 }
 0xcfb   : > { %v5631_v21 = vpop.f32.mrb[167].mxu0  ;;  %v5640_v62 = vadd.f32 %v7541_v40, %v6820_v17  ;;  %v10041_v35 = vadd.f32 %v5637_v9, %v10724_v0 }
 0xcfc   : > { %v10034_v4 = vadd.f32 %v5629_v2, %v10722_v54  ;;  %v5632_v1 = vadd.f32 %v6820_v17, %v5631_v21  ;;  %v7613_v17 = vld [vmem:[%s10638_s8] ss:$8 sps:$4 sm:$0xff]  }
 0xcfd   : > { %v10045_v49 = vadd.f32 %v5640_v62, %v10725_v27  ;;  %5999 = vmatpush1.bf16.msra.mxu1 %v7613_v17 }
 0xcfe   : > { %v10037_v52 = vadd.f32 %v5632_v1, %v10723_v11  ;;  %5683 = vadd.xlane.f32.xlu1 %v10034_v4  ;;  %6000 = vmatprep.subr.bf16.mxu1 %v7618_v57 }
 0xd00   : > { %5685 = vadd.xlane.f32.xlu0 %v10037_v52 }
 0xd01   : > { %6001 = vmatpush1.bf16.msra.mxu1 %v7616_v24 }
 0xd02   : > { %5687 = vadd.xlane.f32.xlu1 %v10041_v35 }
 0xd04   : > { %5689 = vadd.xlane.f32.xlu0 %v10045_v49 }
 0xd30   : > { %v5660_v8 = vpop.xlane.xlu0 %5659 }
 0xd31   : > { %v5692_v14 = vmul.f32 0.0078125, %v5660_v8 }
 0xd32   : > { %v5662_v46 = vpop.xlane.xlu1 %5661 }
 0xd33   : > { %v10062_v59 = vsub.f32 %v9986_v61, %v5692_v14  ;;  %v5693_v39 = vmul.f32 0.0078125, %v5662_v46 }
 0xd34   : > { %v5664_v29 = vpop.xlane.xlu0 %5663 }
 0xd35   : > { %v10065_v63 = vsub.f32 %v9989_v28, %v5693_v39  ;;  %v5694_v47 = vmul.f32 0.0078125, %v5664_v29  ;;  %v5724_v37 = vmul.f32 %v10062_v59, %v10062_v59 }
 0xd37   : > { %v10070_v16 = vsub.f32 %v9993_v32, %v5694_v47  ;;  %5740 = vadd.xlane.f32.xlu1 %v5724_v37  ;;  %v5725_v51 = vmul.f32 %v10065_v63, %v10065_v63  ;;  %v7621_v32 = vld [vmem:[%s10638_s8 + $0x24] ss:$8 sps:$4 sm:$0xff]  }
 0xd38   : > { %v5666_v13 = vpop.xlane.xlu0 %5665  ;;  %6002 = vmatprep.subr.bf16.mxu1 %v7621_v32 }
 0xd39   : > { %v5695_v30 = vmul.f32 0.0078125, %v5666_v13  ;;  %5742 = vadd.xlane.f32.xlu0 %v5725_v51  ;;  %v5726_v61 = vmul.f32 %v10070_v16, %v10070_v16  ;;  %6003 = vmatpush1.bf16.msra.mxu1 %v7619_v7 }
 0xd3b   : > { %v10077_v28 = vsub.f32 %v9998_v44, %v5695_v30  ;;  %5744 = vadd.xlane.f32.xlu1 %v5726_v61  ;;  %v7624_v44 = vld [vmem:[%s10638_s8 + $0x34] ss:$8 sps:$4 sm:$0xff]  }
 0xd3c   : > { %6004 = vmatprep.subr.bf16.mxu1 %v7624_v44 }
 0xd3d   : > { %v5727_v53 = vmul.f32 %v10077_v28, %v10077_v28  ;;  %6005 = vmatpush1.bf16.msra.mxu1 %v7622_v50  ;;  %v7638_v50 = vld [vmem:[%s10640_s10] sm:$0xff]  }
 0xd3e   : > { %6006 = vmatprep.subr.bf16.mxu1 %v7627_v5 }
 0xd3f   : > { %5746 = vadd.xlane.f32.xlu0 %v5727_v53 }
 0xd41   : > { %6007 = vmatpush1.bf16.msra.mxu1 %v7625_v45  ;;  %v7640_v45 = vld [vmem:[%s10640_s10 + $0x8] sm:$0xff]  }
 0xd42   : > { %6008 = vmatprep.subr.bf16.mxu1 %v7630_v48 }
 0xd45   : > { %6009 = vmatpush1.bf16.msra.mxu1 %v7628_v23  ;;  %v7641_v23 = vld [vmem:[%s10640_s10 + $0x50] sm:$0xff]  }
 0xd46   : > { %6010 = vmatprep.subr.bf16.mxu1 %v7633_v26 }
 0xd49   : > { %6011 = vmatpush1.bf16.msra.mxu1 %v7631_v10 }
 0xd4a   : > { %6012 = vmatprep.subr.bf16.mxu1 %v7636_v58 }
 0xd4d   : > { %6013 = vmatpush1.bf16.msra.mxu1 %v7634_v20 }
 0xd6b   : > { %v5668_v3 = vpop.xlane.xlu1 %5667 }
 0xd6c   : > { %v5696_v33 = vmul.f32 0.0078125, %v5668_v3  ;;  %v7642_v3 = vld [vmem:[%s10640_s10 + $0x10] sm:$0xff]  }
 0xd6d   : > { %v5670_v38 = vpop.xlane.xlu0 %5669 }
 0xd6e   : > { %v10118_v56 = vsub.f32 %v10002_v60, %v5696_v33  ;;  %v5697_v34 = vmul.f32 0.0078125, %v5670_v38 }
 0xd6f   : > { %v5672_v41 = vpop.xlane.xlu1 %5671 }
 0xd70   : > { %v10121_v42 = vsub.f32 %v10005_v31, %v5697_v34  ;;  %v5698_v43 = vmul.f32 0.0078125, %v5672_v41  ;;  %v5728_v36 = vmul.f32 %v10118_v56, %v10118_v56  ;;  %v7643_v34 = vld [vmem:[%s10640_s10 + $0x58] sm:$0xff]  }
 0xd71   : > { %v5674_v2 = vpop.xlane.xlu0 %5673 }
 0xd72   : > { %v10126_v40 = vsub.f32 %v10009_v55, %v5698_v43  ;;  %v5699_v21 = vmul.f32 0.0078125, %v5674_v2  ;;  %5748 = vadd.xlane.f32.xlu1 %v5728_v36  ;;  %v5729_v9 = vmul.f32 %v10121_v42, %v10121_v42  ;;  %v7644_v36 = vld [vmem:[%s10640_s10 + $0x18] sm:$0xff]  }
 0xd74   : > { %v10131_v60 = vsub.f32 %v10013_v15, %v5699_v21  ;;  %5750 = vadd.xlane.f32.xlu0 %v5729_v9  ;;  %v5730_v31 = vmul.f32 %v10126_v40, %v10126_v40  ;;  %v7645_v21 = vld [vmem:[%s10640_s10 + $0x60] sm:$0xff]  }
 0xd76   : > { %5752 = vadd.xlane.f32.xlu1 %v5730_v31  ;;  %v5731_v54 = vmul.f32 %v10131_v60, %v10131_v60  ;;  %v7646_v31 = vld [vmem:[%s10640_s10 + $0x20] sm:$0xff]  }
 0xd78   : > { %5754 = vadd.xlane.f32.xlu0 %v5731_v54  ;;  %v7647_v54 = vld [vmem:[%s10640_s10 + $0x68] sm:$0xff]  }
 0xd7b   : > { %v5676_v1 = vpop.xlane.xlu1 %5675 }
 0xd7c   : > { %v5700_v55 = vmul.f32 0.0078125, %v5676_v1 }
 0xd7d   : > { %v5678_v62 = vpop.xlane.xlu0 %5677 }
 0xd7e   : > { %v10138_v11 = vsub.f32 %v10018_v22, %v5700_v55  ;;  %v5701_v0 = vmul.f32 0.0078125, %v5678_v62  ;;  %v10213_v55 = vld [vmem:[%s10636_s6] ss:$0 sm:$0xff] }
 0xd7f   : > { %v5680_v27 = vpop.xlane.xlu1 %5679 }
 0xd80   : > { %v10141_v15 = vsub.f32 %v10021_v25, %v5701_v0  ;;  %v5702_v17 = vmul.f32 0.0078125, %v5680_v27  ;;  %v5732_v12 = vmul.f32 %v10138_v11, %v10138_v11 }
 0xd81   : > { %v5682_v57 = vpop.xlane.xlu0 %5681 }
 0xd82   : > { %v10146_v24 = vsub.f32 %v10025_v18, %v5702_v17  ;;  %v5703_v8 = vmul.f32 0.0078125, %v5682_v57  ;;  %5756 = vadd.xlane.f32.xlu1 %v5732_v12  ;;  %v5733_v14 = vmul.f32 %v10141_v15, %v10141_v15  ;;  %v10221_v57 = vld [vmem:[%s10637_s7] ss:$0 sm:$0xff] }
 0xd84   : > { %v10151_v22 = vsub.f32 %v10029_v6, %v5703_v8  ;;  %5758 = vadd.xlane.f32.xlu0 %v5733_v14  ;;  %v5734_v25 = vmul.f32 %v10146_v24, %v10146_v24 }
 0xd86   : > { %5760 = vadd.xlane.f32.xlu1 %v5734_v25  ;;  %v5735_v46 = vmul.f32 %v10151_v22, %v10151_v22 }
 0xd88   : > { %5762 = vadd.xlane.f32.xlu0 %v5735_v46 }
 0xd8b   : > { %v5684_v39 = vpop.xlane.xlu1 %5683 }
 0xd8c   : > { %v5704_v18 = vmul.f32 0.0078125, %v5684_v39 }
 0xd8d   : > { %v5686_v29 = vpop.xlane.xlu0 %5685 }
 0xd8e   : > { %v10158_v47 = vsub.f32 %v10034_v4, %v5704_v18  ;;  %v5705_v37 = vmul.f32 0.0078125, %v5686_v29 }
 0xd8f   : > { %v5688_v51 = vpop.xlane.xlu1 %5687 }
 0xd90   : > { %v10161_v6 = vsub.f32 %v10037_v52, %v5705_v37  ;;  %v5706_v13 = vmul.f32 0.0078125, %v5688_v51  ;;  %v5736_v30 = vmul.f32 %v10158_v47, %v10158_v47 }
 0xd91   : > { %v5690_v61 = vpop.xlane.xlu0 %5689 }
 0xd92   : > { %v10166_v53 = vsub.f32 %v10041_v35, %v5706_v13  ;;  %v5707_v32 = vmul.f32 0.0078125, %v5690_v61  ;;  %5764 = vadd.xlane.f32.xlu1 %v5736_v30  ;;  %v5737_v7 = vmul.f32 %v10161_v6, %v10161_v6  ;;  %v7637_v35 = vld [vmem:[%s10640_s10 + $0x40] sm:$0xff]  }
 0xd93   : > { %7030 = vmatprep.subr.bf16.mxu0 %v7637_v35  ;;  %7542 = vmatprep.subr.bf16.mxu1 %v7637_v35 }
 0xd94   : > { %v10171_v4 = vsub.f32 %v10045_v49, %v5707_v32  ;;  %5766 = vadd.xlane.f32.xlu0 %v5737_v7  ;;  %v5738_v52 = vmul.f32 %v10166_v53, %v10166_v53  ;;  %v7639_v49 = vld [vmem:[%s10640_s10 + $0x48] sm:$0xff]   ;;  %7031 = vmatpush3.bf16.msra.mxu0 %v7638_v50 }
 0xd95   : > { %7032 = vmatprep.subr.bf16.mxu0 %v7639_v49 }
 0xd96   : > { %5768 = vadd.xlane.f32.xlu1 %v5738_v52  ;;  %v5739_v44 = vmul.f32 %v10171_v4, %v10171_v4 }
 0xd98   : > { %5770 = vadd.xlane.f32.xlu0 %v5739_v44  ;;  %7033 = vmatpush3.bf16.msra.mxu0 %v7640_v45 }
 0xd99   : > { %7034 = vmatprep.subr.bf16.mxu0 %v7641_v23 }
 0xd9c   : > { %7035 = vmatpush3.bf16.msra.mxu0 %v7642_v3 }
 0xd9d   : > { %7036 = vmatprep.subr.bf16.mxu0 %v7643_v34 }
 0xda0   : > { %7037 = vmatpush3.bf16.msra.mxu0 %v7644_v36 }
 0xda1   : > { %7038 = vmatprep.subr.bf16.mxu0 %v7645_v21 }
 0xda4   : > { %7039 = vmatpush3.bf16.msra.mxu0 %v7646_v31 }
 0xda5   : > { %7040 = vmatprep.subr.bf16.mxu0 %v7647_v54 }
 0xdc4   : > { %v5741_v5 = vpop.xlane.xlu1 %5740 }
 0xdc5   : > { %v5772_v48 = vmul.f32 0.0078125, %v5741_v5 }
 0xdc6   : > { %v5743_v10 = vpop.xlane.xlu0 %5742 }
 0xdc7   : > { %v5788_v26 = vadd.f32 1e-05, %v5772_v48  ;;  %v5773_v58 = vmul.f32 0.0078125, %v5743_v10 }
 0xdc8   : > { %v5745_v20 = vpop.xlane.xlu1 %5744 }
 0xdc9   : > { %7909 = vrsqrt.f32 %v5788_v26  ;;  %v5789_v33 = vadd.f32 1e-05, %v5773_v58  ;;  %v5774_v38 = vmul.f32 0.0078125, %v5745_v20 }
 0xdcb   : > { %7911 = vrsqrt.f32 %v5789_v33  ;;  %v5790_v41 = vadd.f32 1e-05, %v5774_v38 }
 0xdcc   : > { %v5747_v43 = vpop.xlane.xlu0 %5746 }
 0xdcd   : > { %7913 = vrsqrt.f32 %v5790_v41  ;;  %v5775_v2 = vmul.f32 0.0078125, %v5747_v43 }
 0xdcf   : > { %v5791_v9 = vadd.f32 1e-05, %v5775_v2 }
 0xdd1   : > { %7915 = vrsqrt.f32 %v5791_v9 }
 0xdd3   : > { %v7910_v1 = vpop.eup %7909 }
 0xdd4   : > { %v5820_v62 = vmul.f32 %v7910_v1, %v10062_v59 }
 0xdd5   : > { %v7912_v0 = vpop.eup %7911 }
 0xdd6   : > { %v5821_v27 = vmul.f32 %v7912_v0, %v10065_v63  ;;  %v5843_v17 = vmul.f32 %v10213_v55, %v5820_v62 }
 0xdd7   : > { %v7914_v12 = vpop.eup %7913 }
 0xdd8   : > { %v5844_v8 = vmul.f32 %v10213_v55, %v5821_v27  ;;  %v10225_v14 = vadd.f32 %v10221_v57, %v5843_v17  ;;  %v5822_v25 = vmul.f32 %v7914_v12, %v10070_v16 }
 0xdda   : > { %v10228_v59 = vadd.f32 %v10221_v57, %v5844_v8  ;;  %v5845_v18 = vmul.f32 %v10213_v55, %v5822_v25 }
 0xddb   : > { %v7916_v46 = vpop.eup %7915 }
 0xddc   : > { %v5882_v63 = vpack.c.bf16 %v10228_v59, %v10225_v14  ;;  %v5823_v39 = vmul.f32 %v7916_v46, %v10077_v28  ;;  %v10241_v16 = vadd.f32 %v10221_v57, %v5845_v18 }
 0xdde   : > { %6031 = vmatmul.mubr.bf16.vlgmr.msra.gmra.mrb[152].mxu1 %v5882_v63  ;;  %v5846_v29 = vmul.f32 %v10213_v55, %v5823_v39 }
 0xddf   : > { %6040 = vmatprep.mubr.bf16.mxu1 %v10705_v19  ;;  %7550 = vmatpush3.bf16.msra.mxu1 %v7638_v50 }
 0xde0   : > { %v10238_v37 = vadd.f32 %v10221_v57, %v5846_v29  ;;  %7543 = vmatprep.subr.bf16.mxu1 %v7639_v49 }
 0xde2   : > { %v5883_v51 = vpack.c.bf16 %v10238_v37, %v10241_v16 }
 0xde3   : > { %7551 = vmatpush3.bf16.msra.mxu1 %v7640_v45 }
 0xde4   : > { %7544 = vmatprep.subr.bf16.mxu1 %v7641_v23 }
 0xde6   : > { %6041 = vmatmul.mubr.bf16.gmra.mrb[156].mxu1 %v5883_v51 }
 0xde7   : > { %6050 = vmatprep.mubr.bf16.mxu1 %v10705_v19  ;;  %7552 = vmatpush3.bf16.msra.mxu1 %v7642_v3 }
 0xde8   : > { %7545 = vmatprep.subr.bf16.mxu1 %v7643_v34 }
 0xdeb   : > { %7553 = vmatpush3.bf16.msra.mxu1 %v7644_v36 }
 0xdec   : > { %7546 = vmatprep.subr.bf16.mxu1 %v7645_v21 }
 0xdef   : > { %7554 = vmatpush3.bf16.msra.mxu1 %v7646_v31 }
 0xdf0   : > { %7547 = vmatprep.subr.bf16.mxu1 %v7647_v54 }
 0xdff   : > { %v5749_v28 = vpop.xlane.xlu1 %5748 }
 0xe00   : > { %v5776_v13 = vmul.f32 0.0078125, %v5749_v28 }
 0xe01   : > { %v5751_v30 = vpop.xlane.xlu0 %5750 }
 0xe02   : > { %v5792_v61 = vadd.f32 1e-05, %v5776_v13  ;;  %v5777_v32 = vmul.f32 0.0078125, %v5751_v30 }
 0xe03   : > { %v5753_v7 = vpop.xlane.xlu1 %5752 }
 0xe04   : > { %7917 = vrsqrt.f32 %v5792_v61  ;;  %v5793_v52 = vadd.f32 1e-05, %v5777_v32  ;;  %v5778_v44 = vmul.f32 0.0078125, %v5753_v7 }
 0xe05   : > { %v5755_v35 = vpop.xlane.xlu0 %5754 }
 0xe06   : > { %7919 = vrsqrt.f32 %v5793_v52  ;;  %v5794_v50 = vadd.f32 1e-05, %v5778_v44  ;;  %v5779_v49 = vmul.f32 0.0078125, %v5755_v35 }
 0xe08   : > { %7921 = vrsqrt.f32 %v5794_v50  ;;  %v5795_v5 = vadd.f32 1e-05, %v5779_v49 }
 0xe0a   : > { %7923 = vrsqrt.f32 %v5795_v5 }
 0xe0e   : > { %v7918_v45 = vpop.eup %7917 }
 0xe0f   : > { %v5757_v48 = vpop.xlane.xlu1 %5756  ;;  %v5824_v23 = vmul.f32 %v7918_v45, %v10118_v56 }
 0xe10   : > { %v7920_v10 = vpop.eup %7919  ;;  %v5780_v26 = vmul.f32 0.0078125, %v5757_v48 }
 0xe11   : > { %v5759_v58 = vpop.xlane.xlu0 %5758  ;;  %v5825_v20 = vmul.f32 %v7920_v10, %v10121_v42  ;;  %v5847_v3 = vmul.f32 %v10213_v55, %v5824_v23 }
 0xe12   : > { %v7922_v33 = vpop.eup %7921  ;;  %v5796_v38 = vadd.f32 1e-05, %v5780_v26  ;;  %v5781_v34 = vmul.f32 0.0078125, %v5759_v58 }
 0xe13   : > { %v5761_v41 = vpop.xlane.xlu1 %5760  ;;  %v5848_v43 = vmul.f32 %v10213_v55, %v5825_v20  ;;  %v10251_v56 = vadd.f32 %v10221_v57, %v5847_v3  ;;  %v5826_v42 = vmul.f32 %v7922_v33, %v10126_v40 }
 0xe14   : > { %v7924_v36 = vpop.eup %7923  ;;  %7925 = vrsqrt.f32 %v5796_v38  ;;  %v5797_v2 = vadd.f32 1e-05, %v5781_v34  ;;  %v5782_v21 = vmul.f32 0.0078125, %v5761_v41 }
 0xe15   : > { %v5763_v9 = vpop.xlane.xlu0 %5762  ;;  %v10254_v31 = vadd.f32 %v10221_v57, %v5848_v43  ;;  %v5827_v54 = vmul.f32 %v7924_v36, %v10131_v60  ;;  %v5849_v12 = vmul.f32 %v10213_v55, %v5826_v42  ;;  %v7648_v43 = vld [vmem:[%s10640_s10 + $0x28] sm:$0xff]  }
 0xe16   : > { %7927 = vrsqrt.f32 %v5797_v2  ;;  %v5798_v1 = vadd.f32 1e-05, %v5782_v21  ;;  %v5783_v62 = vmul.f32 0.0078125, %v5763_v9  ;;  %7041 = vmatpush3.bf16.msra.mxu0 %v7648_v43  ;;  %7555 = vmatpush3.bf16.msra.mxu1 %v7648_v43 }
 0xe17   : > { %v5884_v0 = vpack.c.bf16 %v10254_v31, %v10251_v56  ;;  %v5850_v27 = vmul.f32 %v10213_v55, %v5827_v54  ;;  %v10267_v60 = vadd.f32 %v10221_v57, %v5849_v12 }
 0xe18   : > { %7929 = vrsqrt.f32 %v5798_v1  ;;  %v5799_v17 = vadd.f32 1e-05, %v5783_v62  ;;  %v7650_v1 = vld [vmem:[%s10640_s10 + $0x30] sm:$0xff]  }
 0xe19   : > { %6051 = vmatmul.mubr.bf16.gmra.mrb[160].mxu1 %v5884_v0  ;;  %v10264_v40 = vadd.f32 %v10221_v57, %v5850_v27  ;;  %v7651_v27 = vld [vmem:[%s10640_s10 + $0x78] sm:$0xff]  }
 0xe1a   : > { %7931 = vrsqrt.f32 %v5799_v17  ;;  %6060 = vmatprep.mubr.bf16.mxu1 %v10705_v19 }
 0xe1b   : > { %v5885_v46 = vpack.c.bf16 %v10264_v40, %v10267_v60 }
 0xe1e   : > { %v7926_v8 = vpop.eup %7925 }
 0xe1f   : > { %v5765_v25 = vpop.xlane.xlu1 %5764  ;;  %v5828_v63 = vmul.f32 %v7926_v8, %v10138_v11 }
 0xe20   : > { %v7928_v39 = vpop.eup %7927  ;;  %v5784_v18 = vmul.f32 0.0078125, %v5765_v25  ;;  %v10726_v25 = vld [vmem:[#allocation19_spill] sm:$0xff] }
 0xe21   : > { %v5767_v29 = vpop.xlane.xlu0 %5766  ;;  %6061 = vmatmul.mubr.bf16.gmra.mrb[164].mxu1 %v5885_v46  ;;  %v5829_v51 = vmul.f32 %v7928_v39, %v10141_v15  ;;  %v5851_v28 = vmul.f32 %v10213_v55, %v5828_v63  ;;  %v10728_v63 = vsub.s32 1, %v10726_v25 }
 0xe22   : > { %v7930_v13 = vpop.eup %7929  ;;  %v5800_v30 = vadd.f32 1e-05, %v5784_v18  ;;  %v5785_v61 = vmul.f32 0.0078125, %v5767_v29  ;;  %6070 = vmatprep.mubr.bf16.mxu1 %v10705_v19 }
 0xe23   : > { %v5769_v32 = vpop.xlane.xlu1 %5768  ;;  %v5852_v7 = vmul.f32 %v10213_v55, %v5829_v51  ;;  %v10277_v50 = vadd.f32 %v10221_v57, %v5851_v28  ;;  %v5830_v49 = vmul.f32 %v7930_v13, %v10146_v24 }
 0xe24   : > { %v7932_v52 = vpop.eup %7931  ;;  %7933 = vrsqrt.f32 %v5800_v30  ;;  %v5801_v44 = vadd.f32 1e-05, %v5785_v61  ;;  %v5786_v11 = vmul.f32 0.0078125, %v5769_v32 }
 0xe25   : > { %v5771_v35 = vpop.xlane.xlu0 %5770  ;;  %v10280_v15 = vadd.f32 %v10221_v57, %v5852_v7  ;;  %v5831_v5 = vmul.f32 %v7932_v52, %v10151_v22  ;;  %v5853_v58 = vmul.f32 %v10213_v55, %v5830_v49 }
 0xe26   : > { %7935 = vrsqrt.f32 %v5801_v44  ;;  %v5802_v45 = vadd.f32 1e-05, %v5786_v11  ;;  %v5787_v48 = vmul.f32 0.0078125, %v5771_v35 }
 0xe27   : > { %v5886_v23 = vpack.c.bf16 %v10280_v15, %v10277_v50  ;;  %v5854_v10 = vmul.f32 %v10213_v55, %v5831_v5  ;;  %v10293_v22 = vadd.f32 %v10221_v57, %v5853_v58 }
 0xe28   : > { %7937 = vrsqrt.f32 %v5802_v45  ;;  %v5803_v26 = vadd.f32 1e-05, %v5787_v48 }
 0xe29   : > { %6071 = vmatmul.mubr.bf16.gmra.mrb[168].mxu1 %v5886_v23  ;;  %v10290_v24 = vadd.f32 %v10221_v57, %v5854_v10 }
 0xe2a   : > { %7939 = vrsqrt.f32 %v5803_v26  ;;  %6080 = vmatprep.mubr.bf16.mxu1 %v10705_v19 }
 0xe2b   : > { %v5887_v3 = vpack.c.bf16 %v10290_v24, %v10293_v22 }
 0xe2e   : > { %v7934_v20 = vpop.eup %7933 }
 0xe2f   : > { %v5832_v33 = vmul.f32 %v7934_v20, %v10158_v47  ;;  %v7649_v47 = vld [vmem:[%s10640_s10 + $0x70] sm:$0xff]  }
 0xe30   : > { %v7936_v38 = vpop.eup %7935  ;;  %7042 = vmatprep.subr.bf16.mxu0 %v7649_v47  ;;  %7548 = vmatprep.subr.bf16.mxu1 %v7649_v47 }
 0xe31   : > { %6081 = vmatmul.mubr.bf16.gmra.mrb[172].mxu1 %v5887_v3  ;;  %v5833_v34 = vmul.f32 %v7936_v38, %v10161_v6  ;;  %v5855_v41 = vmul.f32 %v10213_v55, %v5832_v33  ;;  %7043 = vmatpush3.bf16.msra.mxu0 %v7650_v1 }
 0xe32   : > { %v7938_v36 = vpop.eup %7937  ;;  %6090 = vmatprep.mubr.bf16.mxu1 %v10705_v19  ;;  %7556 = vmatpush3.bf16.msra.mxu1 %v7650_v1 }
 0xe33   : > { %v5856_v2 = vmul.f32 %v10213_v55, %v5833_v34  ;;  %v10309_v6 = vadd.f32 %v10221_v57, %v5855_v41  ;;  %v5834_v42 = vmul.f32 %v7938_v36, %v10166_v53  ;;  %7044 = vmatprep.subr.bf16.mxu0 %v7651_v27  ;;  %7549 = vmatprep.subr.bf16.mxu1 %v7651_v27 }
 0xe34   : > { %v7940_v21 = vpop.eup %7939 }
 0xe35   : > { %v10312_v9 = vadd.f32 %v10221_v57, %v5856_v2  ;;  %v5835_v54 = vmul.f32 %v7940_v21, %v10171_v4  ;;  %v5857_v53 = vmul.f32 %v10213_v55, %v5834_v42  ;;  %v7652_v4 = vld [vmem:[%s10640_s10 + $0x38] sm:$0xff]  }
 0xe36   : > { %7045 = vmatpush3.bf16.msra.mxu0 %v7652_v4  ;;  %7557 = vmatpush3.bf16.msra.mxu1 %v7652_v4 }
 0xe37   : > { %v5888_v62 = vpack.c.bf16 %v10312_v9, %v10309_v6  ;;  %v5858_v0 = vmul.f32 %v10213_v55, %v5835_v54  ;;  %v10334_v12 = vadd.f32 %v10221_v57, %v5857_v53  ;;  %v5906_v55 = vld [vmem:[%s10639_s9] sm:$0x3] }
 0xe38   : > { %v10347_v39 = vrot.slane %v5906_v55, %v10728_v63 }
 0xe39   : > { %6091 = vmatmul.mubr.bf16.gmra.mrb[176].mxu1 %v5888_v62  ;;  %v10331_v17 = vadd.f32 %v10221_v57, %v5858_v0 }
 0xe3a   : > { %6100 = vmatprep.mubr.bf16.mxu1 %v10705_v19  ;;  %v10727_v19 = vsub.s32 0, %v10726_v25 }
 0xe3b   : > { %v5889_v8 = vpack.c.bf16 %v10331_v17, %v10334_v12 }
 0xe3c   : > { %v10343_v46 = vrot.slane %v5906_v55, %v10727_v19 }
 0xe41   : > { %6101 = vmatmul.mubr.bf16.gmra.mrb[180].mxu1 %v5889_v8 }
 0xeb1   : > { %v6032_v18 = vpop.f32.mrb[152].mxu1 }
 0xeb2   : > { %v6033_v57 = vadd.f32 %v6032_v18, %v10343_v46  ;;  %v6034_v29 = vpop.f32.mrb[153].mxu1 }
 0xeb3   : > { %v6035_v51 = vadd.f32 %v6034_v29, %v10347_v39  ;;  %v6036_v28 = vpop.f32.mrb[154].mxu1 }
 0xeb4   : > { %v6037_v13 = vadd.f32 %v6036_v28, %v10343_v46  ;;  %v6038_v30 = vpop.f32.mrb[155].mxu1  ;;  %v6111_v32 = vmax.f32 %v6033_v57, 0.0 }
 0xeb5   : > { %v6039_v61 = vadd.f32 %v6038_v30, %v10347_v39  ;;  %v6112_v52 = vmax.f32 %v6035_v51, 0.0 }
 0xeb6   : > { %v6113_v7 = vmax.f32 %v6037_v13, 0.0 }
 0xeb7   : > { %v6114_v44 = vmax.f32 %v6039_v61, 0.0 }
 0xeb8   : > { %v6143_v11 = vpack.c.bf16 %v6113_v7, %v6111_v32 }
 0xeb9   : > { %v6144_v35 = vpack.c.bf16 %v6114_v44, %v6112_v52  ;;  %v6042_v49 = vpop.f32.mrb[156].mxu1 }
 0xeba   : > { %v6043_v5 = vadd.f32 %v6042_v49, %v10343_v46  ;;  %v6044_v45 = vpop.f32.mrb[157].mxu1 }
 0xebb   : > { %v6045_v48 = vadd.f32 %v6044_v45, %v10347_v39  ;;  %v6046_v23 = vpop.f32.mrb[158].mxu1  ;;  %6326 = vmatprep.mubr.bf16.mxu0 %v6144_v35 }
 0xebc   : > { %v6047_v10 = vadd.f32 %v6046_v23, %v10343_v46  ;;  %v6048_v26 = vpop.f32.mrb[159].mxu1  ;;  %6327 = vmatmul.mubr.bf16.vlgmr.msra.gmra.mrb[168].mxu0 %v6143_v11  ;;  %v6115_v20 = vmax.f32 %v6043_v5, 0.0 }
 0xebd   : > { %v6049_v58 = vadd.f32 %v6048_v26, %v10347_v39  ;;  %v6116_v33 = vmax.f32 %v6045_v48, 0.0 }
 0xebe   : > { %v6117_v3 = vmax.f32 %v6047_v10, 0.0 }
 0xebf   : > { %v6118_v38 = vmax.f32 %v6049_v58, 0.0 }
 0xec0   : > { %v6145_v34 = vpack.c.bf16 %v6117_v3, %v6115_v20 }
 0xec1   : > { %v6146_v41 = vpack.c.bf16 %v6118_v38, %v6116_v33 }
 0xec3   : > { %6334 = vmatprep.mubr.bf16.mxu0 %v6146_v41 }
 0xec4   : > { %6335 = vmatmul.mubr.bf16.gmra.mrb[172].mxu0 %v6145_v34 }
 0xeec   : > { %v6052_v43 = vpop.f32.mrb[160].mxu1 }
 0xeed   : > { %v6053_v36 = vadd.f32 %v6052_v43, %v10343_v46  ;;  %v6054_v2 = vpop.f32.mrb[161].mxu1 }
 0xeee   : > { %v6055_v21 = vadd.f32 %v6054_v2, %v10347_v39  ;;  %v6056_v47 = vpop.f32.mrb[162].mxu1 }
 0xeef   : > { %v6057_v42 = vadd.f32 %v6056_v47, %v10343_v46  ;;  %v6058_v54 = vpop.f32.mrb[163].mxu1  ;;  %v6119_v62 = vmax.f32 %v6053_v36, 0.0 }
 0xef0   : > { %v6059_v1 = vadd.f32 %v6058_v54, %v10347_v39  ;;  %v6120_v27 = vmax.f32 %v6055_v21, 0.0 }
 0xef1   : > { %v6121_v0 = vmax.f32 %v6057_v42, 0.0 }
 0xef2   : > { %v6122_v53 = vmax.f32 %v6059_v1, 0.0 }
 0xef3   : > { %v6147_v4 = vpack.c.bf16 %v6121_v0, %v6119_v62 }
 0xef4   : > { %v6148_v8 = vpack.c.bf16 %v6122_v53, %v6120_v27  ;;  %v6062_v55 = vpop.f32.mrb[164].mxu1 }
 0xef5   : > { %v6063_v25 = vadd.f32 %v6062_v55, %v10343_v46  ;;  %v6064_v19 = vpop.f32.mrb[165].mxu1 }
 0xef6   : > { %v6065_v63 = vadd.f32 %v6064_v19, %v10347_v39  ;;  %v6066_v18 = vpop.f32.mrb[166].mxu1  ;;  %6342 = vmatprep.mubr.bf16.mxu0 %v6148_v8 }
 0xef7   : > { %v6067_v57 = vadd.f32 %v6066_v18, %v10343_v46  ;;  %v6068_v29 = vpop.f32.mrb[167].mxu1  ;;  %6343 = vmatmul.mubr.bf16.gmra.mrb[176].mxu0 %v6147_v4  ;;  %v6123_v28 = vmax.f32 %v6063_v25, 0.0 }
 0xef8   : > { %v6069_v51 = vadd.f32 %v6068_v29, %v10347_v39  ;;  %v6124_v30 = vmax.f32 %v6065_v63, 0.0 }
 0xef9   : > { %v6125_v13 = vmax.f32 %v6067_v57, 0.0 }
 0xefa   : > { %v6126_v61 = vmax.f32 %v6069_v51, 0.0 }
 0xefb   : > { %v6149_v32 = vpack.c.bf16 %v6125_v13, %v6123_v28 }
 0xefc   : > { %v6150_v7 = vpack.c.bf16 %v6126_v61, %v6124_v30  ;;  %v6072_v52 = vpop.f32.mrb[168].mxu1 }
 0xefd   : > { %v6073_v44 = vadd.f32 %v6072_v52, %v10343_v46  ;;  %v6074_v11 = vpop.f32.mrb[169].mxu1 }
 0xefe   : > { %v6075_v35 = vadd.f32 %v6074_v11, %v10347_v39  ;;  %v6076_v49 = vpop.f32.mrb[170].mxu1  ;;  %6350 = vmatprep.mubr.bf16.mxu0 %v6150_v7 }
 0xeff   : > { %v6077_v5 = vadd.f32 %v6076_v49, %v10343_v46  ;;  %v6078_v45 = vpop.f32.mrb[171].mxu1  ;;  %6351 = vmatmul.mubr.bf16.gmra.mrb[180].mxu0 %v6149_v32  ;;  %v6127_v23 = vmax.f32 %v6073_v44, 0.0 }
 0xf00   : > { %v6079_v48 = vadd.f32 %v6078_v45, %v10347_v39  ;;  %v6128_v26 = vmax.f32 %v6075_v35, 0.0 }
 0xf01   : > { %v6129_v10 = vmax.f32 %v6077_v5, 0.0 }
 0xf02   : > { %v6130_v58 = vmax.f32 %v6079_v48, 0.0 }
 0xf03   : > { %v6151_v20 = vpack.c.bf16 %v6129_v10, %v6127_v23 }
 0xf04   : > { %v6152_v3 = vpack.c.bf16 %v6130_v58, %v6128_v26  ;;  %v6082_v33 = vpop.f32.mrb[172].mxu1  ;;  %v10384_v58 = vld [vmem:[%s10641_s11] ss:$0 sm:$0xff] }
 0xf05   : > { %v6083_v38 = vadd.f32 %v6082_v33, %v10343_v46  ;;  %v6084_v34 = vpop.f32.mrb[173].mxu1 }
 0xf06   : > { %v6085_v41 = vadd.f32 %v6084_v34, %v10347_v39  ;;  %v6086_v43 = vpop.f32.mrb[174].mxu1  ;;  %6358 = vmatprep.mubr.bf16.mxu0 %v6152_v3 }
 0xf07   : > { %v6087_v36 = vadd.f32 %v6086_v43, %v10343_v46  ;;  %v6088_v2 = vpop.f32.mrb[175].mxu1  ;;  %6359 = vmatmul.mubr.bf16.gmra.mrb[184].mxu0 %v6151_v20  ;;  %v6131_v47 = vmax.f32 %v6083_v38, 0.0 }
 0xf08   : > { %v6089_v21 = vadd.f32 %v6088_v2, %v10347_v39  ;;  %v6132_v54 = vmax.f32 %v6085_v41, 0.0 }
 0xf09   : > { %v6133_v42 = vmax.f32 %v6087_v36, 0.0 }
 0xf0a   : > { %v6134_v1 = vmax.f32 %v6089_v21, 0.0 }
 0xf0b   : > { %v6153_v62 = vpack.c.bf16 %v6133_v42, %v6131_v47 }
 0xf0c   : > { %v6154_v0 = vpack.c.bf16 %v6134_v1, %v6132_v54  ;;  %v6092_v27 = vpop.f32.mrb[176].mxu1 }
 0xf0d   : > { %v6093_v53 = vadd.f32 %v6092_v27, %v10343_v46  ;;  %v6094_v4 = vpop.f32.mrb[177].mxu1 }
 0xf0e   : > { %v6095_v8 = vadd.f32 %v6094_v4, %v10347_v39  ;;  %v6096_v55 = vpop.f32.mrb[178].mxu1  ;;  %6366 = vmatprep.mubr.bf16.mxu0 %v6154_v0 }
 0xf0f   : > { %v6097_v25 = vadd.f32 %v6096_v55, %v10343_v46  ;;  %v6098_v19 = vpop.f32.mrb[179].mxu1  ;;  %6367 = vmatmul.mubr.bf16.gmra.mrb[188].mxu0 %v6153_v62  ;;  %v6135_v18 = vmax.f32 %v6093_v53, 0.0 }
 0xf10   : > { %v6099_v63 = vadd.f32 %v6098_v19, %v10347_v39  ;;  %v6136_v29 = vmax.f32 %v6095_v8, 0.0 }
 0xf11   : > { %v6137_v57 = vmax.f32 %v6097_v25, 0.0 }
 0xf12   : > { %v6138_v51 = vmax.f32 %v6099_v63, 0.0 }
 0xf13   : > { %v6155_v28 = vpack.c.bf16 %v6137_v57, %v6135_v18 }
 0xf14   : > { %v6156_v13 = vpack.c.bf16 %v6138_v51, %v6136_v29  ;;  %v6102_v30 = vpop.f32.mrb[180].mxu1 }
 0xf15   : > { %v6103_v61 = vadd.f32 %v6102_v30, %v10343_v46  ;;  %v6104_v32 = vpop.f32.mrb[181].mxu1 }
 0xf16   : > { %v6105_v7 = vadd.f32 %v6104_v32, %v10347_v39  ;;  %v6106_v52 = vpop.f32.mrb[182].mxu1  ;;  %6374 = vmatprep.mubr.bf16.mxu1 %v6156_v13 }
 0xf17   : > { %v6107_v44 = vadd.f32 %v6106_v52, %v10343_v46  ;;  %v6108_v11 = vpop.f32.mrb[183].mxu1  ;;  %6375 = vmatmul.mubr.bf16.vlgmr.msra.gmra.mrb[184].mxu1 %v6155_v28  ;;  %v6139_v49 = vmax.f32 %v6103_v61, 0.0 }
 0xf18   : > { %v6109_v35 = vadd.f32 %v6108_v11, %v10347_v39  ;;  %v6140_v45 = vmax.f32 %v6105_v7, 0.0 }
 0xf19   : > { %v6141_v5 = vmax.f32 %v6107_v44, 0.0 }
 0xf1a   : > { %v6142_v48 = vmax.f32 %v6109_v35, 0.0 }
 0xf1b   : > { %v6157_v23 = vpack.c.bf16 %v6141_v5, %v6139_v49 }
 0xf1c   : > { %v6158_v10 = vpack.c.bf16 %v6142_v48, %v6140_v45 }
 0xf1e   : > { %6382 = vmatprep.mubr.bf16.mxu1 %v6158_v10 }
 0xf1f   : > { %6383 = vmatmul.mubr.bf16.gmra.mrb[188].mxu1 %v6157_v23 }
 0xf8f   : > { %v7046_v26 = vpop.f32.mrb[168].mxu0 }
 0xf90   : > { %v7047_v20 = vpop.f32.mrb[169].mxu0 }
 0xf91   : > { %v7048_v46 = vadd.f32 %v7047_v20, %v7046_v26  ;;  %v7049_v3 = vpop.f32.mrb[170].mxu0 }
 0xf92   : > { %v7050_v33 = vpop.f32.mrb[171].mxu0 }
 0xf93   : > { %v6329_v39 = vadd.f32 %v7048_v46, %v10384_v58  ;;  %v7051_v38 = vadd.f32 %v7050_v33, %v7049_v3 }
 0xf95   : > { %v6332_v34 = vadd.f32 %v7051_v38, %v10384_v58  ;;  %v10389_v41 = vadd.f32 %v6329_v39, %v10225_v14 }
 0xf97   : > { %v7052_v43 = vpop.f32.mrb[172].mxu0  ;;  %6407 = vadd.xlane.f32.xlu1 %v10389_v41  ;;  %v10393_v36 = vadd.f32 %v6332_v34, %v10228_v59 }
 0xf98   : > { %v7053_v2 = vpop.f32.mrb[173].mxu0 }
 0xf99   : > { %v7054_v21 = vadd.f32 %v7053_v2, %v7052_v43  ;;  %v7055_v47 = vpop.f32.mrb[174].mxu0  ;;  %6409 = vadd.xlane.f32.xlu0 %v10393_v36 }
 0xf9a   : > { %v7056_v42 = vpop.f32.mrb[175].mxu0 }
 0xf9b   : > { %v6337_v54 = vadd.f32 %v7054_v21, %v10384_v58  ;;  %v7057_v1 = vadd.f32 %v7056_v42, %v7055_v47 }
 0xf9d   : > { %v6340_v62 = vadd.f32 %v7057_v1, %v10384_v58  ;;  %v10399_v14 = vadd.f32 %v6337_v54, %v10241_v16 }
 0xf9f   : > { %6411 = vadd.xlane.f32.xlu1 %v10399_v14  ;;  %v10403_v0 = vadd.f32 %v6340_v62, %v10238_v37 }
 0xfa1   : > { %6413 = vadd.xlane.f32.xlu0 %v10403_v0 }
 0xfca   : > { %v7058_v59 = vpop.f32.mrb[176].mxu0 }
 0xfcb   : > { %v7059_v27 = vpop.f32.mrb[177].mxu0 }
 0xfcc   : > { %v7060_v53 = vadd.f32 %v7059_v27, %v7058_v59  ;;  %v7061_v4 = vpop.f32.mrb[178].mxu0 }
 0xfcd   : > { %v7062_v8 = vpop.f32.mrb[179].mxu0 }
 0xfce   : > { %v6345_v55 = vadd.f32 %v7060_v53, %v10384_v58  ;;  %v7063_v25 = vadd.f32 %v7062_v8, %v7061_v4 }
 0xfd0   : > { %v6348_v19 = vadd.f32 %v7063_v25, %v10384_v58  ;;  %v10409_v16 = vadd.f32 %v6345_v55, %v10251_v56 }
 0xfd2   : > { %v7064_v63 = vpop.f32.mrb[180].mxu0  ;;  %6415 = vadd.xlane.f32.xlu1 %v10409_v16  ;;  %v10413_v37 = vadd.f32 %v6348_v19, %v10254_v31 }
 0xfd3   : > { %v7065_v18 = vpop.f32.mrb[181].mxu0 }
 0xfd4   : > { %v7066_v57 = vadd.f32 %v7065_v18, %v7064_v63  ;;  %v7067_v29 = vpop.f32.mrb[182].mxu0  ;;  %6417 = vadd.xlane.f32.xlu0 %v10413_v37 }
 0xfd5   : > { %v7068_v51 = vpop.f32.mrb[183].mxu0 }
 0xfd6   : > { %v6353_v28 = vadd.f32 %v7066_v57, %v10384_v58  ;;  %v7069_v13 = vadd.f32 %v7068_v51, %v7067_v29 }
 0xfd8   : > { %v6356_v30 = vadd.f32 %v7069_v13, %v10384_v58  ;;  %v10419_v56 = vadd.f32 %v6353_v28, %v10267_v60 }
 0xfda   : > { %v7070_v61 = vpop.f32.mrb[184].mxu0  ;;  %6419 = vadd.xlane.f32.xlu1 %v10419_v56  ;;  %v10423_v31 = vadd.f32 %v6356_v30, %v10264_v40 }
 0xfdb   : > { %v7071_v32 = vpop.f32.mrb[185].mxu0 }
 0xfdc   : > { %v7072_v7 = vadd.f32 %v7071_v32, %v7070_v61  ;;  %v7073_v52 = vpop.f32.mrb[186].mxu0  ;;  %6421 = vadd.xlane.f32.xlu0 %v10423_v31 }
 0xfdd   : > { %v7074_v44 = vpop.f32.mrb[187].mxu0 }
 0xfde   : > { %v6361_v11 = vadd.f32 %v7072_v7, %v10384_v58  ;;  %v7075_v35 = vadd.f32 %v7074_v44, %v7073_v52 }
 0xfe0   : > { %v6364_v49 = vadd.f32 %v7075_v35, %v10384_v58  ;;  %v10429_v60 = vadd.f32 %v6361_v11, %v10277_v50 }
 0xfe2   : > { %v7076_v5 = vpop.f32.mrb[188].mxu0  ;;  %6423 = vadd.xlane.f32.xlu1 %v10429_v60  ;;  %v10433_v40 = vadd.f32 %v6364_v49, %v10280_v15 }
 0xfe3   : > { %v7077_v45 = vpop.f32.mrb[189].mxu0 }
 0xfe4   : > { %v7078_v48 = vadd.f32 %v7077_v45, %v7076_v5  ;;  %v7079_v23 = vpop.f32.mrb[190].mxu0  ;;  %6425 = vadd.xlane.f32.xlu0 %v10433_v40 }
 0xfe5   : > { %v7080_v10 = vpop.f32.mrb[191].mxu0 }
 0xfe6   : > { %v6369_v26 = vadd.f32 %v7078_v48, %v10384_v58  ;;  %v7081_v20 = vadd.f32 %v7080_v10, %v7079_v23 }
 0xfe8   : > { %v6372_v46 = vadd.f32 %v7081_v20, %v10384_v58  ;;  %v10439_v50 = vadd.f32 %v6369_v26, %v10293_v22 }
 0xfea   : > { %v7082_v3 = vpop.f32.mrb[184].mxu1  ;;  %6427 = vadd.xlane.f32.xlu1 %v10439_v50  ;;  %v10443_v15 = vadd.f32 %v6372_v46, %v10290_v24 }
 0xfeb   : > { %v7083_v33 = vpop.f32.mrb[185].mxu1 }
 0xfec   : > { %v7084_v39 = vadd.f32 %v7083_v33, %v7082_v3  ;;  %v7085_v38 = vpop.f32.mrb[186].mxu1  ;;  %6429 = vadd.xlane.f32.xlu0 %v10443_v15 }
 0xfed   : > { %v7086_v34 = vpop.f32.mrb[187].mxu1 }
 0xfee   : > { %v6377_v43 = vadd.f32 %v7084_v39, %v10384_v58  ;;  %v7087_v2 = vadd.f32 %v7086_v34, %v7085_v38 }
 0xff0   : > { %v6380_v21 = vadd.f32 %v7087_v2, %v10384_v58  ;;  %v10449_v22 = vadd.f32 %v6377_v43, %v10309_v6 }
 0xff2   : > { %v7088_v47 = vpop.f32.mrb[188].mxu1  ;;  %6431 = vadd.xlane.f32.xlu1 %v10449_v22  ;;  %v10453_v24 = vadd.f32 %v6380_v21, %v10312_v9 }
 0xff3   : > { %v7089_v42 = vpop.f32.mrb[189].mxu1 }
 0xff4   : > { %v7090_v54 = vadd.f32 %v7089_v42, %v7088_v47  ;;  %v7091_v1 = vpop.f32.mrb[190].mxu1  ;;  %6433 = vadd.xlane.f32.xlu0 %v10453_v24 }
 0xff5   : > { %v7092_v62 = vpop.f32.mrb[191].mxu1 }
 0xff6   : > { %v6385_v59 = vadd.f32 %v7090_v54, %v10384_v58  ;;  %v7093_v27 = vadd.f32 %v7092_v62, %v7091_v1 }
 0xff8   : > { %v6388_v53 = vadd.f32 %v7093_v27, %v10384_v58  ;;  %v10459_v6 = vadd.f32 %v6385_v59, %v10334_v12 }
 0xffa   : > { %6435 = vadd.xlane.f32.xlu1 %v10459_v6  ;;  %v10463_v4 = vadd.f32 %v6388_v53, %v10331_v17 }
 0xffc   : > { %6437 = vadd.xlane.f32.xlu0 %v10463_v4 }
0x1024   : > { %v6408_v9 = vpop.xlane.xlu1 %6407 }
0x1025   : > { %v6439_v8 = vmul.f32 0.0078125, %v6408_v9 }
0x1026   : > { %v6410_v55 = vpop.xlane.xlu0 %6409 }
0x1027   : > { %v10467_v25 = vsub.f32 %v10389_v41, %v6439_v8  ;;  %v6440_v19 = vmul.f32 0.0078125, %v6410_v55 }
0x1029   : > { %v10470_v63 = vsub.f32 %v10393_v36, %v6440_v19  ;;  %v6471_v12 = vmul.f32 %v10467_v25, %v10467_v25 }
0x102b   : > { %6487 = vadd.xlane.f32.xlu1 %v6471_v12  ;;  %v6472_v17 = vmul.f32 %v10470_v63, %v10470_v63 }
0x102c   : > { %v6412_v58 = vpop.xlane.xlu1 %6411 }
0x102d   : > { %v6441_v18 = vmul.f32 0.0078125, %v6412_v58  ;;  %6489 = vadd.xlane.f32.xlu0 %v6472_v17 }
0x102e   : > { %v6414_v57 = vpop.xlane.xlu0 %6413 }
0x102f   : > { %v10477_v29 = vsub.f32 %v10399_v14, %v6441_v18  ;;  %v6442_v41 = vmul.f32 0.0078125, %v6414_v57 }
0x1031   : > { %v10480_v51 = vsub.f32 %v10403_v0, %v6442_v41  ;;  %v6473_v36 = vmul.f32 %v10477_v29, %v10477_v29 }
0x1033   : > { %6491 = vadd.xlane.f32.xlu1 %v6473_v36  ;;  %v6474_v28 = vmul.f32 %v10480_v51, %v10480_v51 }
0x1035   : > { %6493 = vadd.xlane.f32.xlu0 %v6474_v28 }
0x105f   : > { %v6416_v13 = vpop.xlane.xlu1 %6415 }
0x1060   : > { %v6443_v30 = vmul.f32 0.0078125, %v6416_v13 }
0x1061   : > { %v6418_v61 = vpop.xlane.xlu0 %6417 }
0x1062   : > { %v10487_v32 = vsub.f32 %v10409_v16, %v6443_v30  ;;  %v6444_v14 = vmul.f32 0.0078125, %v6418_v61  ;;  %v10549_v30 = vld [vmem:[%s10642_s12] ss:$0 sm:$0xff] }
0x1064   : > { %v10490_v7 = vsub.f32 %v10413_v37, %v6444_v14  ;;  %v6475_v0 = vmul.f32 %v10487_v32, %v10487_v32 }
0x1066   : > { %6495 = vadd.xlane.f32.xlu1 %v6475_v0  ;;  %v6476_v52 = vmul.f32 %v10490_v7, %v10490_v7  ;;  %v10555_v0 = vld [vmem:[%s10643_s13] ss:$0 sm:$0xff] }
0x1067   : > { %v6420_v44 = vpop.xlane.xlu1 %6419 }
0x1068   : > { %v6445_v11 = vmul.f32 0.0078125, %v6420_v44  ;;  %6497 = vadd.xlane.f32.xlu0 %v6476_v52 }
0x1069   : > { %v6422_v35 = vpop.xlane.xlu0 %6421 }
0x106a   : > { %v10497_v49 = vsub.f32 %v10419_v56, %v6445_v11  ;;  %v6446_v16 = vmul.f32 0.0078125, %v6422_v35 }
0x106c   : > { %v10500_v5 = vsub.f32 %v10423_v31, %v6446_v16  ;;  %v6477_v37 = vmul.f32 %v10497_v49, %v10497_v49 }
0x106e   : > { %6499 = vadd.xlane.f32.xlu1 %v6477_v37  ;;  %v6478_v45 = vmul.f32 %v10500_v5, %v10500_v5 }
0x106f   : > { %v6424_v48 = vpop.xlane.xlu1 %6423 }
0x1070   : > { %v6447_v23 = vmul.f32 0.0078125, %v6424_v48  ;;  %6501 = vadd.xlane.f32.xlu0 %v6478_v45 }
0x1071   : > { %v6426_v10 = vpop.xlane.xlu0 %6425 }
0x1072   : > { %v10507_v26 = vsub.f32 %v10429_v60, %v6447_v23  ;;  %v6448_v56 = vmul.f32 0.0078125, %v6426_v10 }
0x1074   : > { %v10510_v20 = vsub.f32 %v10433_v40, %v6448_v56  ;;  %v6479_v31 = vmul.f32 %v10507_v26, %v10507_v26 }
0x1076   : > { %6503 = vadd.xlane.f32.xlu1 %v6479_v31  ;;  %v6480_v46 = vmul.f32 %v10510_v20, %v10510_v20 }
0x1077   : > { %v6428_v3 = vpop.xlane.xlu1 %6427 }
0x1078   : > { %v6449_v33 = vmul.f32 0.0078125, %v6428_v3  ;;  %6505 = vadd.xlane.f32.xlu0 %v6480_v46 }
0x1079   : > { %v6430_v39 = vpop.xlane.xlu0 %6429 }
0x107a   : > { %v10517_v38 = vsub.f32 %v10439_v50, %v6449_v33  ;;  %v6450_v60 = vmul.f32 0.0078125, %v6430_v39 }
0x107c   : > { %v10520_v34 = vsub.f32 %v10443_v15, %v6450_v60  ;;  %v6481_v40 = vmul.f32 %v10517_v38, %v10517_v38 }
0x107e   : > { %6507 = vadd.xlane.f32.xlu1 %v6481_v40  ;;  %v6482_v43 = vmul.f32 %v10520_v34, %v10520_v34 }
0x107f   : > { %v6432_v2 = vpop.xlane.xlu1 %6431 }
0x1080   : > { %v6451_v21 = vmul.f32 0.0078125, %v6432_v2  ;;  %6509 = vadd.xlane.f32.xlu0 %v6482_v43 }
0x1081   : > { %v6434_v47 = vpop.xlane.xlu0 %6433 }
0x1082   : > { %v10527_v42 = vsub.f32 %v10449_v22, %v6451_v21  ;;  %v6452_v50 = vmul.f32 0.0078125, %v6434_v47 }
0x1084   : > { %v10530_v54 = vsub.f32 %v10453_v24, %v6452_v50  ;;  %v6483_v15 = vmul.f32 %v10527_v42, %v10527_v42 }
0x1086   : > { %6511 = vadd.xlane.f32.xlu1 %v6483_v15  ;;  %v6484_v1 = vmul.f32 %v10530_v54, %v10530_v54 }
0x1087   : > { %v6436_v62 = vpop.xlane.xlu1 %6435 }
0x1088   : > { %v6453_v59 = vmul.f32 0.0078125, %v6436_v62  ;;  %6513 = vadd.xlane.f32.xlu0 %v6484_v1 }
0x1089   : > { %v6438_v27 = vpop.xlane.xlu0 %6437 }
0x108a   : > { %v10537_v53 = vsub.f32 %v10459_v6, %v6453_v59  ;;  %v6454_v22 = vmul.f32 0.0078125, %v6438_v27 }
0x108c   : > { %v10540_v9 = vsub.f32 %v10463_v4, %v6454_v22  ;;  %v6485_v24 = vmul.f32 %v10537_v53, %v10537_v53 }
0x108e   : > { %6515 = vadd.xlane.f32.xlu1 %v6485_v24  ;;  %v6486_v8 = vmul.f32 %v10540_v9, %v10540_v9 }
0x1090   : > { %6517 = vadd.xlane.f32.xlu0 %v6486_v8 }
0x10b8   : > { %v6488_v55 = vpop.xlane.xlu1 %6487 }
0x10b9   : > { %v6519_v19 = vmul.f32 0.0078125, %v6488_v55 }
0x10ba   : > { %v6490_v12 = vpop.xlane.xlu0 %6489 }
0x10bb   : > { %v6535_v17 = vadd.f32 1e-05, %v6519_v19  ;;  %v6520_v58 = vmul.f32 0.0078125, %v6490_v12 }
0x10bd   : > { %7941 = vrsqrt.f32 %v6535_v17  ;;  %v6536_v6 = vadd.f32 1e-05, %v6520_v58 }
0x10bf   : > { %7943 = vrsqrt.f32 %v6536_v6 }
0x10c0   : > { %v6492_v18 = vpop.xlane.xlu1 %6491 }
0x10c1   : > { %v6521_v4 = vmul.f32 0.0078125, %v6492_v18 }
0x10c2   : > { %v6494_v57 = vpop.xlane.xlu0 %6493 }
0x10c3   : > { %v6537_v41 = vadd.f32 1e-05, %v6521_v4  ;;  %v6522_v36 = vmul.f32 0.0078125, %v6494_v57 }
0x10c5   : > { %7945 = vrsqrt.f32 %v6537_v41  ;;  %v6538_v28 = vadd.f32 1e-05, %v6522_v36 }
0x10c7   : > { %v7942_v13 = vpop.eup %7941  ;;  %7947 = vrsqrt.f32 %v6538_v28 }
0x10c8   : > { %v6567_v61 = vmul.f32 %v7942_v13, %v10467_v25 }
0x10c9   : > { %v7944_v14 = vpop.eup %7943 }
0x10ca   : > { %v6590_v52 = vmul.f32 %v10549_v30, %v6567_v61  ;;  %v6568_v44 = vmul.f32 %v7944_v14, %v10470_v63 }
0x10cc   : > { %v6613_v25 = vadd.f32 %v10555_v0, %v6590_v52  ;;  %v6591_v11 = vmul.f32 %v10549_v30, %v6568_v44 }
0x10ce   : > { %6629 = vst [vmem:[%s10564_s22] sm:$0xff] %v6613_v25  ;;  %v6614_v35 = vadd.f32 %v10555_v0, %v6591_v11 }
0x10cf   : > { %v7946_v16 = vpop.eup %7945 }
0x10d0   : > { %6630 = vst [vmem:[%s10564_s22 + $0x8] sm:$0xff] %v6614_v35  ;;  %v6569_v63 = vmul.f32 %v7946_v16, %v10477_v29 }
0x10d1   : > { %v7948_v37 = vpop.eup %7947 }
0x10d2   : > { %v6592_v45 = vmul.f32 %v10549_v30, %v6569_v63  ;;  %v6570_v48 = vmul.f32 %v7948_v37, %v10480_v51 }
0x10d4   : > { %v6615_v23 = vadd.f32 %v10555_v0, %v6592_v45  ;;  %v6593_v10 = vmul.f32 %v10549_v30, %v6570_v48 }
0x10d6   : > { %6631 = vst [vmem:[%s10564_s22 + $0x10] sm:$0xff] %v6615_v23  ;;  %v6616_v56 = vadd.f32 %v10555_v0, %v6593_v10 }
0x10d8   : > { %6632 = vst [vmem:[%s10564_s22 + $0x18] sm:$0xff] %v6616_v56 }
0x10f3   : > { %v6496_v31 = vpop.xlane.xlu1 %6495 }
0x10f4   : > { %v6523_v46 = vmul.f32 0.0078125, %v6496_v31 }
0x10f5   : > { %v6498_v3 = vpop.xlane.xlu0 %6497 }
0x10f6   : > { %v6539_v33 = vadd.f32 1e-05, %v6523_v46  ;;  %v6524_v39 = vmul.f32 0.0078125, %v6498_v3 }
0x10f8   : > { %7949 = vrsqrt.f32 %v6539_v33  ;;  %v6540_v29 = vadd.f32 1e-05, %v6524_v39 }
0x10fa   : > { %7951 = vrsqrt.f32 %v6540_v29 }
0x10fb   : > { %v6500_v60 = vpop.xlane.xlu1 %6499 }
0x10fc   : > { %v6525_v40 = vmul.f32 0.0078125, %v6500_v60 }
0x10fd   : > { %v6502_v43 = vpop.xlane.xlu0 %6501 }
0x10fe   : > { %v6541_v51 = vadd.f32 1e-05, %v6525_v40  ;;  %v6526_v2 = vmul.f32 0.0078125, %v6502_v43 }
0x1100   : > { %7953 = vrsqrt.f32 %v6541_v51  ;;  %v6542_v21 = vadd.f32 1e-05, %v6526_v2 }
0x1102   : > { %v7950_v47 = vpop.eup %7949  ;;  %7955 = vrsqrt.f32 %v6542_v21 }
0x1103   : > { %v6571_v50 = vmul.f32 %v7950_v47, %v10487_v32  ;;  %v6504_v15 = vpop.xlane.xlu1 %6503 }
0x1104   : > { %v7952_v1 = vpop.eup %7951  ;;  %v6527_v62 = vmul.f32 0.0078125, %v6504_v15 }
0x1105   : > { %v6594_v59 = vmul.f32 %v10549_v30, %v6571_v50  ;;  %v6572_v27 = vmul.f32 %v7952_v1, %v10490_v7  ;;  %v6506_v22 = vpop.xlane.xlu0 %6505 }
0x1106   : > { %v6543_v24 = vadd.f32 1e-05, %v6527_v62  ;;  %v6528_v8 = vmul.f32 0.0078125, %v6506_v22 }
0x1107   : > { %v6617_v55 = vadd.f32 %v10555_v0, %v6594_v59  ;;  %v6595_v19 = vmul.f32 %v10549_v30, %v6572_v27 }
0x1108   : > { %7957 = vrsqrt.f32 %v6543_v24  ;;  %v6544_v12 = vadd.f32 1e-05, %v6528_v8 }
0x1109   : > { %6633 = vst [vmem:[%s10564_s22 + $0x20] sm:$0xff] %v6617_v55  ;;  %v6618_v32 = vadd.f32 %v10555_v0, %v6595_v19 }
0x110a   : > { %v7954_v17 = vpop.eup %7953  ;;  %7959 = vrsqrt.f32 %v6544_v12 }
0x110b   : > { %6634 = vst [vmem:[%s10564_s22 + $0x28] sm:$0xff] %v6618_v32  ;;  %v6573_v58 = vmul.f32 %v7954_v17, %v10497_v49  ;;  %v6508_v6 = vpop.xlane.xlu1 %6507 }
0x110c   : > { %v7956_v7 = vpop.eup %7955  ;;  %v6529_v18 = vmul.f32 0.0078125, %v6508_v6 }
0x110d   : > { %v6596_v4 = vmul.f32 %v10549_v30, %v6573_v58  ;;  %v6574_v57 = vmul.f32 %v7956_v7, %v10500_v5  ;;  %v6510_v41 = vpop.xlane.xlu0 %6509 }
0x110e   : > { %v6545_v36 = vadd.f32 1e-05, %v6529_v18  ;;  %v6530_v28 = vmul.f32 0.0078125, %v6510_v41 }
0x110f   : > { %v6619_v13 = vadd.f32 %v10555_v0, %v6596_v4  ;;  %v6597_v61 = vmul.f32 %v10549_v30, %v6574_v57 }
0x1110   : > { %7961 = vrsqrt.f32 %v6545_v36  ;;  %v6546_v14 = vadd.f32 1e-05, %v6530_v28 }
0x1111   : > { %6635 = vst [vmem:[%s10564_s22 + $0x30] sm:$0xff] %v6619_v13  ;;  %v6620_v49 = vadd.f32 %v10555_v0, %v6597_v61 }
0x1112   : > { %v7958_v52 = vpop.eup %7957  ;;  %7963 = vrsqrt.f32 %v6546_v14 }
0x1113   : > { %6636 = vst [vmem:[%s10564_s22 + $0x38] sm:$0xff] %v6620_v49  ;;  %v6575_v44 = vmul.f32 %v7958_v52, %v10507_v26  ;;  %v6512_v25 = vpop.xlane.xlu1 %6511 }
0x1114   : > { %v7960_v5 = vpop.eup %7959  ;;  %v6531_v11 = vmul.f32 0.0078125, %v6512_v25 }
0x1115   : > { %v6598_v35 = vmul.f32 %v10549_v30, %v6575_v44  ;;  %v6576_v16 = vmul.f32 %v7960_v5, %v10510_v20  ;;  %v6514_v63 = vpop.xlane.xlu0 %6513 }
0x1116   : > { %v6547_v37 = vadd.f32 1e-05, %v6531_v11  ;;  %v6532_v45 = vmul.f32 0.0078125, %v6514_v63 }
0x1117   : > { %v6621_v48 = vadd.f32 %v10555_v0, %v6598_v35  ;;  %v6599_v23 = vmul.f32 %v10549_v30, %v6576_v16 }
0x1118   : > { %7965 = vrsqrt.f32 %v6547_v37  ;;  %v6548_v10 = vadd.f32 1e-05, %v6532_v45 }
0x1119   : > { %6637 = vst [vmem:[%s10564_s22 + $0x40] sm:$0xff] %v6621_v48  ;;  %v6622_v26 = vadd.f32 %v10555_v0, %v6599_v23 }
0x111a   : > { %v7962_v56 = vpop.eup %7961  ;;  %7967 = vrsqrt.f32 %v6548_v10 }
0x111b   : > { %6638 = vst [vmem:[%s10564_s22 + $0x48] sm:$0xff] %v6622_v26  ;;  %v6577_v31 = vmul.f32 %v7962_v56, %v10517_v38  ;;  %v6516_v46 = vpop.xlane.xlu1 %6515 }
0x111c   : > { %v7964_v20 = vpop.eup %7963  ;;  %v6533_v3 = vmul.f32 0.0078125, %v6516_v46 }
0x111d   : > { %v6600_v33 = vmul.f32 %v10549_v30, %v6577_v31  ;;  %v6578_v39 = vmul.f32 %v7964_v20, %v10520_v34  ;;  %v6518_v29 = vpop.xlane.xlu0 %6517 }
0x111e   : > { %v6549_v60 = vadd.f32 1e-05, %v6533_v3  ;;  %v6534_v40 = vmul.f32 0.0078125, %v6518_v29 }
0x111f   : > { %v6623_v43 = vadd.f32 %v10555_v0, %v6600_v33  ;;  %v6601_v51 = vmul.f32 %v10549_v30, %v6578_v39 }
0x1120   : > { %7969 = vrsqrt.f32 %v6549_v60  ;;  %v6550_v2 = vadd.f32 1e-05, %v6534_v40 }
0x1121   : > { %6639 = vst [vmem:[%s10564_s22 + $0x50] sm:$0xff] %v6623_v43  ;;  %v6624_v38 = vadd.f32 %v10555_v0, %v6601_v51 }
0x1122   : > { %v7966_v21 = vpop.eup %7965  ;;  %7971 = vrsqrt.f32 %v6550_v2 }
0x1123   : > { %6640 = vst [vmem:[%s10564_s22 + $0x58] sm:$0xff] %v6624_v38  ;;  %v6579_v47 = vmul.f32 %v7966_v21, %v10527_v42 }
0x1124   : > { %v7968_v34 = vpop.eup %7967 }
0x1125   : > { %v6602_v50 = vmul.f32 %v10549_v30, %v6579_v47  ;;  %v6580_v15 = vmul.f32 %v7968_v34, %v10530_v54 }
0x1127   : > { %v6625_v1 = vadd.f32 %v10555_v0, %v6602_v50  ;;  %v6603_v62 = vmul.f32 %v10549_v30, %v6580_v15 }
0x1129   : > { %6641 = vst [vmem:[%s10564_s22 + $0x60] sm:$0xff] %v6625_v1  ;;  %v6626_v59 = vadd.f32 %v10555_v0, %v6603_v62 }
0x112a   : > { %v7970_v27 = vpop.eup %7969 }
0x112b   : > { %6642 = vst [vmem:[%s10564_s22 + $0x68] sm:$0xff] %v6626_v59  ;;  %v6581_v22 = vmul.f32 %v7970_v27, %v10537_v53 }
0x112c   : > { %v7972_v24 = vpop.eup %7971 }
0x112d   : > { %v6604_v42 = vmul.f32 %v10549_v30, %v6581_v22  ;;  %v6582_v8 = vmul.f32 %v7972_v24, %v10540_v9 }
0x112f   : > { %v6627_v55 = vadd.f32 %v10555_v0, %v6604_v42  ;;  %v6605_v54 = vmul.f32 %v10549_v30, %v6582_v8 }
0x1131   : > { %6643 = vst [vmem:[%s10564_s22 + $0x70] sm:$0xff] %v6627_v55  ;;  %v6628_v19 = vadd.f32 %v10555_v0, %v6605_v54 }
0x1133   : > { %6644 = vst [vmem:[%s10564_s22 + $0x78] sm:$0xff] %v6628_v19 }
0x1134 PF: > { %s24_s29 = sadd.s32 1, %s7979_s29  }
0x1135   : > { %p21_p4 = scmp.ge.s32.totalorder %s24_s29, 4  }
0x1137   :  { %23 = sbr.rel (!%p21_p4) target bundleno = 1 (0x1), region = 109 }

</bundles_post_ra>
